<compile_context>
chip_gen: v7x
topology: tpu7x:2x2x1
jax: 0.10.0
libtpu: 0.0.40
codegen_flags: <defaults>
</compile_context>

<pallas_src>
import functools

import jax
import jax.numpy as jnp
import numpy as np
from jax import lax
from jax.experimental import pallas as pl
from jax.experimental.pallas import tpu as pltpu

BN_EPS = 1e-5


# ----------------------------------------------------------------------------
# Fused kernel: 5-layer conv tower + dual soft-argmax, batch_tile images/step
# ----------------------------------------------------------------------------
def _make_corner_lite_kernel(feat_sz, hw, batch_tile, n_lanes, num_layers):

    def kernel(x_ref, mask_ref, coord_ref, *rest):
        # rest = (w_1..w_L, b_1..b_L, out)
        w_refs = rest[:num_layers]
        b_refs = rest[num_layers:2 * num_layers]
        o_ref = rest[-1]

        # Activations: (Cin, batch_tile*hw); HW (and packed batch) in lanes.
        a = x_ref[0].astype(jnp.float32)

        for li in range(num_layers):
            w_ref = w_refs[li]                       # (9, Cout, Cin)
            cout = w_ref.shape[1]
            # Bias folded into the accumulator init.
            acc = jnp.broadcast_to(b_refs[li][...], (cout, n_lanes))
            for ky in range(3):
                for kx in range(3):
                    tap = ky * 3 + kx
                    d = (ky - 1) * feat_sz + (kx - 1)
                    # shifted[:, i] = a[:, i + d] : static XLU lane rotate.
                    shifted = a if d == 0 else pltpu.roll(a, (-d) % n_lanes,
                                                          axis=1)
                    # LOAD-BEARING invariant: mask[tap, i] == 1 implies the
                    # source index i+d stays inside the SAME hw-segment, so
                    # every rotate wrap (around the lane vector or across a
                    # packed-image boundary) lands on a masked-to-zero lane.
                    # Do not change tap ordering / packing without rechecking.
                    masked = shifted * mask_ref[pl.ds(tap, 1), :]
                    acc = acc + jnp.dot(w_ref[tap], masked,
                                        preferred_element_type=jnp.float32)
            a = jnp.maximum(acc, 0.0) if li < num_layers - 1 else acc
        # a: (2, n_lanes); row 0 = TL score map, row 1 = BR score map.

        # Soft-argmax per packed image (per-image max for numerical safety).
        cx = coord_ref[pl.ds(0, 1), :]               # (1, hw) coord_x / img_sz
        cy = coord_ref[pl.ds(1, 1), :]               # (1, hw) coord_y / img_sz
        for t in range(batch_tile):
            sc = a[:, t * hw:(t + 1) * hw]           # (2, hw), static lane slice
            m = jnp.max(sc, axis=1, keepdims=True)
            e = jnp.exp(sc - m)
            den = jnp.sum(e, axis=1, keepdims=True)          # (2, 1)
            num_x = jnp.sum(e * cx, axis=1, keepdims=True)   # (2, 1)
            num_y = jnp.sum(e * cy, axis=1, keepdims=True)   # (2, 1)
            # Deferred normalization: one tiny reciprocal on the EUP.
            o_ref[0, t] = (jnp.concatenate([num_x, num_y], axis=1)
                           * pl.reciprocal(den))
        # o_ref[0, t] row-major == [x_tl, y_tl, x_br, y_br] (already / img_sz)

    return kernel


# ----------------------------------------------------------------------------
# Wrapper
# ----------------------------------------------------------------------------
def corner_predictor_lite_forward(params, x, *, feat_sz, stride,
                                  batch_tile=None):
    """x: (B, inplanes, feat_sz, feat_sz) NCHW -> (B, 4) = [x_tl,y_tl,x_br,y_br]/img_sz."""
    B, cin, H, W = x.shape
    assert H == feat_sz and W == feat_sz
    hw = feat_sz * feat_sz
    img_sz = float(feat_sz * stride)
    num_layers = len(params["w"])

    # Lane-packed batch tile.  4 keeps the layer-1 working set (~40 vregs)
    # inside the 64-entry vreg file at channel=16; lower it for wide channels.
    if batch_tile is None:
        batch_tile = min(B, 4)
    nb = -(-B // batch_tile)
    B_pad = nb * batch_tile
    n_lanes = batch_tile * hw

    # NCHW -> (nb, Cin, batch_tile*hw): batch packed along lanes.  No dtype
    # cast here; the kernel upcasts after the (smaller) DMA.
    x_flat = x.reshape(B, cin, hw)
    if B_pad != B:
        x_flat = jnp.pad(x_flat, ((0, B_pad - B), (0, 0), (0, 0)))
    x_packed = (x_flat.reshape(nb, batch_tile, cin, hw)
                .transpose(0, 2, 1, 3)
                .reshape(nb, cin, n_lanes))

    # OIHW conv weights (BN already folded) -> per-tap slabs (9, Cout, Cin),
    # tap index = ky*3 + kx, matching the in-kernel tap loop.
    w_taps = [jnp.transpose(w, (2, 3, 0, 1)).reshape(9, w.shape[0], w.shape[1])
              for w in params["w"]]
    b_cols = [b.reshape(-1, 1) for b in params["b"]]

    # Host-precomputed constants (fetched once; block index never changes):
    #   masks : (9, n_lanes) halo/wrap validity per tap, tiled over batch_tile
    #   coords: (2, hw)      soft-argmax coords with the /img_sz folded in
    idx = np.arange(hw)
    row, col = idx // feat_sz, idx % feat_sz
    masks_np = np.zeros((9, hw), np.float32)
    for ky in range(3):
        for kx in range(3):
            dy, dx = ky - 1, kx - 1
            valid = ((row + dy >= 0) & (row + dy < feat_sz) &
                     (col + dx >= 0) & (col + dx < feat_sz))
            masks_np[ky * 3 + kx] = valid.astype(np.float32)
    masks = jnp.asarray(np.tile(masks_np, (1, batch_tile)))     # (9, n_lanes)
    coords = jnp.asarray(
        np.stack([(col + 0.5) * stride, (row + 0.5) * stride], axis=0)
        .astype(np.float32) / img_sz)                           # (2, hw)

    kernel = _make_corner_lite_kernel(feat_sz, hw, batch_tile, n_lanes,
                                      num_layers)

    in_specs = [pl.BlockSpec((1, cin, n_lanes), lambda g: (g, 0, 0)),
                pl.BlockSpec((9, n_lanes), lambda g: (0, 0)),
                pl.BlockSpec((2, hw), lambda g: (0, 0))]
    in_specs += [pl.BlockSpec(w.shape, lambda g: (0, 0, 0)) for w in w_taps]
    in_specs += [pl.BlockSpec(b.shape, lambda g: (0, 0)) for b in b_cols]

    out = pl.pallas_call(
        kernel,
        out_shape=jax.ShapeDtypeStruct((nb, batch_tile, 2, 2), jnp.float32),
        grid=(nb,),
        in_specs=in_specs,
        out_specs=pl.BlockSpec((1, batch_tile, 2, 2), lambda g: (g, 0, 0, 0)),
        compiler_params=pltpu.CompilerParams(
            dimension_semantics=("parallel",)),
    )(x_packed, masks, coords, *w_taps, *b_cols)

    # (nb, batch_tile, 2, 2) row-major == (B_pad, [x_tl, y_tl, x_br, y_br])
    return out.reshape(B_pad, 4)[:B]


# ----------------------------------------------------------------------------
# Parameter init (deterministic; eval-mode BN folded into conv weight/bias)
# ----------------------------------------------------------------------------
def _conv_layer_params(key, cin, cout, fold_bn):
    """Conv2d(3x3, bias=True) [+ eval-mode BatchNorm2d folded in]."""
    kw, kb = jax.random.split(key)
    fan_in = cin * 9
    # Slightly larger than torch's default 1/sqrt(fan_in) weight bound so the
    # score maps are peaked and the numerical self-check below is sensitive.
    w_bound = 3.0 / np.sqrt(fan_in)
    b_bound = 1.0 / np.sqrt(fan_in)
    w = jax.random.uniform(kw, (cout, cin, 3, 3), jnp.float32, -w_bound, w_bound)
    b = jax.random.uniform(kb, (cout,), jnp.float32, -b_bound, b_bound)
    if fold_bn:
        # BatchNorm2d defaults (eval mode): gamma=1, beta=0, mean=0, var=1.
        gamma = jnp.ones((cout,), jnp.float32)
        beta = jnp.zeros((cout,), jnp.float32)
        mean = jnp.zeros((cout,), jnp.float32)
        var = jnp.ones((cout,), jnp.float32)
        s = gamma / jnp.sqrt(var + BN_EPS)
        w = w * s[:, None, None, None]
        b = (b - mean) * s + beta
    return w, b


def init_corner_predictor_lite(key, inplanes, channel):
    dims = [(inplanes, channel), (channel, channel // 2),
            (channel // 2, channel // 4), (channel // 4, channel // 8),
            (channel // 8, 2)]
    keys = jax.random.split(key, len(dims))
    ws, bs = [], []
    for i, (k, (ci, co)) in enumerate(zip(keys, dims)):
        w, b = _conv_layer_params(k, ci, co, fold_bn=(i < len(dims) - 1))
        ws.append(w)
        bs.append(b)
    return {"w": ws, "b": bs}


# ----------------------------------------------------------------------------
# Pure-JAX reference of the same forward pass (for the self-check)
# ----------------------------------------------------------------------------
def reference_forward(params, x, feat_sz, stride):
    h = x.astype(jnp.float32)
    n = len(params["w"])
    for i, (w, b) in enumerate(zip(params["w"], params["b"])):
        h = lax.conv_general_dilated(
            h, w, window_strides=(1, 1), padding=((1, 1), (1, 1)),
            dimension_numbers=("NCHW", "OIHW", "NCHW"),
            precision=lax.Precision.HIGHEST) + b[None, :, None, None]
        if i < n - 1:
            h = jnp.maximum(h, 0.0)
    B = h.shape[0]
    hw = feat_sz * feat_sz
    prob = jax.nn.softmax(h.reshape(B, 2, hw), axis=-1)
    idx = jnp.arange(hw)
    coord_x = ((idx % feat_sz).astype(jnp.float32) + 0.5) * stride
    coord_y = ((idx // feat_sz).astype(jnp.float32) + 0.5) * stride
    ex = jnp.sum(prob * coord_x, axis=-1)                     # (B, 2)
    ey = jnp.sum(prob * coord_y, axis=-1)                     # (B, 2)
    img_sz = feat_sz * stride
    return jnp.stack([ex[:, 0], ey[:, 0], ex[:, 1], ey[:, 1]], axis=1) / img_sz


if __name__ == "__main__":
    # Small shapes consistent with the module: inplanes=4, channel=16,
    # feat_sz=16 (-> hw = 256 lanes), stride=16, batch=2.
    B, inplanes, channel, feat_sz, stride = 2, 4, 16, 16, 16

    key = jax.random.PRNGKey(0)
    k_params, k_x = jax.random.split(key)
    params = init_corner_predictor_lite(k_params, inplanes, channel)
    x = jax.random.normal(k_x, (B, inplanes, feat_sz, feat_sz), jnp.float32)

    fwd = jax.jit(functools.partial(corner_predictor_lite_forward,
                                    feat_sz=feat_sz, stride=stride))
    bbox = fwd(params, x)
    jax.block_until_ready(bbox)

    assert bbox.shape == (B, 4)
    assert bool(jnp.all(jnp.isfinite(bbox)))

    # Numerical self-check against a pure-JAX reference of the same forward.
    # NOTE: in-kernel dots use default MXU precision (bf16-pass decomposition
    # for f32) while the reference uses Precision.HIGHEST -> 2e-2 tolerance.
    ref = reference_forward(params, x, feat_sz, stride)
    assert np.allclose(np.asarray(bbox), np.asarray(ref), rtol=2e-2, atol=2e-2), (
        np.asarray(bbox), np.asarray(ref))

    print("KERNEL_OK")
</pallas_src>

<mosaic_0001>
module attributes {stable_mosaic.version = 11 : i64} {
  func.func @kernel(%arg0: i32, %arg1: memref<1x4x512xf32, #tpu.memory_space<vmem>>, %arg2: memref<9x512xf32, #tpu.memory_space<vmem>>, %arg3: memref<2x256xf32, #tpu.memory_space<vmem>>, %arg4: memref<9x16x4xf32, #tpu.memory_space<vmem>>, %arg5: memref<9x8x16xf32, #tpu.memory_space<vmem>>, %arg6: memref<9x4x8xf32, #tpu.memory_space<vmem>>, %arg7: memref<9x2x4xf32, #tpu.memory_space<vmem>>, %arg8: memref<9x2x2xf32, #tpu.memory_space<vmem>>, %arg9: memref<16x1xf32, #tpu.memory_space<vmem>>, %arg10: memref<8x1xf32, #tpu.memory_space<vmem>>, %arg11: memref<4x1xf32, #tpu.memory_space<vmem>>, %arg12: memref<2x1xf32, #tpu.memory_space<vmem>>, %arg13: memref<2x1xf32, #tpu.memory_space<vmem>>, %arg14: memref<1x2x2x2xf32, #tpu.memory_space<vmem>>) attributes {dimension_semantics = [#tpu.dimension_semantics<parallel>], iteration_bounds = array<i64: 1>, scalar_prefetch = 0 : i64, scratch_operands = 0 : i64, tpu.core_type = #tpu.core_type<tc>, window_params = [{transform_indices = @transform_0, window_bounds = array<i64: 1, 4, 512>}, {pipeline_mode = #tpu.pipeline_mode<synchronous>, transform_indices = @transform_1, window_bounds = array<i64: 9, 512>}, {pipeline_mode = #tpu.pipeline_mode<synchronous>, transform_indices = @transform_2, window_bounds = array<i64: 2, 256>}, {pipeline_mode = #tpu.pipeline_mode<synchronous>, transform_indices = @transform_3, window_bounds = array<i64: 9, 16, 4>}, {pipeline_mode = #tpu.pipeline_mode<synchronous>, transform_indices = @transform_4, window_bounds = array<i64: 9, 8, 16>}, {pipeline_mode = #tpu.pipeline_mode<synchronous>, transform_indices = @transform_5, window_bounds = array<i64: 9, 4, 8>}, {pipeline_mode = #tpu.pipeline_mode<synchronous>, transform_indices = @transform_6, window_bounds = array<i64: 9, 2, 4>}, {pipeline_mode = #tpu.pipeline_mode<synchronous>, transform_indices = @transform_7, window_bounds = array<i64: 9, 2, 2>}, {pipeline_mode = #tpu.pipeline_mode<synchronous>, transform_indices = @transform_8, window_bounds = array<i64: 16, 1>}, {pipeline_mode = #tpu.pipeline_mode<synchronous>, transform_indices = @transform_9, window_bounds = array<i64: 8, 1>}, {pipeline_mode = #tpu.pipeline_mode<synchronous>, transform_indices = @transform_10, window_bounds = array<i64: 4, 1>}, {pipeline_mode = #tpu.pipeline_mode<synchronous>, transform_indices = @transform_11, window_bounds = array<i64: 2, 1>}, {pipeline_mode = #tpu.pipeline_mode<synchronous>, transform_indices = @transform_12, window_bounds = array<i64: 2, 1>}, {transform_indices = @transform_13, window_bounds = array<i64: 1, 2, 2, 2>}]} {
    %c0 = arith.constant 0 : index
    %c0_0 = arith.constant 0 : index
    %c0_1 = arith.constant 0 : index
    %0 = vector.load %arg1[%c0, %c0_0, %c0_1] : memref<1x4x512xf32, #tpu.memory_space<vmem>>, vector<1x4x512xf32>
    %1 = vector.shape_cast %0 : vector<1x4x512xf32> to vector<4x512xf32>
    %c0_2 = arith.constant 0 : index
    %c0_3 = arith.constant 0 : index
    %2 = vector.load %arg9[%c0_2, %c0_3] : memref<16x1xf32, #tpu.memory_space<vmem>>, vector<16x1xf32>
    %3 = vector.shape_cast %2 : vector<16x1xf32> to vector<16x1xf32>
    %4 = vector.broadcast %3 : vector<16x1xf32> to vector<16x512xf32>
    %c17_i32 = arith.constant 17 : i32
    %5 = tpu.dynamic_rotate %1 by %c17_i32 dim 1 : vector<4x512xf32>, i32 -> vector<4x512xf32>
    %c0_4 = arith.constant 0 : index
    %c0_5 = arith.constant 0 : index
    %6 = vector.load %arg2[%c0_4, %c0_5] : memref<9x512xf32, #tpu.memory_space<vmem>>, vector<1x512xf32>
    %7 = vector.broadcast %6 : vector<1x512xf32> to vector<4x512xf32>
    %8 = arith.mulf %5, %7 : vector<4x512xf32>
    %c0_6 = arith.constant 0 : index
    %c0_7 = arith.constant 0 : index
    %c0_8 = arith.constant 0 : index
    %9 = vector.load %arg4[%c0_6, %c0_7, %c0_8] : memref<9x16x4xf32, #tpu.memory_space<vmem>>, vector<1x16x4xf32>
    %10 = vector.shape_cast %9 : vector<1x16x4xf32> to vector<16x4xf32>
    %cst = arith.constant dense<0.000000e+00> : vector<16x512xf32>
    %11 = tpu.matmul %10, %8, %cst {dimension_numbers = #tpu.dot_dimension_numbers<[1], [0], [0], [1], [0, 0, 1, 1], [], []>} : vector<16x4xf32>, vector<4x512xf32>, vector<16x512xf32> -> vector<16x512xf32>
    %12 = arith.addf %4, %11 : vector<16x512xf32>
    %c16_i32 = arith.constant 16 : i32
    %13 = tpu.dynamic_rotate %1 by %c16_i32 dim 1 : vector<4x512xf32>, i32 -> vector<4x512xf32>
    %c1 = arith.constant 1 : index
    %c0_9 = arith.constant 0 : index
    %14 = vector.load %arg2[%c1, %c0_9] : memref<9x512xf32, #tpu.memory_space<vmem>>, vector<1x512xf32>
    %15 = vector.broadcast %14 : vector<1x512xf32> to vector<4x512xf32>
    %16 = arith.mulf %13, %15 : vector<4x512xf32>
    %c1_10 = arith.constant 1 : index
    %c0_11 = arith.constant 0 : index
    %c0_12 = arith.constant 0 : index
    %17 = vector.load %arg4[%c1_10, %c0_11, %c0_12] : memref<9x16x4xf32, #tpu.memory_space<vmem>>, vector<1x16x4xf32>
    %18 = vector.shape_cast %17 : vector<1x16x4xf32> to vector<16x4xf32>
    %cst_13 = arith.constant dense<0.000000e+00> : vector<16x512xf32>
    %19 = tpu.matmul %18, %16, %cst_13 {dimension_numbers = #tpu.dot_dimension_numbers<[1], [0], [0], [1], [0, 0, 1, 1], [], []>} : vector<16x4xf32>, vector<4x512xf32>, vector<16x512xf32> -> vector<16x512xf32>
    %20 = arith.addf %12, %19 : vector<16x512xf32>
    %c15_i32 = arith.constant 15 : i32
    %21 = tpu.dynamic_rotate %1 by %c15_i32 dim 1 : vector<4x512xf32>, i32 -> vector<4x512xf32>
    %c2 = arith.constant 2 : index
    %c0_14 = arith.constant 0 : index
    %22 = vector.load %arg2[%c2, %c0_14] : memref<9x512xf32, #tpu.memory_space<vmem>>, vector<1x512xf32>
    %23 = vector.broadcast %22 : vector<1x512xf32> to vector<4x512xf32>
    %24 = arith.mulf %21, %23 : vector<4x512xf32>
    %c2_15 = arith.constant 2 : index
    %c0_16 = arith.constant 0 : index
    %c0_17 = arith.constant 0 : index
    %25 = vector.load %arg4[%c2_15, %c0_16, %c0_17] : memref<9x16x4xf32, #tpu.memory_space<vmem>>, vector<1x16x4xf32>
    %26 = vector.shape_cast %25 : vector<1x16x4xf32> to vector<16x4xf32>
    %cst_18 = arith.constant dense<0.000000e+00> : vector<16x512xf32>
    %27 = tpu.matmul %26, %24, %cst_18 {dimension_numbers = #tpu.dot_dimension_numbers<[1], [0], [0], [1], [0, 0, 1, 1], [], []>} : vector<16x4xf32>, vector<4x512xf32>, vector<16x512xf32> -> vector<16x512xf32>
    %28 = arith.addf %20, %27 : vector<16x512xf32>
    %c1_i32 = arith.constant 1 : i32
    %29 = tpu.dynamic_rotate %1 by %c1_i32 dim 1 : vector<4x512xf32>, i32 -> vector<4x512xf32>
    %c3 = arith.constant 3 : index
    %c0_19 = arith.constant 0 : index
    %30 = vector.load %arg2[%c3, %c0_19] : memref<9x512xf32, #tpu.memory_space<vmem>>, vector<1x512xf32>
    %31 = vector.broadcast %30 : vector<1x512xf32> to vector<4x512xf32>
    %32 = arith.mulf %29, %31 : vector<4x512xf32>
    %c3_20 = arith.constant 3 : index
    %c0_21 = arith.constant 0 : index
    %c0_22 = arith.constant 0 : index
    %33 = vector.load %arg4[%c3_20, %c0_21, %c0_22] : memref<9x16x4xf32, #tpu.memory_space<vmem>>, vector<1x16x4xf32>
    %34 = vector.shape_cast %33 : vector<1x16x4xf32> to vector<16x4xf32>
    %cst_23 = arith.constant dense<0.000000e+00> : vector<16x512xf32>
    %35 = tpu.matmul %34, %32, %cst_23 {dimension_numbers = #tpu.dot_dimension_numbers<[1], [0], [0], [1], [0, 0, 1, 1], [], []>} : vector<16x4xf32>, vector<4x512xf32>, vector<16x512xf32> -> vector<16x512xf32>
    %36 = arith.addf %28, %35 : vector<16x512xf32>
    %c4 = arith.constant 4 : index
    %c0_24 = arith.constant 0 : index
    %37 = vector.load %arg2[%c4, %c0_24] : memref<9x512xf32, #tpu.memory_space<vmem>>, vector<1x512xf32>
    %38 = vector.broadcast %37 : vector<1x512xf32> to vector<4x512xf32>
    %39 = arith.mulf %1, %38 : vector<4x512xf32>
    %c4_25 = arith.constant 4 : index
    %c0_26 = arith.constant 0 : index
    %c0_27 = arith.constant 0 : index
    %40 = vector.load %arg4[%c4_25, %c0_26, %c0_27] : memref<9x16x4xf32, #tpu.memory_space<vmem>>, vector<1x16x4xf32>
    %41 = vector.shape_cast %40 : vector<1x16x4xf32> to vector<16x4xf32>
    %cst_28 = arith.constant dense<0.000000e+00> : vector<16x512xf32>
    %42 = tpu.matmul %41, %39, %cst_28 {dimension_numbers = #tpu.dot_dimension_numbers<[1], [0], [0], [1], [0, 0, 1, 1], [], []>} : vector<16x4xf32>, vector<4x512xf32>, vector<16x512xf32> -> vector<16x512xf32>
    %43 = arith.addf %36, %42 : vector<16x512xf32>
    %c511_i32 = arith.constant 511 : i32
    %44 = tpu.dynamic_rotate %1 by %c511_i32 dim 1 : vector<4x512xf32>, i32 -> vector<4x512xf32>
    %c5 = arith.constant 5 : index
    %c0_29 = arith.constant 0 : index
    %45 = vector.load %arg2[%c5, %c0_29] : memref<9x512xf32, #tpu.memory_space<vmem>>, vector<1x512xf32>
    %46 = vector.broadcast %45 : vector<1x512xf32> to vector<4x512xf32>
    %47 = arith.mulf %44, %46 : vector<4x512xf32>
    %c5_30 = arith.constant 5 : index
    %c0_31 = arith.constant 0 : index
    %c0_32 = arith.constant 0 : index
    %48 = vector.load %arg4[%c5_30, %c0_31, %c0_32] : memref<9x16x4xf32, #tpu.memory_space<vmem>>, vector<1x16x4xf32>
    %49 = vector.shape_cast %48 : vector<1x16x4xf32> to vector<16x4xf32>
    %cst_33 = arith.constant dense<0.000000e+00> : vector<16x512xf32>
    %50 = tpu.matmul %49, %47, %cst_33 {dimension_numbers = #tpu.dot_dimension_numbers<[1], [0], [0], [1], [0, 0, 1, 1], [], []>} : vector<16x4xf32>, vector<4x512xf32>, vector<16x512xf32> -> vector<16x512xf32>
    %51 = arith.addf %43, %50 : vector<16x512xf32>
    %c497_i32 = arith.constant 497 : i32
    %52 = tpu.dynamic_rotate %1 by %c497_i32 dim 1 : vector<4x512xf32>, i32 -> vector<4x512xf32>
    %c6 = arith.constant 6 : index
    %c0_34 = arith.constant 0 : index
    %53 = vector.load %arg2[%c6, %c0_34] : memref<9x512xf32, #tpu.memory_space<vmem>>, vector<1x512xf32>
    %54 = vector.broadcast %53 : vector<1x512xf32> to vector<4x512xf32>
    %55 = arith.mulf %52, %54 : vector<4x512xf32>
    %c6_35 = arith.constant 6 : index
    %c0_36 = arith.constant 0 : index
    %c0_37 = arith.constant 0 : index
    %56 = vector.load %arg4[%c6_35, %c0_36, %c0_37] : memref<9x16x4xf32, #tpu.memory_space<vmem>>, vector<1x16x4xf32>
    %57 = vector.shape_cast %56 : vector<1x16x4xf32> to vector<16x4xf32>
    %cst_38 = arith.constant dense<0.000000e+00> : vector<16x512xf32>
    %58 = tpu.matmul %57, %55, %cst_38 {dimension_numbers = #tpu.dot_dimension_numbers<[1], [0], [0], [1], [0, 0, 1, 1], [], []>} : vector<16x4xf32>, vector<4x512xf32>, vector<16x512xf32> -> vector<16x512xf32>
    %59 = arith.addf %51, %58 : vector<16x512xf32>
    %c496_i32 = arith.constant 496 : i32
    %60 = tpu.dynamic_rotate %1 by %c496_i32 dim 1 : vector<4x512xf32>, i32 -> vector<4x512xf32>
    %c7 = arith.constant 7 : index
    %c0_39 = arith.constant 0 : index
    %61 = vector.load %arg2[%c7, %c0_39] : memref<9x512xf32, #tpu.memory_space<vmem>>, vector<1x512xf32>
    %62 = vector.broadcast %61 : vector<1x512xf32> to vector<4x512xf32>
    %63 = arith.mulf %60, %62 : vector<4x512xf32>
    %c7_40 = arith.constant 7 : index
    %c0_41 = arith.constant 0 : index
    %c0_42 = arith.constant 0 : index
    %64 = vector.load %arg4[%c7_40, %c0_41, %c0_42] : memref<9x16x4xf32, #tpu.memory_space<vmem>>, vector<1x16x4xf32>
    %65 = vector.shape_cast %64 : vector<1x16x4xf32> to vector<16x4xf32>
    %cst_43 = arith.constant dense<0.000000e+00> : vector<16x512xf32>
    %66 = tpu.matmul %65, %63, %cst_43 {dimension_numbers = #tpu.dot_dimension_numbers<[1], [0], [0], [1], [0, 0, 1, 1], [], []>} : vector<16x4xf32>, vector<4x512xf32>, vector<16x512xf32> -> vector<16x512xf32>
    %67 = arith.addf %59, %66 : vector<16x512xf32>
    %c495_i32 = arith.constant 495 : i32
    %68 = tpu.dynamic_rotate %1 by %c495_i32 dim 1 : vector<4x512xf32>, i32 -> vector<4x512xf32>
    %c8 = arith.constant 8 : index
    %c0_44 = arith.constant 0 : index
    %69 = vector.load %arg2[%c8, %c0_44] : memref<9x512xf32, #tpu.memory_space<vmem>>, vector<1x512xf32>
    %70 = vector.broadcast %69 : vector<1x512xf32> to vector<4x512xf32>
    %71 = arith.mulf %68, %70 : vector<4x512xf32>
    %c8_45 = arith.constant 8 : index
    %c0_46 = arith.constant 0 : index
    %c0_47 = arith.constant 0 : index
    %72 = vector.load %arg4[%c8_45, %c0_46, %c0_47] : memref<9x16x4xf32, #tpu.memory_space<vmem>>, vector<1x16x4xf32>
    %73 = vector.shape_cast %72 : vector<1x16x4xf32> to vector<16x4xf32>
    %cst_48 = arith.constant dense<0.000000e+00> : vector<16x512xf32>
    %74 = tpu.matmul %73, %71, %cst_48 {dimension_numbers = #tpu.dot_dimension_numbers<[1], [0], [0], [1], [0, 0, 1, 1], [], []>} : vector<16x4xf32>, vector<4x512xf32>, vector<16x512xf32> -> vector<16x512xf32>
    %75 = arith.addf %67, %74 : vector<16x512xf32>
    %cst_49 = arith.constant 0.000000e+00 : f32
    %76 = vector.broadcast %cst_49 : f32 to vector<16x512xf32>
    %77 = arith.maximumf %75, %76 : vector<16x512xf32>
    %c0_50 = arith.constant 0 : index
    %c0_51 = arith.constant 0 : index
    %78 = vector.load %arg10[%c0_50, %c0_51] : memref<8x1xf32, #tpu.memory_space<vmem>>, vector<8x1xf32>
    %79 = vector.shape_cast %78 : vector<8x1xf32> to vector<8x1xf32>
    %80 = vector.broadcast %79 : vector<8x1xf32> to vector<8x512xf32>
    %c17_i32_52 = arith.constant 17 : i32
    %81 = tpu.dynamic_rotate %77 by %c17_i32_52 dim 1 : vector<16x512xf32>, i32 -> vector<16x512xf32>
    %c0_53 = arith.constant 0 : index
    %c0_54 = arith.constant 0 : index
    %82 = vector.load %arg2[%c0_53, %c0_54] : memref<9x512xf32, #tpu.memory_space<vmem>>, vector<1x512xf32>
    %83 = vector.broadcast %82 : vector<1x512xf32> to vector<16x512xf32>
    %84 = arith.mulf %81, %83 : vector<16x512xf32>
    %c0_55 = arith.constant 0 : index
    %c0_56 = arith.constant 0 : index
    %c0_57 = arith.constant 0 : index
    %85 = vector.load %arg5[%c0_55, %c0_56, %c0_57] : memref<9x8x16xf32, #tpu.memory_space<vmem>>, vector<1x8x16xf32>
    %86 = vector.shape_cast %85 : vector<1x8x16xf32> to vector<8x16xf32>
    %cst_58 = arith.constant dense<0.000000e+00> : vector<8x512xf32>
    %87 = tpu.matmul %86, %84, %cst_58 {dimension_numbers = #tpu.dot_dimension_numbers<[1], [0], [0], [1], [0, 0, 1, 1], [], []>} : vector<8x16xf32>, vector<16x512xf32>, vector<8x512xf32> -> vector<8x512xf32>
    %88 = arith.addf %80, %87 : vector<8x512xf32>
    %c16_i32_59 = arith.constant 16 : i32
    %89 = tpu.dynamic_rotate %77 by %c16_i32_59 dim 1 : vector<16x512xf32>, i32 -> vector<16x512xf32>
    %c1_60 = arith.constant 1 : index
    %c0_61 = arith.constant 0 : index
    %90 = vector.load %arg2[%c1_60, %c0_61] : memref<9x512xf32, #tpu.memory_space<vmem>>, vector<1x512xf32>
    %91 = vector.broadcast %90 : vector<1x512xf32> to vector<16x512xf32>
    %92 = arith.mulf %89, %91 : vector<16x512xf32>
    %c1_62 = arith.constant 1 : index
    %c0_63 = arith.constant 0 : index
    %c0_64 = arith.constant 0 : index
    %93 = vector.load %arg5[%c1_62, %c0_63, %c0_64] : memref<9x8x16xf32, #tpu.memory_space<vmem>>, vector<1x8x16xf32>
    %94 = vector.shape_cast %93 : vector<1x8x16xf32> to vector<8x16xf32>
    %cst_65 = arith.constant dense<0.000000e+00> : vector<8x512xf32>
    %95 = tpu.matmul %94, %92, %cst_65 {dimension_numbers = #tpu.dot_dimension_numbers<[1], [0], [0], [1], [0, 0, 1, 1], [], []>} : vector<8x16xf32>, vector<16x512xf32>, vector<8x512xf32> -> vector<8x512xf32>
    %96 = arith.addf %88, %95 : vector<8x512xf32>
    %c15_i32_66 = arith.constant 15 : i32
    %97 = tpu.dynamic_rotate %77 by %c15_i32_66 dim 1 : vector<16x512xf32>, i32 -> vector<16x512xf32>
    %c2_67 = arith.constant 2 : index
    %c0_68 = arith.constant 0 : index
    %98 = vector.load %arg2[%c2_67, %c0_68] : memref<9x512xf32, #tpu.memory_space<vmem>>, vector<1x512xf32>
    %99 = vector.broadcast %98 : vector<1x512xf32> to vector<16x512xf32>
    %100 = arith.mulf %97, %99 : vector<16x512xf32>
    %c2_69 = arith.constant 2 : index
    %c0_70 = arith.constant 0 : index
    %c0_71 = arith.constant 0 : index
    %101 = vector.load %arg5[%c2_69, %c0_70, %c0_71] : memref<9x8x16xf32, #tpu.memory_space<vmem>>, vector<1x8x16xf32>
    %102 = vector.shape_cast %101 : vector<1x8x16xf32> to vector<8x16xf32>
    %cst_72 = arith.constant dense<0.000000e+00> : vector<8x512xf32>
    %103 = tpu.matmul %102, %100, %cst_72 {dimension_numbers = #tpu.dot_dimension_numbers<[1], [0], [0], [1], [0, 0, 1, 1], [], []>} : vector<8x16xf32>, vector<16x512xf32>, vector<8x512xf32> -> vector<8x512xf32>
    %104 = arith.addf %96, %103 : vector<8x512xf32>
    %c1_i32_73 = arith.constant 1 : i32
    %105 = tpu.dynamic_rotate %77 by %c1_i32_73 dim 1 : vector<16x512xf32>, i32 -> vector<16x512xf32>
    %c3_74 = arith.constant 3 : index
    %c0_75 = arith.constant 0 : index
    %106 = vector.load %arg2[%c3_74, %c0_75] : memref<9x512xf32, #tpu.memory_space<vmem>>, vector<1x512xf32>
    %107 = vector.broadcast %106 : vector<1x512xf32> to vector<16x512xf32>
    %108 = arith.mulf %105, %107 : vector<16x512xf32>
    %c3_76 = arith.constant 3 : index
    %c0_77 = arith.constant 0 : index
    %c0_78 = arith.constant 0 : index
    %109 = vector.load %arg5[%c3_76, %c0_77, %c0_78] : memref<9x8x16xf32, #tpu.memory_space<vmem>>, vector<1x8x16xf32>
    %110 = vector.shape_cast %109 : vector<1x8x16xf32> to vector<8x16xf32>
    %cst_79 = arith.constant dense<0.000000e+00> : vector<8x512xf32>
    %111 = tpu.matmul %110, %108, %cst_79 {dimension_numbers = #tpu.dot_dimension_numbers<[1], [0], [0], [1], [0, 0, 1, 1], [], []>} : vector<8x16xf32>, vector<16x512xf32>, vector<8x512xf32> -> vector<8x512xf32>
    %112 = arith.addf %104, %111 : vector<8x512xf32>
    %c4_80 = arith.constant 4 : index
    %c0_81 = arith.constant 0 : index
    %113 = vector.load %arg2[%c4_80, %c0_81] : memref<9x512xf32, #tpu.memory_space<vmem>>, vector<1x512xf32>
    %114 = vector.broadcast %113 : vector<1x512xf32> to vector<16x512xf32>
    %115 = arith.mulf %77, %114 : vector<16x512xf32>
    %c4_82 = arith.constant 4 : index
    %c0_83 = arith.constant 0 : index
    %c0_84 = arith.constant 0 : index
    %116 = vector.load %arg5[%c4_82, %c0_83, %c0_84] : memref<9x8x16xf32, #tpu.memory_space<vmem>>, vector<1x8x16xf32>
    %117 = vector.shape_cast %116 : vector<1x8x16xf32> to vector<8x16xf32>
    %cst_85 = arith.constant dense<0.000000e+00> : vector<8x512xf32>
    %118 = tpu.matmul %117, %115, %cst_85 {dimension_numbers = #tpu.dot_dimension_numbers<[1], [0], [0], [1], [0, 0, 1, 1], [], []>} : vector<8x16xf32>, vector<16x512xf32>, vector<8x512xf32> -> vector<8x512xf32>
    %119 = arith.addf %112, %118 : vector<8x512xf32>
    %c511_i32_86 = arith.constant 511 : i32
    %120 = tpu.dynamic_rotate %77 by %c511_i32_86 dim 1 : vector<16x512xf32>, i32 -> vector<16x512xf32>
    %c5_87 = arith.constant 5 : index
    %c0_88 = arith.constant 0 : index
    %121 = vector.load %arg2[%c5_87, %c0_88] : memref<9x512xf32, #tpu.memory_space<vmem>>, vector<1x512xf32>
    %122 = vector.broadcast %121 : vector<1x512xf32> to vector<16x512xf32>
    %123 = arith.mulf %120, %122 : vector<16x512xf32>
    %c5_89 = arith.constant 5 : index
    %c0_90 = arith.constant 0 : index
    %c0_91 = arith.constant 0 : index
    %124 = vector.load %arg5[%c5_89, %c0_90, %c0_91] : memref<9x8x16xf32, #tpu.memory_space<vmem>>, vector<1x8x16xf32>
    %125 = vector.shape_cast %124 : vector<1x8x16xf32> to vector<8x16xf32>
    %cst_92 = arith.constant dense<0.000000e+00> : vector<8x512xf32>
    %126 = tpu.matmul %125, %123, %cst_92 {dimension_numbers = #tpu.dot_dimension_numbers<[1], [0], [0], [1], [0, 0, 1, 1], [], []>} : vector<8x16xf32>, vector<16x512xf32>, vector<8x512xf32> -> vector<8x512xf32>
    %127 = arith.addf %119, %126 : vector<8x512xf32>
    %c497_i32_93 = arith.constant 497 : i32
    %128 = tpu.dynamic_rotate %77 by %c497_i32_93 dim 1 : vector<16x512xf32>, i32 -> vector<16x512xf32>
    %c6_94 = arith.constant 6 : index
    %c0_95 = arith.constant 0 : index
    %129 = vector.load %arg2[%c6_94, %c0_95] : memref<9x512xf32, #tpu.memory_space<vmem>>, vector<1x512xf32>
    %130 = vector.broadcast %129 : vector<1x512xf32> to vector<16x512xf32>
    %131 = arith.mulf %128, %130 : vector<16x512xf32>
    %c6_96 = arith.constant 6 : index
    %c0_97 = arith.constant 0 : index
    %c0_98 = arith.constant 0 : index
    %132 = vector.load %arg5[%c6_96, %c0_97, %c0_98] : memref<9x8x16xf32, #tpu.memory_space<vmem>>, vector<1x8x16xf32>
    %133 = vector.shape_cast %132 : vector<1x8x16xf32> to vector<8x16xf32>
    %cst_99 = arith.constant dense<0.000000e+00> : vector<8x512xf32>
    %134 = tpu.matmul %133, %131, %cst_99 {dimension_numbers = #tpu.dot_dimension_numbers<[1], [0], [0], [1], [0, 0, 1, 1], [], []>} : vector<8x16xf32>, vector<16x512xf32>, vector<8x512xf32> -> vector<8x512xf32>
    %135 = arith.addf %127, %134 : vector<8x512xf32>
    %c496_i32_100 = arith.constant 496 : i32
    %136 = tpu.dynamic_rotate %77 by %c496_i32_100 dim 1 : vector<16x512xf32>, i32 -> vector<16x512xf32>
    %c7_101 = arith.constant 7 : index
    %c0_102 = arith.constant 0 : index
    %137 = vector.load %arg2[%c7_101, %c0_102] : memref<9x512xf32, #tpu.memory_space<vmem>>, vector<1x512xf32>
    %138 = vector.broadcast %137 : vector<1x512xf32> to vector<16x512xf32>
    %139 = arith.mulf %136, %138 : vector<16x512xf32>
    %c7_103 = arith.constant 7 : index
    %c0_104 = arith.constant 0 : index
    %c0_105 = arith.constant 0 : index
    %140 = vector.load %arg5[%c7_103, %c0_104, %c0_105] : memref<9x8x16xf32, #tpu.memory_space<vmem>>, vector<1x8x16xf32>
    %141 = vector.shape_cast %140 : vector<1x8x16xf32> to vector<8x16xf32>
    %cst_106 = arith.constant dense<0.000000e+00> : vector<8x512xf32>
    %142 = tpu.matmul %141, %139, %cst_106 {dimension_numbers = #tpu.dot_dimension_numbers<[1], [0], [0], [1], [0, 0, 1, 1], [], []>} : vector<8x16xf32>, vector<16x512xf32>, vector<8x512xf32> -> vector<8x512xf32>
    %143 = arith.addf %135, %142 : vector<8x512xf32>
    %c495_i32_107 = arith.constant 495 : i32
    %144 = tpu.dynamic_rotate %77 by %c495_i32_107 dim 1 : vector<16x512xf32>, i32 -> vector<16x512xf32>
    %c8_108 = arith.constant 8 : index
    %c0_109 = arith.constant 0 : index
    %145 = vector.load %arg2[%c8_108, %c0_109] : memref<9x512xf32, #tpu.memory_space<vmem>>, vector<1x512xf32>
    %146 = vector.broadcast %145 : vector<1x512xf32> to vector<16x512xf32>
    %147 = arith.mulf %144, %146 : vector<16x512xf32>
    %c8_110 = arith.constant 8 : index
    %c0_111 = arith.constant 0 : index
    %c0_112 = arith.constant 0 : index
    %148 = vector.load %arg5[%c8_110, %c0_111, %c0_112] : memref<9x8x16xf32, #tpu.memory_space<vmem>>, vector<1x8x16xf32>
    %149 = vector.shape_cast %148 : vector<1x8x16xf32> to vector<8x16xf32>
    %cst_113 = arith.constant dense<0.000000e+00> : vector<8x512xf32>
    %150 = tpu.matmul %149, %147, %cst_113 {dimension_numbers = #tpu.dot_dimension_numbers<[1], [0], [0], [1], [0, 0, 1, 1], [], []>} : vector<8x16xf32>, vector<16x512xf32>, vector<8x512xf32> -> vector<8x512xf32>
    %151 = arith.addf %143, %150 : vector<8x512xf32>
    %cst_114 = arith.constant 0.000000e+00 : f32
    %152 = vector.broadcast %cst_114 : f32 to vector<8x512xf32>
    %153 = arith.maximumf %151, %152 : vector<8x512xf32>
    %c0_115 = arith.constant 0 : index
    %c0_116 = arith.constant 0 : index
    %154 = vector.load %arg11[%c0_115, %c0_116] : memref<4x1xf32, #tpu.memory_space<vmem>>, vector<4x1xf32>
    %155 = vector.shape_cast %154 : vector<4x1xf32> to vector<4x1xf32>
    %156 = vector.broadcast %155 : vector<4x1xf32> to vector<4x512xf32>
    %c17_i32_117 = arith.constant 17 : i32
    %157 = tpu.dynamic_rotate %153 by %c17_i32_117 dim 1 : vector<8x512xf32>, i32 -> vector<8x512xf32>
    %c0_118 = arith.constant 0 : index
    %c0_119 = arith.constant 0 : index
    %158 = vector.load %arg2[%c0_118, %c0_119] : memref<9x512xf32, #tpu.memory_space<vmem>>, vector<1x512xf32>
    %159 = vector.broadcast %158 : vector<1x512xf32> to vector<8x512xf32>
    %160 = arith.mulf %157, %159 : vector<8x512xf32>
    %c0_120 = arith.constant 0 : index
    %c0_121 = arith.constant 0 : index
    %c0_122 = arith.constant 0 : index
    %161 = vector.load %arg6[%c0_120, %c0_121, %c0_122] : memref<9x4x8xf32, #tpu.memory_space<vmem>>, vector<1x4x8xf32>
    %162 = vector.shape_cast %161 : vector<1x4x8xf32> to vector<4x8xf32>
    %cst_123 = arith.constant dense<0.000000e+00> : vector<4x512xf32>
    %163 = tpu.matmul %162, %160, %cst_123 {dimension_numbers = #tpu.dot_dimension_numbers<[1], [0], [0], [1], [0, 0, 1, 1], [], []>} : vector<4x8xf32>, vector<8x512xf32>, vector<4x512xf32> -> vector<4x512xf32>
    %164 = arith.addf %156, %163 : vector<4x512xf32>
    %c16_i32_124 = arith.constant 16 : i32
    %165 = tpu.dynamic_rotate %153 by %c16_i32_124 dim 1 : vector<8x512xf32>, i32 -> vector<8x512xf32>
    %c1_125 = arith.constant 1 : index
    %c0_126 = arith.constant 0 : index
    %166 = vector.load %arg2[%c1_125, %c0_126] : memref<9x512xf32, #tpu.memory_space<vmem>>, vector<1x512xf32>
    %167 = vector.broadcast %166 : vector<1x512xf32> to vector<8x512xf32>
    %168 = arith.mulf %165, %167 : vector<8x512xf32>
    %c1_127 = arith.constant 1 : index
    %c0_128 = arith.constant 0 : index
    %c0_129 = arith.constant 0 : index
    %169 = vector.load %arg6[%c1_127, %c0_128, %c0_129] : memref<9x4x8xf32, #tpu.memory_space<vmem>>, vector<1x4x8xf32>
    %170 = vector.shape_cast %169 : vector<1x4x8xf32> to vector<4x8xf32>
    %cst_130 = arith.constant dense<0.000000e+00> : vector<4x512xf32>
    %171 = tpu.matmul %170, %168, %cst_130 {dimension_numbers = #tpu.dot_dimension_numbers<[1], [0], [0], [1], [0, 0, 1, 1], [], []>} : vector<4x8xf32>, vector<8x512xf32>, vector<4x512xf32> -> vector<4x512xf32>
    %172 = arith.addf %164, %171 : vector<4x512xf32>
    %c15_i32_131 = arith.constant 15 : i32
    %173 = tpu.dynamic_rotate %153 by %c15_i32_131 dim 1 : vector<8x512xf32>, i32 -> vector<8x512xf32>
    %c2_132 = arith.constant 2 : index
    %c0_133 = arith.constant 0 : index
    %174 = vector.load %arg2[%c2_132, %c0_133] : memref<9x512xf32, #tpu.memory_space<vmem>>, vector<1x512xf32>
    %175 = vector.broadcast %174 : vector<1x512xf32> to vector<8x512xf32>
    %176 = arith.mulf %173, %175 : vector<8x512xf32>
    %c2_134 = arith.constant 2 : index
    %c0_135 = arith.constant 0 : index
    %c0_136 = arith.constant 0 : index
    %177 = vector.load %arg6[%c2_134, %c0_135, %c0_136] : memref<9x4x8xf32, #tpu.memory_space<vmem>>, vector<1x4x8xf32>
    %178 = vector.shape_cast %177 : vector<1x4x8xf32> to vector<4x8xf32>
    %cst_137 = arith.constant dense<0.000000e+00> : vector<4x512xf32>
    %179 = tpu.matmul %178, %176, %cst_137 {dimension_numbers = #tpu.dot_dimension_numbers<[1], [0], [0], [1], [0, 0, 1, 1], [], []>} : vector<4x8xf32>, vector<8x512xf32>, vector<4x512xf32> -> vector<4x512xf32>
    %180 = arith.addf %172, %179 : vector<4x512xf32>
    %c1_i32_138 = arith.constant 1 : i32
    %181 = tpu.dynamic_rotate %153 by %c1_i32_138 dim 1 : vector<8x512xf32>, i32 -> vector<8x512xf32>
    %c3_139 = arith.constant 3 : index
    %c0_140 = arith.constant 0 : index
    %182 = vector.load %arg2[%c3_139, %c0_140] : memref<9x512xf32, #tpu.memory_space<vmem>>, vector<1x512xf32>
    %183 = vector.broadcast %182 : vector<1x512xf32> to vector<8x512xf32>
    %184 = arith.mulf %181, %183 : vector<8x512xf32>
    %c3_141 = arith.constant 3 : index
    %c0_142 = arith.constant 0 : index
    %c0_143 = arith.constant 0 : index
    %185 = vector.load %arg6[%c3_141, %c0_142, %c0_143] : memref<9x4x8xf32, #tpu.memory_space<vmem>>, vector<1x4x8xf32>
    %186 = vector.shape_cast %185 : vector<1x4x8xf32> to vector<4x8xf32>
    %cst_144 = arith.constant dense<0.000000e+00> : vector<4x512xf32>
    %187 = tpu.matmul %186, %184, %cst_144 {dimension_numbers = #tpu.dot_dimension_numbers<[1], [0], [0], [1], [0, 0, 1, 1], [], []>} : vector<4x8xf32>, vector<8x512xf32>, vector<4x512xf32> -> vector<4x512xf32>
    %188 = arith.addf %180, %187 : vector<4x512xf32>
    %c4_145 = arith.constant 4 : index
    %c0_146 = arith.constant 0 : index
    %189 = vector.load %arg2[%c4_145, %c0_146] : memref<9x512xf32, #tpu.memory_space<vmem>>, vector<1x512xf32>
    %190 = vector.broadcast %189 : vector<1x512xf32> to vector<8x512xf32>
    %191 = arith.mulf %153, %190 : vector<8x512xf32>
    %c4_147 = arith.constant 4 : index
    %c0_148 = arith.constant 0 : index
    %c0_149 = arith.constant 0 : index
    %192 = vector.load %arg6[%c4_147, %c0_148, %c0_149] : memref<9x4x8xf32, #tpu.memory_space<vmem>>, vector<1x4x8xf32>
    %193 = vector.shape_cast %192 : vector<1x4x8xf32> to vector<4x8xf32>
    %cst_150 = arith.constant dense<0.000000e+00> : vector<4x512xf32>
    %194 = tpu.matmul %193, %191, %cst_150 {dimension_numbers = #tpu.dot_dimension_numbers<[1], [0], [0], [1], [0, 0, 1, 1], [], []>} : vector<4x8xf32>, vector<8x512xf32>, vector<4x512xf32> -> vector<4x512xf32>
    %195 = arith.addf %188, %194 : vector<4x512xf32>
    %c511_i32_151 = arith.constant 511 : i32
    %196 = tpu.dynamic_rotate %153 by %c511_i32_151 dim 1 : vector<8x512xf32>, i32 -> vector<8x512xf32>
    %c5_152 = arith.constant 5 : index
    %c0_153 = arith.constant 0 : index
    %197 = vector.load %arg2[%c5_152, %c0_153] : memref<9x512xf32, #tpu.memory_space<vmem>>, vector<1x512xf32>
    %198 = vector.broadcast %197 : vector<1x512xf32> to vector<8x512xf32>
    %199 = arith.mulf %196, %198 : vector<8x512xf32>
    %c5_154 = arith.constant 5 : index
    %c0_155 = arith.constant 0 : index
    %c0_156 = arith.constant 0 : index
    %200 = vector.load %arg6[%c5_154, %c0_155, %c0_156] : memref<9x4x8xf32, #tpu.memory_space<vmem>>, vector<1x4x8xf32>
    %201 = vector.shape_cast %200 : vector<1x4x8xf32> to vector<4x8xf32>
    %cst_157 = arith.constant dense<0.000000e+00> : vector<4x512xf32>
    %202 = tpu.matmul %201, %199, %cst_157 {dimension_numbers = #tpu.dot_dimension_numbers<[1], [0], [0], [1], [0, 0, 1, 1], [], []>} : vector<4x8xf32>, vector<8x512xf32>, vector<4x512xf32> -> vector<4x512xf32>
    %203 = arith.addf %195, %202 : vector<4x512xf32>
    %c497_i32_158 = arith.constant 497 : i32
    %204 = tpu.dynamic_rotate %153 by %c497_i32_158 dim 1 : vector<8x512xf32>, i32 -> vector<8x512xf32>
    %c6_159 = arith.constant 6 : index
    %c0_160 = arith.constant 0 : index
    %205 = vector.load %arg2[%c6_159, %c0_160] : memref<9x512xf32, #tpu.memory_space<vmem>>, vector<1x512xf32>
    %206 = vector.broadcast %205 : vector<1x512xf32> to vector<8x512xf32>
    %207 = arith.mulf %204, %206 : vector<8x512xf32>
    %c6_161 = arith.constant 6 : index
    %c0_162 = arith.constant 0 : index
    %c0_163 = arith.constant 0 : index
    %208 = vector.load %arg6[%c6_161, %c0_162, %c0_163] : memref<9x4x8xf32, #tpu.memory_space<vmem>>, vector<1x4x8xf32>
    %209 = vector.shape_cast %208 : vector<1x4x8xf32> to vector<4x8xf32>
    %cst_164 = arith.constant dense<0.000000e+00> : vector<4x512xf32>
    %210 = tpu.matmul %209, %207, %cst_164 {dimension_numbers = #tpu.dot_dimension_numbers<[1], [0], [0], [1], [0, 0, 1, 1], [], []>} : vector<4x8xf32>, vector<8x512xf32>, vector<4x512xf32> -> vector<4x512xf32>
    %211 = arith.addf %203, %210 : vector<4x512xf32>
    %c496_i32_165 = arith.constant 496 : i32
    %212 = tpu.dynamic_rotate %153 by %c496_i32_165 dim 1 : vector<8x512xf32>, i32 -> vector<8x512xf32>
    %c7_166 = arith.constant 7 : index
    %c0_167 = arith.constant 0 : index
    %213 = vector.load %arg2[%c7_166, %c0_167] : memref<9x512xf32, #tpu.memory_space<vmem>>, vector<1x512xf32>
    %214 = vector.broadcast %213 : vector<1x512xf32> to vector<8x512xf32>
    %215 = arith.mulf %212, %214 : vector<8x512xf32>
    %c7_168 = arith.constant 7 : index
    %c0_169 = arith.constant 0 : index
    %c0_170 = arith.constant 0 : index
    %216 = vector.load %arg6[%c7_168, %c0_169, %c0_170] : memref<9x4x8xf32, #tpu.memory_space<vmem>>, vector<1x4x8xf32>
    %217 = vector.shape_cast %216 : vector<1x4x8xf32> to vector<4x8xf32>
    %cst_171 = arith.constant dense<0.000000e+00> : vector<4x512xf32>
    %218 = tpu.matmul %217, %215, %cst_171 {dimension_numbers = #tpu.dot_dimension_numbers<[1], [0], [0], [1], [0, 0, 1, 1], [], []>} : vector<4x8xf32>, vector<8x512xf32>, vector<4x512xf32> -> vector<4x512xf32>
    %219 = arith.addf %211, %218 : vector<4x512xf32>
    %c495_i32_172 = arith.constant 495 : i32
    %220 = tpu.dynamic_rotate %153 by %c495_i32_172 dim 1 : vector<8x512xf32>, i32 -> vector<8x512xf32>
    %c8_173 = arith.constant 8 : index
    %c0_174 = arith.constant 0 : index
    %221 = vector.load %arg2[%c8_173, %c0_174] : memref<9x512xf32, #tpu.memory_space<vmem>>, vector<1x512xf32>
    %222 = vector.broadcast %221 : vector<1x512xf32> to vector<8x512xf32>
    %223 = arith.mulf %220, %222 : vector<8x512xf32>
    %c8_175 = arith.constant 8 : index
    %c0_176 = arith.constant 0 : index
    %c0_177 = arith.constant 0 : index
    %224 = vector.load %arg6[%c8_175, %c0_176, %c0_177] : memref<9x4x8xf32, #tpu.memory_space<vmem>>, vector<1x4x8xf32>
    %225 = vector.shape_cast %224 : vector<1x4x8xf32> to vector<4x8xf32>
    %cst_178 = arith.constant dense<0.000000e+00> : vector<4x512xf32>
    %226 = tpu.matmul %225, %223, %cst_178 {dimension_numbers = #tpu.dot_dimension_numbers<[1], [0], [0], [1], [0, 0, 1, 1], [], []>} : vector<4x8xf32>, vector<8x512xf32>, vector<4x512xf32> -> vector<4x512xf32>
    %227 = arith.addf %219, %226 : vector<4x512xf32>
    %cst_179 = arith.constant 0.000000e+00 : f32
    %228 = vector.broadcast %cst_179 : f32 to vector<4x512xf32>
    %229 = arith.maximumf %227, %228 : vector<4x512xf32>
    %c0_180 = arith.constant 0 : index
    %c0_181 = arith.constant 0 : index
    %230 = vector.load %arg12[%c0_180, %c0_181] : memref<2x1xf32, #tpu.memory_space<vmem>>, vector<2x1xf32>
    %231 = vector.shape_cast %230 : vector<2x1xf32> to vector<2x1xf32>
    %232 = vector.broadcast %231 : vector<2x1xf32> to vector<2x512xf32>
    %c17_i32_182 = arith.constant 17 : i32
    %233 = tpu.dynamic_rotate %229 by %c17_i32_182 dim 1 : vector<4x512xf32>, i32 -> vector<4x512xf32>
    %c0_183 = arith.constant 0 : index
    %c0_184 = arith.constant 0 : index
    %234 = vector.load %arg2[%c0_183, %c0_184] : memref<9x512xf32, #tpu.memory_space<vmem>>, vector<1x512xf32>
    %235 = vector.broadcast %234 : vector<1x512xf32> to vector<4x512xf32>
    %236 = arith.mulf %233, %235 : vector<4x512xf32>
    %c0_185 = arith.constant 0 : index
    %c0_186 = arith.constant 0 : index
    %c0_187 = arith.constant 0 : index
    %237 = vector.load %arg7[%c0_185, %c0_186, %c0_187] : memref<9x2x4xf32, #tpu.memory_space<vmem>>, vector<1x2x4xf32>
    %238 = vector.shape_cast %237 : vector<1x2x4xf32> to vector<2x4xf32>
    %cst_188 = arith.constant dense<0.000000e+00> : vector<2x512xf32>
    %239 = tpu.matmul %238, %236, %cst_188 {dimension_numbers = #tpu.dot_dimension_numbers<[1], [0], [0], [1], [0, 0, 1, 1], [], []>} : vector<2x4xf32>, vector<4x512xf32>, vector<2x512xf32> -> vector<2x512xf32>
    %240 = arith.addf %232, %239 : vector<2x512xf32>
    %c16_i32_189 = arith.constant 16 : i32
    %241 = tpu.dynamic_rotate %229 by %c16_i32_189 dim 1 : vector<4x512xf32>, i32 -> vector<4x512xf32>
    %c1_190 = arith.constant 1 : index
    %c0_191 = arith.constant 0 : index
    %242 = vector.load %arg2[%c1_190, %c0_191] : memref<9x512xf32, #tpu.memory_space<vmem>>, vector<1x512xf32>
    %243 = vector.broadcast %242 : vector<1x512xf32> to vector<4x512xf32>
    %244 = arith.mulf %241, %243 : vector<4x512xf32>
    %c1_192 = arith.constant 1 : index
    %c0_193 = arith.constant 0 : index
    %c0_194 = arith.constant 0 : index
    %245 = vector.load %arg7[%c1_192, %c0_193, %c0_194] : memref<9x2x4xf32, #tpu.memory_space<vmem>>, vector<1x2x4xf32>
    %246 = vector.shape_cast %245 : vector<1x2x4xf32> to vector<2x4xf32>
    %cst_195 = arith.constant dense<0.000000e+00> : vector<2x512xf32>
    %247 = tpu.matmul %246, %244, %cst_195 {dimension_numbers = #tpu.dot_dimension_numbers<[1], [0], [0], [1], [0, 0, 1, 1], [], []>} : vector<2x4xf32>, vector<4x512xf32>, vector<2x512xf32> -> vector<2x512xf32>
    %248 = arith.addf %240, %247 : vector<2x512xf32>
    %c15_i32_196 = arith.constant 15 : i32
    %249 = tpu.dynamic_rotate %229 by %c15_i32_196 dim 1 : vector<4x512xf32>, i32 -> vector<4x512xf32>
    %c2_197 = arith.constant 2 : index
    %c0_198 = arith.constant 0 : index
    %250 = vector.load %arg2[%c2_197, %c0_198] : memref<9x512xf32, #tpu.memory_space<vmem>>, vector<1x512xf32>
    %251 = vector.broadcast %250 : vector<1x512xf32> to vector<4x512xf32>
    %252 = arith.mulf %249, %251 : vector<4x512xf32>
    %c2_199 = arith.constant 2 : index
    %c0_200 = arith.constant 0 : index
    %c0_201 = arith.constant 0 : index
    %253 = vector.load %arg7[%c2_199, %c0_200, %c0_201] : memref<9x2x4xf32, #tpu.memory_space<vmem>>, vector<1x2x4xf32>
    %254 = vector.shape_cast %253 : vector<1x2x4xf32> to vector<2x4xf32>
    %cst_202 = arith.constant dense<0.000000e+00> : vector<2x512xf32>
    %255 = tpu.matmul %254, %252, %cst_202 {dimension_numbers = #tpu.dot_dimension_numbers<[1], [0], [0], [1], [0, 0, 1, 1], [], []>} : vector<2x4xf32>, vector<4x512xf32>, vector<2x512xf32> -> vector<2x512xf32>
    %256 = arith.addf %248, %255 : vector<2x512xf32>
    %c1_i32_203 = arith.constant 1 : i32
    %257 = tpu.dynamic_rotate %229 by %c1_i32_203 dim 1 : vector<4x512xf32>, i32 -> vector<4x512xf32>
    %c3_204 = arith.constant 3 : index
    %c0_205 = arith.constant 0 : index
    %258 = vector.load %arg2[%c3_204, %c0_205] : memref<9x512xf32, #tpu.memory_space<vmem>>, vector<1x512xf32>
    %259 = vector.broadcast %258 : vector<1x512xf32> to vector<4x512xf32>
    %260 = arith.mulf %257, %259 : vector<4x512xf32>
    %c3_206 = arith.constant 3 : index
    %c0_207 = arith.constant 0 : index
    %c0_208 = arith.constant 0 : index
    %261 = vector.load %arg7[%c3_206, %c0_207, %c0_208] : memref<9x2x4xf32, #tpu.memory_space<vmem>>, vector<1x2x4xf32>
    %262 = vector.shape_cast %261 : vector<1x2x4xf32> to vector<2x4xf32>
    %cst_209 = arith.constant dense<0.000000e+00> : vector<2x512xf32>
    %263 = tpu.matmul %262, %260, %cst_209 {dimension_numbers = #tpu.dot_dimension_numbers<[1], [0], [0], [1], [0, 0, 1, 1], [], []>} : vector<2x4xf32>, vector<4x512xf32>, vector<2x512xf32> -> vector<2x512xf32>
    %264 = arith.addf %256, %263 : vector<2x512xf32>
    %c4_210 = arith.constant 4 : index
    %c0_211 = arith.constant 0 : index
    %265 = vector.load %arg2[%c4_210, %c0_211] : memref<9x512xf32, #tpu.memory_space<vmem>>, vector<1x512xf32>
    %266 = vector.broadcast %265 : vector<1x512xf32> to vector<4x512xf32>
    %267 = arith.mulf %229, %266 : vector<4x512xf32>
    %c4_212 = arith.constant 4 : index
    %c0_213 = arith.constant 0 : index
    %c0_214 = arith.constant 0 : index
    %268 = vector.load %arg7[%c4_212, %c0_213, %c0_214] : memref<9x2x4xf32, #tpu.memory_space<vmem>>, vector<1x2x4xf32>
    %269 = vector.shape_cast %268 : vector<1x2x4xf32> to vector<2x4xf32>
    %cst_215 = arith.constant dense<0.000000e+00> : vector<2x512xf32>
    %270 = tpu.matmul %269, %267, %cst_215 {dimension_numbers = #tpu.dot_dimension_numbers<[1], [0], [0], [1], [0, 0, 1, 1], [], []>} : vector<2x4xf32>, vector<4x512xf32>, vector<2x512xf32> -> vector<2x512xf32>
    %271 = arith.addf %264, %270 : vector<2x512xf32>
    %c511_i32_216 = arith.constant 511 : i32
    %272 = tpu.dynamic_rotate %229 by %c511_i32_216 dim 1 : vector<4x512xf32>, i32 -> vector<4x512xf32>
    %c5_217 = arith.constant 5 : index
    %c0_218 = arith.constant 0 : index
    %273 = vector.load %arg2[%c5_217, %c0_218] : memref<9x512xf32, #tpu.memory_space<vmem>>, vector<1x512xf32>
    %274 = vector.broadcast %273 : vector<1x512xf32> to vector<4x512xf32>
    %275 = arith.mulf %272, %274 : vector<4x512xf32>
    %c5_219 = arith.constant 5 : index
    %c0_220 = arith.constant 0 : index
    %c0_221 = arith.constant 0 : index
    %276 = vector.load %arg7[%c5_219, %c0_220, %c0_221] : memref<9x2x4xf32, #tpu.memory_space<vmem>>, vector<1x2x4xf32>
    %277 = vector.shape_cast %276 : vector<1x2x4xf32> to vector<2x4xf32>
    %cst_222 = arith.constant dense<0.000000e+00> : vector<2x512xf32>
    %278 = tpu.matmul %277, %275, %cst_222 {dimension_numbers = #tpu.dot_dimension_numbers<[1], [0], [0], [1], [0, 0, 1, 1], [], []>} : vector<2x4xf32>, vector<4x512xf32>, vector<2x512xf32> -> vector<2x512xf32>
    %279 = arith.addf %271, %278 : vector<2x512xf32>
    %c497_i32_223 = arith.constant 497 : i32
    %280 = tpu.dynamic_rotate %229 by %c497_i32_223 dim 1 : vector<4x512xf32>, i32 -> vector<4x512xf32>
    %c6_224 = arith.constant 6 : index
    %c0_225 = arith.constant 0 : index
    %281 = vector.load %arg2[%c6_224, %c0_225] : memref<9x512xf32, #tpu.memory_space<vmem>>, vector<1x512xf32>
    %282 = vector.broadcast %281 : vector<1x512xf32> to vector<4x512xf32>
    %283 = arith.mulf %280, %282 : vector<4x512xf32>
    %c6_226 = arith.constant 6 : index
    %c0_227 = arith.constant 0 : index
    %c0_228 = arith.constant 0 : index
    %284 = vector.load %arg7[%c6_226, %c0_227, %c0_228] : memref<9x2x4xf32, #tpu.memory_space<vmem>>, vector<1x2x4xf32>
    %285 = vector.shape_cast %284 : vector<1x2x4xf32> to vector<2x4xf32>
    %cst_229 = arith.constant dense<0.000000e+00> : vector<2x512xf32>
    %286 = tpu.matmul %285, %283, %cst_229 {dimension_numbers = #tpu.dot_dimension_numbers<[1], [0], [0], [1], [0, 0, 1, 1], [], []>} : vector<2x4xf32>, vector<4x512xf32>, vector<2x512xf32> -> vector<2x512xf32>
    %287 = arith.addf %279, %286 : vector<2x512xf32>
    %c496_i32_230 = arith.constant 496 : i32
    %288 = tpu.dynamic_rotate %229 by %c496_i32_230 dim 1 : vector<4x512xf32>, i32 -> vector<4x512xf32>
    %c7_231 = arith.constant 7 : index
    %c0_232 = arith.constant 0 : index
    %289 = vector.load %arg2[%c7_231, %c0_232] : memref<9x512xf32, #tpu.memory_space<vmem>>, vector<1x512xf32>
    %290 = vector.broadcast %289 : vector<1x512xf32> to vector<4x512xf32>
    %291 = arith.mulf %288, %290 : vector<4x512xf32>
    %c7_233 = arith.constant 7 : index
    %c0_234 = arith.constant 0 : index
    %c0_235 = arith.constant 0 : index
    %292 = vector.load %arg7[%c7_233, %c0_234, %c0_235] : memref<9x2x4xf32, #tpu.memory_space<vmem>>, vector<1x2x4xf32>
    %293 = vector.shape_cast %292 : vector<1x2x4xf32> to vector<2x4xf32>
    %cst_236 = arith.constant dense<0.000000e+00> : vector<2x512xf32>
    %294 = tpu.matmul %293, %291, %cst_236 {dimension_numbers = #tpu.dot_dimension_numbers<[1], [0], [0], [1], [0, 0, 1, 1], [], []>} : vector<2x4xf32>, vector<4x512xf32>, vector<2x512xf32> -> vector<2x512xf32>
    %295 = arith.addf %287, %294 : vector<2x512xf32>
    %c495_i32_237 = arith.constant 495 : i32
    %296 = tpu.dynamic_rotate %229 by %c495_i32_237 dim 1 : vector<4x512xf32>, i32 -> vector<4x512xf32>
    %c8_238 = arith.constant 8 : index
    %c0_239 = arith.constant 0 : index
    %297 = vector.load %arg2[%c8_238, %c0_239] : memref<9x512xf32, #tpu.memory_space<vmem>>, vector<1x512xf32>
    %298 = vector.broadcast %297 : vector<1x512xf32> to vector<4x512xf32>
    %299 = arith.mulf %296, %298 : vector<4x512xf32>
    %c8_240 = arith.constant 8 : index
    %c0_241 = arith.constant 0 : index
    %c0_242 = arith.constant 0 : index
    %300 = vector.load %arg7[%c8_240, %c0_241, %c0_242] : memref<9x2x4xf32, #tpu.memory_space<vmem>>, vector<1x2x4xf32>
    %301 = vector.shape_cast %300 : vector<1x2x4xf32> to vector<2x4xf32>
    %cst_243 = arith.constant dense<0.000000e+00> : vector<2x512xf32>
    %302 = tpu.matmul %301, %299, %cst_243 {dimension_numbers = #tpu.dot_dimension_numbers<[1], [0], [0], [1], [0, 0, 1, 1], [], []>} : vector<2x4xf32>, vector<4x512xf32>, vector<2x512xf32> -> vector<2x512xf32>
    %303 = arith.addf %295, %302 : vector<2x512xf32>
    %cst_244 = arith.constant 0.000000e+00 : f32
    %304 = vector.broadcast %cst_244 : f32 to vector<2x512xf32>
    %305 = arith.maximumf %303, %304 : vector<2x512xf32>
    %c0_245 = arith.constant 0 : index
    %c0_246 = arith.constant 0 : index
    %306 = vector.load %arg13[%c0_245, %c0_246] : memref<2x1xf32, #tpu.memory_space<vmem>>, vector<2x1xf32>
    %307 = vector.shape_cast %306 : vector<2x1xf32> to vector<2x1xf32>
    %308 = vector.broadcast %307 : vector<2x1xf32> to vector<2x512xf32>
    %c17_i32_247 = arith.constant 17 : i32
    %309 = tpu.dynamic_rotate %305 by %c17_i32_247 dim 1 : vector<2x512xf32>, i32 -> vector<2x512xf32>
    %c0_248 = arith.constant 0 : index
    %c0_249 = arith.constant 0 : index
    %310 = vector.load %arg2[%c0_248, %c0_249] : memref<9x512xf32, #tpu.memory_space<vmem>>, vector<1x512xf32>
    %311 = vector.broadcast %310 : vector<1x512xf32> to vector<2x512xf32>
    %312 = arith.mulf %309, %311 : vector<2x512xf32>
    %c0_250 = arith.constant 0 : index
    %c0_251 = arith.constant 0 : index
    %c0_252 = arith.constant 0 : index
    %313 = vector.load %arg8[%c0_250, %c0_251, %c0_252] : memref<9x2x2xf32, #tpu.memory_space<vmem>>, vector<1x2x2xf32>
    %314 = vector.shape_cast %313 : vector<1x2x2xf32> to vector<2x2xf32>
    %cst_253 = arith.constant dense<0.000000e+00> : vector<2x512xf32>
    %315 = tpu.matmul %314, %312, %cst_253 {dimension_numbers = #tpu.dot_dimension_numbers<[1], [0], [0], [1], [0, 0, 1, 1], [], []>} : vector<2x2xf32>, vector<2x512xf32>, vector<2x512xf32> -> vector<2x512xf32>
    %316 = arith.addf %308, %315 : vector<2x512xf32>
    %c16_i32_254 = arith.constant 16 : i32
    %317 = tpu.dynamic_rotate %305 by %c16_i32_254 dim 1 : vector<2x512xf32>, i32 -> vector<2x512xf32>
    %c1_255 = arith.constant 1 : index
    %c0_256 = arith.constant 0 : index
    %318 = vector.load %arg2[%c1_255, %c0_256] : memref<9x512xf32, #tpu.memory_space<vmem>>, vector<1x512xf32>
    %319 = vector.broadcast %318 : vector<1x512xf32> to vector<2x512xf32>
    %320 = arith.mulf %317, %319 : vector<2x512xf32>
    %c1_257 = arith.constant 1 : index
    %c0_258 = arith.constant 0 : index
    %c0_259 = arith.constant 0 : index
    %321 = vector.load %arg8[%c1_257, %c0_258, %c0_259] : memref<9x2x2xf32, #tpu.memory_space<vmem>>, vector<1x2x2xf32>
    %322 = vector.shape_cast %321 : vector<1x2x2xf32> to vector<2x2xf32>
    %cst_260 = arith.constant dense<0.000000e+00> : vector<2x512xf32>
    %323 = tpu.matmul %322, %320, %cst_260 {dimension_numbers = #tpu.dot_dimension_numbers<[1], [0], [0], [1], [0, 0, 1, 1], [], []>} : vector<2x2xf32>, vector<2x512xf32>, vector<2x512xf32> -> vector<2x512xf32>
    %324 = arith.addf %316, %323 : vector<2x512xf32>
    %c15_i32_261 = arith.constant 15 : i32
    %325 = tpu.dynamic_rotate %305 by %c15_i32_261 dim 1 : vector<2x512xf32>, i32 -> vector<2x512xf32>
    %c2_262 = arith.constant 2 : index
    %c0_263 = arith.constant 0 : index
    %326 = vector.load %arg2[%c2_262, %c0_263] : memref<9x512xf32, #tpu.memory_space<vmem>>, vector<1x512xf32>
    %327 = vector.broadcast %326 : vector<1x512xf32> to vector<2x512xf32>
    %328 = arith.mulf %325, %327 : vector<2x512xf32>
    %c2_264 = arith.constant 2 : index
    %c0_265 = arith.constant 0 : index
    %c0_266 = arith.constant 0 : index
    %329 = vector.load %arg8[%c2_264, %c0_265, %c0_266] : memref<9x2x2xf32, #tpu.memory_space<vmem>>, vector<1x2x2xf32>
    %330 = vector.shape_cast %329 : vector<1x2x2xf32> to vector<2x2xf32>
    %cst_267 = arith.constant dense<0.000000e+00> : vector<2x512xf32>
    %331 = tpu.matmul %330, %328, %cst_267 {dimension_numbers = #tpu.dot_dimension_numbers<[1], [0], [0], [1], [0, 0, 1, 1], [], []>} : vector<2x2xf32>, vector<2x512xf32>, vector<2x512xf32> -> vector<2x512xf32>
    %332 = arith.addf %324, %331 : vector<2x512xf32>
    %c1_i32_268 = arith.constant 1 : i32
    %333 = tpu.dynamic_rotate %305 by %c1_i32_268 dim 1 : vector<2x512xf32>, i32 -> vector<2x512xf32>
    %c3_269 = arith.constant 3 : index
    %c0_270 = arith.constant 0 : index
    %334 = vector.load %arg2[%c3_269, %c0_270] : memref<9x512xf32, #tpu.memory_space<vmem>>, vector<1x512xf32>
    %335 = vector.broadcast %334 : vector<1x512xf32> to vector<2x512xf32>
    %336 = arith.mulf %333, %335 : vector<2x512xf32>
    %c3_271 = arith.constant 3 : index
    %c0_272 = arith.constant 0 : index
    %c0_273 = arith.constant 0 : index
    %337 = vector.load %arg8[%c3_271, %c0_272, %c0_273] : memref<9x2x2xf32, #tpu.memory_space<vmem>>, vector<1x2x2xf32>
    %338 = vector.shape_cast %337 : vector<1x2x2xf32> to vector<2x2xf32>
    %cst_274 = arith.constant dense<0.000000e+00> : vector<2x512xf32>
    %339 = tpu.matmul %338, %336, %cst_274 {dimension_numbers = #tpu.dot_dimension_numbers<[1], [0], [0], [1], [0, 0, 1, 1], [], []>} : vector<2x2xf32>, vector<2x512xf32>, vector<2x512xf32> -> vector<2x512xf32>
    %340 = arith.addf %332, %339 : vector<2x512xf32>
    %c4_275 = arith.constant 4 : index
    %c0_276 = arith.constant 0 : index
    %341 = vector.load %arg2[%c4_275, %c0_276] : memref<9x512xf32, #tpu.memory_space<vmem>>, vector<1x512xf32>
    %342 = vector.broadcast %341 : vector<1x512xf32> to vector<2x512xf32>
    %343 = arith.mulf %305, %342 : vector<2x512xf32>
    %c4_277 = arith.constant 4 : index
    %c0_278 = arith.constant 0 : index
    %c0_279 = arith.constant 0 : index
    %344 = vector.load %arg8[%c4_277, %c0_278, %c0_279] : memref<9x2x2xf32, #tpu.memory_space<vmem>>, vector<1x2x2xf32>
    %345 = vector.shape_cast %344 : vector<1x2x2xf32> to vector<2x2xf32>
    %cst_280 = arith.constant dense<0.000000e+00> : vector<2x512xf32>
    %346 = tpu.matmul %345, %343, %cst_280 {dimension_numbers = #tpu.dot_dimension_numbers<[1], [0], [0], [1], [0, 0, 1, 1], [], []>} : vector<2x2xf32>, vector<2x512xf32>, vector<2x512xf32> -> vector<2x512xf32>
    %347 = arith.addf %340, %346 : vector<2x512xf32>
    %c511_i32_281 = arith.constant 511 : i32
    %348 = tpu.dynamic_rotate %305 by %c511_i32_281 dim 1 : vector<2x512xf32>, i32 -> vector<2x512xf32>
    %c5_282 = arith.constant 5 : index
    %c0_283 = arith.constant 0 : index
    %349 = vector.load %arg2[%c5_282, %c0_283] : memref<9x512xf32, #tpu.memory_space<vmem>>, vector<1x512xf32>
    %350 = vector.broadcast %349 : vector<1x512xf32> to vector<2x512xf32>
    %351 = arith.mulf %348, %350 : vector<2x512xf32>
    %c5_284 = arith.constant 5 : index
    %c0_285 = arith.constant 0 : index
    %c0_286 = arith.constant 0 : index
    %352 = vector.load %arg8[%c5_284, %c0_285, %c0_286] : memref<9x2x2xf32, #tpu.memory_space<vmem>>, vector<1x2x2xf32>
    %353 = vector.shape_cast %352 : vector<1x2x2xf32> to vector<2x2xf32>
    %cst_287 = arith.constant dense<0.000000e+00> : vector<2x512xf32>
    %354 = tpu.matmul %353, %351, %cst_287 {dimension_numbers = #tpu.dot_dimension_numbers<[1], [0], [0], [1], [0, 0, 1, 1], [], []>} : vector<2x2xf32>, vector<2x512xf32>, vector<2x512xf32> -> vector<2x512xf32>
    %355 = arith.addf %347, %354 : vector<2x512xf32>
    %c497_i32_288 = arith.constant 497 : i32
    %356 = tpu.dynamic_rotate %305 by %c497_i32_288 dim 1 : vector<2x512xf32>, i32 -> vector<2x512xf32>
    %c6_289 = arith.constant 6 : index
    %c0_290 = arith.constant 0 : index
    %357 = vector.load %arg2[%c6_289, %c0_290] : memref<9x512xf32, #tpu.memory_space<vmem>>, vector<1x512xf32>
    %358 = vector.broadcast %357 : vector<1x512xf32> to vector<2x512xf32>
    %359 = arith.mulf %356, %358 : vector<2x512xf32>
    %c6_291 = arith.constant 6 : index
    %c0_292 = arith.constant 0 : index
    %c0_293 = arith.constant 0 : index
    %360 = vector.load %arg8[%c6_291, %c0_292, %c0_293] : memref<9x2x2xf32, #tpu.memory_space<vmem>>, vector<1x2x2xf32>
    %361 = vector.shape_cast %360 : vector<1x2x2xf32> to vector<2x2xf32>
    %cst_294 = arith.constant dense<0.000000e+00> : vector<2x512xf32>
    %362 = tpu.matmul %361, %359, %cst_294 {dimension_numbers = #tpu.dot_dimension_numbers<[1], [0], [0], [1], [0, 0, 1, 1], [], []>} : vector<2x2xf32>, vector<2x512xf32>, vector<2x512xf32> -> vector<2x512xf32>
    %363 = arith.addf %355, %362 : vector<2x512xf32>
    %c496_i32_295 = arith.constant 496 : i32
    %364 = tpu.dynamic_rotate %305 by %c496_i32_295 dim 1 : vector<2x512xf32>, i32 -> vector<2x512xf32>
    %c7_296 = arith.constant 7 : index
    %c0_297 = arith.constant 0 : index
    %365 = vector.load %arg2[%c7_296, %c0_297] : memref<9x512xf32, #tpu.memory_space<vmem>>, vector<1x512xf32>
    %366 = vector.broadcast %365 : vector<1x512xf32> to vector<2x512xf32>
    %367 = arith.mulf %364, %366 : vector<2x512xf32>
    %c7_298 = arith.constant 7 : index
    %c0_299 = arith.constant 0 : index
    %c0_300 = arith.constant 0 : index
    %368 = vector.load %arg8[%c7_298, %c0_299, %c0_300] : memref<9x2x2xf32, #tpu.memory_space<vmem>>, vector<1x2x2xf32>
    %369 = vector.shape_cast %368 : vector<1x2x2xf32> to vector<2x2xf32>
    %cst_301 = arith.constant dense<0.000000e+00> : vector<2x512xf32>
    %370 = tpu.matmul %369, %367, %cst_301 {dimension_numbers = #tpu.dot_dimension_numbers<[1], [0], [0], [1], [0, 0, 1, 1], [], []>} : vector<2x2xf32>, vector<2x512xf32>, vector<2x512xf32> -> vector<2x512xf32>
    %371 = arith.addf %363, %370 : vector<2x512xf32>
    %c495_i32_302 = arith.constant 495 : i32
    %372 = tpu.dynamic_rotate %305 by %c495_i32_302 dim 1 : vector<2x512xf32>, i32 -> vector<2x512xf32>
    %c8_303 = arith.constant 8 : index
    %c0_304 = arith.constant 0 : index
    %373 = vector.load %arg2[%c8_303, %c0_304] : memref<9x512xf32, #tpu.memory_space<vmem>>, vector<1x512xf32>
    %374 = vector.broadcast %373 : vector<1x512xf32> to vector<2x512xf32>
    %375 = arith.mulf %372, %374 : vector<2x512xf32>
    %c8_305 = arith.constant 8 : index
    %c0_306 = arith.constant 0 : index
    %c0_307 = arith.constant 0 : index
    %376 = vector.load %arg8[%c8_305, %c0_306, %c0_307] : memref<9x2x2xf32, #tpu.memory_space<vmem>>, vector<1x2x2xf32>
    %377 = vector.shape_cast %376 : vector<1x2x2xf32> to vector<2x2xf32>
    %cst_308 = arith.constant dense<0.000000e+00> : vector<2x512xf32>
    %378 = tpu.matmul %377, %375, %cst_308 {dimension_numbers = #tpu.dot_dimension_numbers<[1], [0], [0], [1], [0, 0, 1, 1], [], []>} : vector<2x2xf32>, vector<2x512xf32>, vector<2x512xf32> -> vector<2x512xf32>
    %379 = arith.addf %371, %378 : vector<2x512xf32>
    %c0_309 = arith.constant 0 : index
    %c0_310 = arith.constant 0 : index
    %380 = vector.load %arg3[%c0_309, %c0_310] : memref<2x256xf32, #tpu.memory_space<vmem>>, vector<1x256xf32>
    %c1_311 = arith.constant 1 : index
    %c0_312 = arith.constant 0 : index
    %381 = vector.load %arg3[%c1_311, %c0_312] : memref<2x256xf32, #tpu.memory_space<vmem>>, vector<1x256xf32>
    %382 = vector.extract_strided_slice %379 {offsets = [0, 0], sizes = [2, 256], strides = [1, 1]} : vector<2x512xf32> to vector<2x256xf32>
    %cst_313 = arith.constant dense<0xFF800000> : vector<2xf32>
    %383 = vector.multi_reduction <maximumf>, %382, %cst_313 [1] : vector<2x256xf32> to vector<2xf32>
    %384 = vector.shape_cast %383 : vector<2xf32> to vector<2x1xf32>
    %385 = vector.broadcast %384 : vector<2x1xf32> to vector<2x256xf32>
    %386 = arith.subf %382, %385 : vector<2x256xf32>
    %387 = math.exp %386 : vector<2x256xf32>
    %cst_314 = arith.constant dense<0.000000e+00> : vector<2xf32>
    %388 = vector.multi_reduction <add>, %387, %cst_314 [1] : vector<2x256xf32> to vector<2xf32>
    %389 = vector.shape_cast %388 : vector<2xf32> to vector<2x1xf32>
    %390 = vector.broadcast %380 : vector<1x256xf32> to vector<2x256xf32>
    %391 = arith.mulf %387, %390 : vector<2x256xf32>
    %cst_315 = arith.constant dense<0.000000e+00> : vector<2xf32>
    %392 = vector.multi_reduction <add>, %391, %cst_315 [1] : vector<2x256xf32> to vector<2xf32>
    %393 = vector.shape_cast %392 : vector<2xf32> to vector<2x1xf32>
    %394 = vector.broadcast %381 : vector<1x256xf32> to vector<2x256xf32>
    %395 = arith.mulf %387, %394 : vector<2x256xf32>
    %cst_316 = arith.constant dense<0.000000e+00> : vector<2xf32>
    %396 = vector.multi_reduction <add>, %395, %cst_316 [1] : vector<2x256xf32> to vector<2xf32>
    %397 = vector.shape_cast %396 : vector<2xf32> to vector<2x1xf32>
    %398 = tpu.concatenate %393, %397 in 1 : vector<2x1xf32>, vector<2x1xf32> -> vector<2x2xf32>
    %399 = tpu.reciprocal %389 : vector<2x1xf32> -> vector<2x1xf32>
    %400 = vector.broadcast %399 : vector<2x1xf32> to vector<2x2xf32>
    %401 = arith.mulf %398, %400 : vector<2x2xf32>
    %c0_317 = arith.constant 0 : index
    %c0_318 = arith.constant 0 : index
    %c0_319 = arith.constant 0 : index
    %c0_320 = arith.constant 0 : index
    %402 = vector.load %arg14[%c0_317, %c0_318, %c0_319, %c0_320] : memref<1x2x2x2xf32, #tpu.memory_space<vmem>>, vector<1x1x2x2xf32>
    %403 = vector.shape_cast %402 : vector<1x1x2x2xf32> to vector<2x2xf32>
    %404 = vector.shape_cast %401 : vector<2x2xf32> to vector<1x1x2x2xf32>
    tpu.vector_store %arg14[%c0_317, %c0_318, %c0_319, %c0_320], %404 {strides = array<i32>} : memref<1x2x2x2xf32, #tpu.memory_space<vmem>>, vector<1x1x2x2xf32>,
    %405 = vector.extract_strided_slice %379 {offsets = [0, 256], sizes = [2, 256], strides = [1, 1]} : vector<2x512xf32> to vector<2x256xf32>
    %cst_321 = arith.constant dense<0xFF800000> : vector<2xf32>
    %406 = vector.multi_reduction <maximumf>, %405, %cst_321 [1] : vector<2x256xf32> to vector<2xf32>
    %407 = vector.shape_cast %406 : vector<2xf32> to vector<2x1xf32>
    %408 = vector.broadcast %407 : vector<2x1xf32> to vector<2x256xf32>
    %409 = arith.subf %405, %408 : vector<2x256xf32>
    %410 = math.exp %409 : vector<2x256xf32>
    %cst_322 = arith.constant dense<0.000000e+00> : vector<2xf32>
    %411 = vector.multi_reduction <add>, %410, %cst_322 [1] : vector<2x256xf32> to vector<2xf32>
    %412 = vector.shape_cast %411 : vector<2xf32> to vector<2x1xf32>
    %413 = vector.broadcast %380 : vector<1x256xf32> to vector<2x256xf32>
    %414 = arith.mulf %410, %413 : vector<2x256xf32>
    %cst_323 = arith.constant dense<0.000000e+00> : vector<2xf32>
    %415 = vector.multi_reduction <add>, %414, %cst_323 [1] : vector<2x256xf32> to vector<2xf32>
    %416 = vector.shape_cast %415 : vector<2xf32> to vector<2x1xf32>
    %417 = vector.broadcast %381 : vector<1x256xf32> to vector<2x256xf32>
    %418 = arith.mulf %410, %417 : vector<2x256xf32>
    %cst_324 = arith.constant dense<0.000000e+00> : vector<2xf32>
    %419 = vector.multi_reduction <add>, %418, %cst_324 [1] : vector<2x256xf32> to vector<2xf32>
    %420 = vector.shape_cast %419 : vector<2xf32> to vector<2x1xf32>
    %421 = tpu.concatenate %416, %420 in 1 : vector<2x1xf32>, vector<2x1xf32> -> vector<2x2xf32>
    %422 = tpu.reciprocal %412 : vector<2x1xf32> -> vector<2x1xf32>
    %423 = vector.broadcast %422 : vector<2x1xf32> to vector<2x2xf32>
    %424 = arith.mulf %421, %423 : vector<2x2xf32>
    %c0_325 = arith.constant 0 : index
    %c1_326 = arith.constant 1 : index
    %c0_327 = arith.constant 0 : index
    %c0_328 = arith.constant 0 : index
    %425 = vector.load %arg14[%c0_325, %c1_326, %c0_327, %c0_328] : memref<1x2x2x2xf32, #tpu.memory_space<vmem>>, vector<1x1x2x2xf32>
    %426 = vector.shape_cast %425 : vector<1x1x2x2xf32> to vector<2x2xf32>
    %427 = vector.shape_cast %424 : vector<2x2xf32> to vector<1x1x2x2xf32>
    tpu.vector_store %arg14[%c0_325, %c1_326, %c0_327, %c0_328], %427 {strides = array<i32>} : memref<1x2x2x2xf32, #tpu.memory_space<vmem>>, vector<1x1x2x2xf32>,
    return
  }
  func.func @transform_0(%arg0: i32) -> (i32, i32, i32) {
    %c0_i32 = arith.constant 0 : i32
    %c0_i32_0 = arith.constant 0 : i32
    %c0_i32_1 = arith.constant 0 : i32
    return %arg0, %c0_i32, %c0_i32_0 : i32, i32, i32
  }
  func.func @transform_1(%arg0: i32) -> (i32, i32) {
    %c0_i32 = arith.constant 0 : i32
    %c0_i32_0 = arith.constant 0 : i32
    %c0_i32_1 = arith.constant 0 : i32
    return %c0_i32, %c0_i32_0 : i32, i32
  }
  func.func @transform_2(%arg0: i32) -> (i32, i32) {
    %c0_i32 = arith.constant 0 : i32
    %c0_i32_0 = arith.constant 0 : i32
    %c0_i32_1 = arith.constant 0 : i32
    return %c0_i32, %c0_i32_0 : i32, i32
  }
  func.func @transform_3(%arg0: i32) -> (i32, i32, i32) {
    %c0_i32 = arith.constant 0 : i32
    %c0_i32_0 = arith.constant 0 : i32
    %c0_i32_1 = arith.constant 0 : i32
    %c0_i32_2 = arith.constant 0 : i32
    return %c0_i32, %c0_i32_0, %c0_i32_1 : i32, i32, i32
  }
  func.func @transform_4(%arg0: i32) -> (i32, i32, i32) {
    %c0_i32 = arith.constant 0 : i32
    %c0_i32_0 = arith.constant 0 : i32
    %c0_i32_1 = arith.constant 0 : i32
    %c0_i32_2 = arith.constant 0 : i32
    return %c0_i32, %c0_i32_0, %c0_i32_1 : i32, i32, i32
  }
  func.func @transform_5(%arg0: i32) -> (i32, i32, i32) {
    %c0_i32 = arith.constant 0 : i32
    %c0_i32_0 = arith.constant 0 : i32
    %c0_i32_1 = arith.constant 0 : i32
    %c0_i32_2 = arith.constant 0 : i32
    return %c0_i32, %c0_i32_0, %c0_i32_1 : i32, i32, i32
  }
  func.func @transform_6(%arg0: i32) -> (i32, i32, i32) {
    %c0_i32 = arith.constant 0 : i32
    %c0_i32_0 = arith.constant 0 : i32
    %c0_i32_1 = arith.constant 0 : i32
    %c0_i32_2 = arith.constant 0 : i32
    return %c0_i32, %c0_i32_0, %c0_i32_1 : i32, i32, i32
  }
  func.func @transform_7(%arg0: i32) -> (i32, i32, i32) {
    %c0_i32 = arith.constant 0 : i32
    %c0_i32_0 = arith.constant 0 : i32
    %c0_i32_1 = arith.constant 0 : i32
    %c0_i32_2 = arith.constant 0 : i32
    return %c0_i32, %c0_i32_0, %c0_i32_1 : i32, i32, i32
  }
  func.func @transform_8(%arg0: i32) -> (i32, i32) {
    %c0_i32 = arith.constant 0 : i32
    %c0_i32_0 = arith.constant 0 : i32
    %c0_i32_1 = arith.constant 0 : i32
    return %c0_i32, %c0_i32_0 : i32, i32
  }
  func.func @transform_9(%arg0: i32) -> (i32, i32) {
    %c0_i32 = arith.constant 0 : i32
    %c0_i32_0 = arith.constant 0 : i32
    %c0_i32_1 = arith.constant 0 : i32
    return %c0_i32, %c0_i32_0 : i32, i32
  }
  func.func @transform_10(%arg0: i32) -> (i32, i32) {
    %c0_i32 = arith.constant 0 : i32
    %c0_i32_0 = arith.constant 0 : i32
    %c0_i32_1 = arith.constant 0 : i32
    return %c0_i32, %c0_i32_0 : i32, i32
  }
  func.func @transform_11(%arg0: i32) -> (i32, i32) {
    %c0_i32 = arith.constant 0 : i32
    %c0_i32_0 = arith.constant 0 : i32
    %c0_i32_1 = arith.constant 0 : i32
    return %c0_i32, %c0_i32_0 : i32, i32
  }
  func.func @transform_12(%arg0: i32) -> (i32, i32) {
    %c0_i32 = arith.constant 0 : i32
    %c0_i32_0 = arith.constant 0 : i32
    %c0_i32_1 = arith.constant 0 : i32
    return %c0_i32, %c0_i32_0 : i32, i32
  }
  func.func @transform_13(%arg0: i32) -> (i32, i32, i32, i32) {
    %c0_i32 = arith.constant 0 : i32
    %c0_i32_0 = arith.constant 0 : i32
    %c0_i32_1 = arith.constant 0 : i32
    %c0_i32_2 = arith.constant 0 : i32
    return %arg0, %c0_i32, %c0_i32_0, %c0_i32_1 : i32, i32, i32, i32
  }
}

</mosaic_0001>

<bundles_post_ra>
// kernel: corner_predictor_lite_forward.1
= control target key start
LH: loop header
LB: loop body
LE: loop exit
PB: predicated region body
PF: predicated region fallthrough
CT: control target
= control target key end

     0   :  { %v11041_v2 = vmov 0.0   ;;  %s9107_s29 = smov 17   ;;  %s9109_s30 = smov 15   ;;  %v9115_v5 = vmov 0   ;;  %v72_v8 = vlaneseq  ;;  %vm114_vm1 = vcmask 1043456   ;;  %s11027_s0 = inlined_call_operand.vmem [shape: f32[1,4,512], index: 0, kind: input, shape index: {}]   ;;  %s11028_s8 = inlined_call_operand.vmem [shape: f32[16,1], index: 8, kind: input, shape index: {}]   ;;  %s11029_s1 = inlined_call_operand.vmem [shape: f32[9,512], index: 1, kind: input, shape index: {}]   ;;  %s11030_s3 = inlined_call_operand.vmem [shape: f32[9,16,4], index: 3, kind: input, shape index: {}]   ;;  %s11031_s9 = inlined_call_operand.vmem [shape: f32[8,1], index: 9, kind: input, shape index: {}]   ;;  %s11032_s4 = inlined_call_operand.vmem [shape: f32[9,8,16], index: 4, kind: input, shape index: {}]   ;;  %s11033_s10 = inlined_call_operand.vmem [shape: f32[4,1], index: 10, kind: input, shape index: {}]   ;;  %s11034_s5 = inlined_call_operand.vmem [shape: f32[9,4,8], index: 5, kind: input, shape index: {}]   ;;  %s11035_s11 = inlined_call_operand.vmem [shape: f32[2,1], index: 11, kind: input, shape index: {}]   ;;  %s11036_s6 = inlined_call_operand.vmem [shape: f32[9,2,4], index: 6, kind: input, shape index: {}]   ;;  %s11037_s12 = inlined_call_operand.vmem [shape: f32[2,1], index: 12, kind: input, shape index: {}]   ;;  %s11038_s7 = inlined_call_operand.vmem [shape: f32[9,2,2], index: 7, kind: input, shape index: {}]   ;;  %s11039_s2 = inlined_call_operand.vmem [shape: f32[2,256], index: 2, kind: input, shape index: {}]   ;;  %s11040_s13 = inlined_call_operand.vmem [shape: f32[1,2,2,2], index: 13, kind: output, shape index: {}]  }
   0x1   :  { %v9189_v0 = vld [vmem:[%s11027_s0 + $0x8] sm:$0xff]  ;;  %v9194_v1 = vld [vmem:[%s11027_s0] sm:$0xff]  ;;  %191 = vmatprep.mubr.f32.mxu0 %v11041_v2  ;;  %268 = vmatprep.mubr.f32.mxu1 %v11041_v2  ;;  %s9108_s0 = smov 16   ;;  %s9110_s14 = smov 1   ;;  %vm107_vm3 = vcmask 31744   ;;  %v8527_v54 = vld [vmem:[%s11030_s3 + $0x10] sm:$0xff] }
   0x2   :  { %68 = vrot.lane.b32.xlu1 %v9189_v0, %s9107_s29  ;;  %64 = vrot.lane.b32.xlu0 %v9194_v1, %s9107_s29  ;;  %v61_v3 = vcombine.high %v9189_v0, %v9189_v0  ;;  %v60_v4 = vcombine.high %v9194_v1, %v9194_v1  ;;  %s9111_s15 = smov 127   ;;  %s9112_s16 = smov 113   ;;  %v46_v6 = vld [vmem:[%s11028_s8] sm:$0xff]  ;;  %v47_v7 = vld [vmem:[%s11028_s8 + $0x8] sm:$0xff]  ;;  %v82_v9 = vshrl.u32 %v72_v8, 7  ;;  %v9256_v10 = vand.u32 127, %v72_v8 }
   0x3   :  { %s9113_s17 = smov 112   ;;  %s9114_s18 = smov 111   ;;  %9090 = vset.pattern.permute.xlu0 %v9115_v5  ;;  %9091 = vset.pattern.permute.xlu1 %v9115_v5  ;;  %v79_v15 = vld [vmem:[%s11029_s1] ss:$8 sm:$0xf]  ;;  %vm2109_vm10 = vcmask 130048  }
   0x4   :  { %v9258_v11 = vsub.s32 0, %v82_v9  ;;  %v9260_v12 = vsub.s32 1, %v82_v9  ;;  %v9262_v13 = vsub.s32 3, %v82_v9  ;;  %v9264_v14 = vsub.s32 2, %v82_v9  ;;  %v105_v34 = vld [vmem:[%s11030_s3] sm:$0xff]  ;;  %v106_v43 = vld [vmem:[%s11030_s3 + $0x8] sm:$0xff] }
   0x5   :  { %vm74_vm0 = vcmp.lt.s32.totalorder %v9256_v10, 17  ;;  %v8526_v18 = vld [vmem:[%s11029_s1 + $0x1] ss:$8 sm:$0xf]  ;;  %vm297_vm2 = vcmp.lt.s32.totalorder %v9256_v10, 16  ;;  %vm520_vm4 = vcmp.lt.s32.totalorder %v9256_v10, 15 }
   0x6   :  { %70 = vrot.lane.b32.xlu1 %v61_v3, %s9107_s29  ;;  %66 = vrot.lane.b32.xlu0 %v60_v4, %s9107_s29  ;;  %11087 = vst [vmem:[#allocation2_spill] sm:$0xff] %v9258_v11  ;;  %11088 = vst [vmem:[#allocation3_spill] sm:$0xff] %v9260_v12  ;;  %v9274_v19 = vrot.slane %v79_v15, %v9262_v13  ;;  %v9277_v20 = vrot.slane %v79_v15, %v9260_v12  ;;  %v8537_v42 = vld [vmem:[%s11029_s1 + $0x2] ss:$8 sm:$0xf]  ;;  %vm743_vm5 = vcmp.lt.s32.totalorder %v9256_v10, 1 }
   0x7   :  { %v9280_v21 = vrot.slane %v79_v15, %v9258_v11  ;;  %v9283_v22 = vrot.slane %v79_v15, %v9264_v14  ;;  %v9287_v25 = vrot.slane %v8526_v18, %v9260_v12  ;;  %v9311_v38 = vrot.slane %v8526_v18, %v9258_v11  ;;  %v8559_v53 = vld [vmem:[%s11029_s1 + $0x4] ss:$8 sm:$0xf]  ;;  %v8548_v59 = vld [vmem:[%s11029_s1 + $0x3] ss:$8 sm:$0xf] }
   0x8   :  { %11089 = vst [vmem:[#allocation4_spill] sm:$0xff] %v9277_v20  ;;  %v9317_v40 = vrot.slane %v8526_v18, %v9264_v14  ;;  %v9320_v41 = vrot.slane %v8526_v18, %v9262_v13  ;;  %v9338_v49 = vrot.slane %v8537_v42, %v9260_v12  ;;  %v9360_v58 = vrot.slane %v8537_v42, %v9258_v11 }
   0x9   :  { %v9366_v60 = vrot.slane %v8559_v53, %v9258_v11  ;;  %v9369_v61 = vrot.slane %v8559_v53, %v9260_v12  ;;  %v9375_v63 = vrot.slane %v8537_v42, %v9264_v14  ;;  %v9390_v8 = vrot.slane %v8559_v53, %v9264_v14 }
   0xa   :  { %291 = vrot.lane.b32.xlu1 %v60_v4, %s9108_s0  ;;  %289 = vrot.lane.b32.xlu0 %v9194_v1, %s9108_s0  ;;  %v9393_v9 = vrot.slane %v8559_v53, %v9262_v13  ;;  %vm1178_vm6 = vcmp.lt.s32.totalorder %v9256_v10, 127  ;;  %vm1401_vm7 = vcmp.lt.s32.totalorder %v9256_v10, 113  ;;  %vm1624_vm8 = vcmp.lt.s32.totalorder %v9256_v10, 112 }
   0xb   :  { %v981_v18 = vcombine.low %v9366_v60, %v9369_v61  ;;  %vm1847_vm9 = vcmp.lt.s32.totalorder %v9256_v10, 111  ;;  %vm3726_vm11 = vcmask 64512   ;;  %vm6839_vm12 = vcmask 1041408   ;;  %v8783_v10 = vld [vmem:[%s11038_s7 + $0x10] sm:$0x3] }
   0xc   :  { %vm6835_vm13 = vcmask 15360   ;;  %vm8473_vm14 = vcmask 7168   ;;  %vm8477_vm15 = vcmask 9216  }
   0xe   :  { %295 = vrot.lane.b32.xlu1 %v61_v3, %s9108_s0  ;;  %293 = vrot.lane.b32.xlu0 %v9189_v0, %s9108_s0 }
  0x12   :  { %514 = vrot.lane.b32.xlu1 %v60_v4, %s9109_s30  ;;  %512 = vrot.lane.b32.xlu0 %v9194_v1, %s9109_s30 }
  0x16   :  { %518 = vrot.lane.b32.xlu1 %v61_v3, %s9109_s30  ;;  %516 = vrot.lane.b32.xlu0 %v9189_v0, %s9109_s30 }
  0x1a   :  { %737 = vrot.lane.b32.xlu1 %v60_v4, %s9110_s14  ;;  %735 = vrot.lane.b32.xlu0 %v9194_v1, %s9110_s14 }
  0x1e   :  { %741 = vrot.lane.b32.xlu1 %v61_v3, %s9110_s14  ;;  %739 = vrot.lane.b32.xlu0 %v9189_v0, %s9110_s14 }
  0x22   :  { %1170 = vrot.lane.b32.xlu0 %v9194_v1, %s9111_s15  ;;  %1172 = vrot.lane.b32.xlu1 %v60_v4, %s9111_s15 }
  0x26   :  { %1174 = vrot.lane.b32.xlu0 %v9189_v0, %s9111_s15  ;;  %1176 = vrot.lane.b32.xlu1 %v61_v3, %s9111_s15 }
  0x2a   :  { %1393 = vrot.lane.b32.xlu0 %v9194_v1, %s9112_s16  ;;  %1395 = vrot.lane.b32.xlu1 %v60_v4, %s9112_s16 }
  0x2e   :  { %1397 = vrot.lane.b32.xlu0 %v9189_v0, %s9112_s16  ;;  %1399 = vrot.lane.b32.xlu1 %v61_v3, %s9112_s16 }
  0x32   :  { %1616 = vrot.lane.b32.xlu0 %v9194_v1, %s9113_s17  ;;  %1618 = vrot.lane.b32.xlu1 %v60_v4, %s9113_s17 }
  0x36   :  { %1620 = vrot.lane.b32.xlu0 %v9189_v0, %s9113_s17  ;;  %1622 = vrot.lane.b32.xlu1 %v61_v3, %s9113_s17 }
  0x3a   :  { %1839 = vrot.lane.b32.xlu0 %v9194_v1, %s9114_s18  ;;  %1841 = vrot.lane.b32.xlu1 %v60_v4, %s9114_s18  ;;  %v8528_v4 = vld [vmem:[%s11030_s3 + $0x18] sm:$0xff] }
  0x3e   :  { %1843 = vrot.lane.b32.xlu0 %v9189_v0, %s9114_s18  ;;  %1845 = vrot.lane.b32.xlu1 %v61_v3, %s9114_s18  ;;  %v9378_v3 = vrot.slane %v8537_v42, %v9262_v13 }
  0x42   :  { %50 = vperm.xlu0 %9090, %v46_v6   ;;  %55 = vperm.xlu1 %9091, %v47_v7   ;;  %v9387_v7 = vrot.slane %v8548_v59, %v9260_v12 }
  0x74   :  { %v69_v16 = vpop.permute.xlu1 %68  ;;  %v65_v17 = vpop.permute.xlu0 %64 }
  0x78   :  { %v71_v23 = vpop.permute.xlu1 %70  ;;  %v67_v24 = vpop.permute.xlu0 %66 }
  0x79   :  { %v78_v26 = vsel %vm74_vm0, %v71_v23, %v65_v17  ;;  %v76_v27 = vsel %vm74_vm0, %v67_v24, %v69_v16  ;;  %v75_v28 = vsel %vm74_vm0, %v69_v16, %v71_v23  ;;  %v77_v29 = vsel %vm74_vm0, %v65_v17, %v67_v24 }
  0x7a   :  { %v104_v30 = vmul.f32 %v9274_v19, %v75_v28  ;;  %v102_v31 = vmul.f32 %v9277_v20, %v77_v29  ;;  %v101_v32 = vmul.f32 %v9280_v21, %v78_v26  ;;  %v103_v33 = vmul.f32 %v9283_v22, %v76_v27  ;;  %v8538_v27 = vld [vmem:[%s11030_s3 + $0x20] sm:$0xff] }
  0x7c   :  { %8522 = vmatprep.subr.msk.mxu1 %vm114_vm1, %v104_v30  ;;  %v292_v35 = vpop.permute.xlu1 %291  ;;  %8518 = vmatprep.subr.msk.mxu0 %vm114_vm1, %v102_v31  ;;  %v290_v36 = vpop.permute.xlu0 %289  ;;  %v982_v30 = vcombine.low %v9390_v8, %v9393_v9 }
  0x7d   :  { %v300_v37 = vsel %vm297_vm2, %v290_v36, %v292_v35  ;;  %8519 = vmatpush1.msk.msra.mxu0 %vm114_vm1, %v101_v32  ;;  %8523 = vmatpush1.msk.msra.mxu1 %vm114_vm1, %v103_v33  ;;  %v9422_v32 = vrot.slane %v8548_v59, %v9258_v11  ;;  %v985_v33 = vmul.f32 %v981_v18, %v9194_v1  ;;  %v8539_v1 = vld [vmem:[%s11030_s3 + $0x28] sm:$0xff] }
  0x7e   :  { %v326_v39 = vmul.f32 %v9287_v25, %v300_v37  ;;  %8520 = vmatmul.mubr.msk.f32.vlgmr.msra.gmra.mrb[0].mxu0 %vm107_vm3, %v105_v34  ;;  %8524 = vmatmul.mubr.msk.f32.vlgmr.msra.gmra.mrb[0].mxu1 %vm107_vm3, %v105_v34  ;;  %v986_v42 = vmul.f32 %v982_v30, %v9189_v0  ;;  %v8549_v0 = vld [vmem:[%s11030_s3 + $0x30] sm:$0xff] }
  0x7f   :  { %197 = vmatprep.mubr.f32.mxu0 %v11041_v2  ;;  %274 = vmatprep.mubr.f32.mxu1 %v11041_v2 }
  0x80   :  { %v296_v44 = vpop.permute.xlu1 %295  ;;  %v294_v45 = vpop.permute.xlu0 %293  ;;  %8529 = vmatprep.subr.msk.mxu0 %vm114_vm1, %v326_v39 }
  0x81   :  { %v301_v46 = vsel %vm297_vm2, %v296_v44, %v290_v36  ;;  %v298_v47 = vsel %vm297_vm2, %v294_v45, %v296_v44  ;;  %v299_v48 = vsel %vm297_vm2, %v292_v35, %v294_v45  ;;  %v9429_v35 = vrot.slane %v8548_v59, %v9264_v14 }
  0x82   :  { %v325_v50 = vmul.f32 %v9311_v38, %v301_v46  ;;  %v327_v51 = vmul.f32 %v9317_v40, %v299_v48  ;;  %v328_v52 = vmul.f32 %v9320_v41, %v298_v47  ;;  %8521 = vmatmul.mubr.msk.f32.gmra.mrb[2].mxu0 %vm107_vm3, %v106_v43  ;;  %8525 = vmatmul.mubr.msk.f32.gmra.mrb[2].mxu1 %vm107_vm3, %v106_v43 }
  0x83   :  { %414 = vmatprep.mubr.f32.mxu0 %v11041_v2  ;;  %491 = vmatprep.mubr.f32.mxu1 %v11041_v2  ;;  %v9432_v36 = vrot.slane %v8548_v59, %v9262_v13  ;;  %v992_v46 = vcombine.high %v985_v33, %v985_v33  ;;  %v8550_v59 = vld [vmem:[%s11030_s3 + $0x38] sm:$0xff] }
  0x84   :  { %v515_v55 = vpop.permute.xlu1 %514  ;;  %8530 = vmatpush1.msk.msra.mxu0 %vm114_vm1, %v325_v50  ;;  %8533 = vmatprep.subr.msk.mxu1 %vm114_vm1, %v328_v52  ;;  %v513_v56 = vpop.permute.xlu0 %512 }
  0x85   :  { %v523_v57 = vsel %vm520_vm4, %v513_v56, %v515_v55  ;;  %8534 = vmatpush1.msk.msra.mxu1 %vm114_vm1, %v327_v51  ;;  %v8570_v51 = vld [vmem:[%s11029_s1 + $0x5] ss:$8 sm:$0xf] }
  0x86   :  { %v549_v62 = vmul.f32 %v9338_v49, %v523_v57  ;;  %8531 = vmatmul.mubr.msk.f32.vlgmr.msra.gmra.mrb[0].mxu0 %vm107_vm3, %v8527_v54  ;;  %8535 = vmatmul.mubr.msk.f32.vlgmr.msra.gmra.mrb[0].mxu1 %vm107_vm3, %v8527_v54  ;;  %v993_v54 = vcombine.high %v986_v42, %v986_v42  ;;  %v9474_v57 = vrot.slane %v8570_v51, %v9258_v11 }
  0x87   :  { %420 = vmatprep.mubr.f32.mxu0 %v11041_v2  ;;  %497 = vmatprep.mubr.f32.mxu1 %v11041_v2 }
  0x88   :  { %v519_v5 = vpop.permute.xlu1 %518  ;;  %v517_v6 = vpop.permute.xlu0 %516  ;;  %8540 = vmatprep.subr.msk.mxu0 %vm114_vm1, %v549_v62 }
  0x89   :  { %v524_v15 = vsel %vm520_vm4, %v519_v5, %v513_v56  ;;  %v521_v16 = vsel %vm520_vm4, %v517_v6, %v519_v5  ;;  %v522_v17 = vsel %vm520_vm4, %v515_v55, %v517_v6  ;;  %v9468_v55 = vrot.slane %v8570_v51, %v9260_v12 }
  0x8a   :  { %v548_v23 = vmul.f32 %v9360_v58, %v524_v15  ;;  %v550_v24 = vmul.f32 %v9375_v63, %v522_v17  ;;  %v551_v26 = vmul.f32 %v9378_v3, %v521_v16  ;;  %8532 = vmatmul.mubr.msk.f32.gmra.mrb[2].mxu0 %vm107_vm3, %v8528_v4  ;;  %8536 = vmatmul.mubr.msk.f32.gmra.mrb[2].mxu1 %vm107_vm3, %v8528_v4 }
  0x8b   :  { %637 = vmatprep.mubr.f32.mxu0 %v11041_v2  ;;  %714 = vmatprep.mubr.f32.mxu1 %v11041_v2  ;;  %v9471_v56 = vrot.slane %v8570_v51, %v9262_v13  ;;  %v9484_v5 = vrot.slane %v8570_v51, %v9264_v14  ;;  %v8592_v51 = vld [vmem:[%s11029_s1 + $0x7] ss:$8 sm:$0xf] }
  0x8c   :  { %v738_v28 = vpop.permute.xlu1 %737  ;;  %8541 = vmatpush1.msk.msra.mxu0 %vm114_vm1, %v548_v23  ;;  %8544 = vmatprep.subr.msk.mxu1 %vm114_vm1, %v551_v26  ;;  %v736_v29 = vpop.permute.xlu0 %735  ;;  %v8560_v26 = vld [vmem:[%s11030_s3 + $0x40] sm:$0xff] }
  0x8d   :  { %v746_v31 = vsel %vm743_vm5, %v736_v29, %v738_v28  ;;  %8545 = vmatpush1.msk.msra.mxu1 %vm114_vm1, %v550_v24  ;;  %11090 = vst [vmem:[#allocation5_spill] sm:$0xff] %v9471_v56  ;;  %11091 = vst [vmem:[#allocation6_spill] sm:$0xff] %v9484_v5 }
  0x8e   :  { %v772_v34 = vmul.f32 %v9387_v7, %v746_v31  ;;  %8542 = vmatmul.mubr.msk.f32.vlgmr.msra.gmra.mrb[0].mxu0 %vm107_vm3, %v8538_v27  ;;  %8546 = vmatmul.mubr.msk.f32.vlgmr.msra.gmra.mrb[0].mxu1 %vm107_vm3, %v8538_v27  ;;  %v8581_v27 = vld [vmem:[%s11029_s1 + $0x6] ss:$8 sm:$0xf] }
  0x8f   :  { %643 = vmatprep.mubr.f32.mxu0 %v11041_v2  ;;  %720 = vmatprep.mubr.f32.mxu1 %v11041_v2  ;;  %v9515_v31 = vrot.slane %v8581_v27, %v9260_v12 }
  0x90   :  { %v742_v37 = vpop.permute.xlu1 %741  ;;  %v740_v39 = vpop.permute.xlu0 %739  ;;  %8551 = vmatprep.subr.msk.mxu0 %vm114_vm1, %v772_v34  ;;  %v9521_v34 = vrot.slane %v8581_v27, %v9258_v11 }
  0x91   :  { %v747_v43 = vsel %vm743_vm5, %v742_v37, %v736_v29  ;;  %v744_v44 = vsel %vm743_vm5, %v740_v39, %v742_v37  ;;  %v745_v45 = vsel %vm743_vm5, %v738_v28, %v740_v39  ;;  %11092 = vst [vmem:[#allocation7_spill] sm:$0xff] %v9515_v31 }
  0x92   :  { %v771_v47 = vmul.f32 %v9422_v32, %v747_v43  ;;  %v773_v48 = vmul.f32 %v9429_v35, %v745_v45  ;;  %v774_v50 = vmul.f32 %v9432_v36, %v744_v44  ;;  %8543 = vmatmul.mubr.msk.f32.gmra.mrb[2].mxu0 %vm107_vm3, %v8539_v1  ;;  %8547 = vmatmul.mubr.msk.f32.gmra.mrb[2].mxu1 %vm107_vm3, %v8539_v1  ;;  %v8561_v1 = vld [vmem:[%s11030_s3 + $0x48] sm:$0xff] }
  0x93   :  { %860 = vmatprep.mubr.f32.mxu0 %v11041_v2  ;;  %937 = vmatprep.mubr.f32.mxu1 %v11041_v2  ;;  %11094 = vst [vmem:[#allocation9_spill] sm:$0xff] %v9521_v34 }
  0x94   :  { %8552 = vmatpush1.msk.msra.mxu0 %vm114_vm1, %v771_v47  ;;  %8555 = vmatprep.subr.msk.mxu1 %vm114_vm1, %v774_v50  ;;  %v1171_v52 = vpop.permute.xlu0 %1170  ;;  %v1173_v53 = vpop.permute.xlu1 %1172 }
  0x95   :  { %8556 = vmatpush1.msk.msra.mxu1 %vm114_vm1, %v773_v48  ;;  %8562 = vmatprep.subr.msk.mxu0 %vm114_vm1, %v992_v46  ;;  %v1181_v62 = vsel %vm1178_vm6, %v1171_v52, %v1173_v53 }
  0x96   :  { %8553 = vmatmul.mubr.msk.f32.vlgmr.msra.gmra.mrb[0].mxu0 %vm107_vm3, %v8549_v0  ;;  %8557 = vmatmul.mubr.msk.f32.vlgmr.msra.gmra.mrb[0].mxu1 %vm107_vm3, %v8549_v0  ;;  %v1206_v24 = vmul.f32 %v9474_v57, %v1181_v62  ;;  %v8571_v0 = vld [vmem:[%s11030_s3 + $0x50] sm:$0xff]  ;;  %v9564_v62 = vrot.slane %v8592_v51, %v9262_v13 }
  0x97   :  { %866 = vmatprep.mubr.f32.mxu0 %v11041_v2  ;;  %943 = vmatprep.mubr.f32.mxu1 %v11041_v2 }
  0x98   :  { %v1175_v4 = vpop.permute.xlu0 %1174  ;;  %v1177_v6 = vpop.permute.xlu1 %1176  ;;  %8566 = vmatprep.subr.msk.mxu1 %vm114_vm1, %v993_v54  ;;  %8563 = vmatpush1.msk.msra.mxu0 %vm114_vm1, %v985_v33  ;;  %v9518_v33 = vrot.slane %v8581_v27, %v9262_v13  ;;  %11097 = vst [vmem:[#allocation12_spill] sm:$0xff] %v9564_v62 }
  0x99   :  { %v1180_v15 = vsel %vm1178_vm6, %v1173_v53, %v1175_v4  ;;  %v1179_v16 = vsel %vm1178_vm6, %v1175_v4, %v1177_v6  ;;  %v1182_v17 = vsel %vm1178_vm6, %v1177_v6, %v1171_v52  ;;  %8567 = vmatpush1.msk.msra.mxu1 %vm114_vm1, %v986_v42  ;;  %v9532_v42 = vrot.slane %v8581_v27, %v9264_v14  ;;  %v8572_v6 = vld [vmem:[%s11030_s3 + $0x58] sm:$0xff] }
  0x9a   :  { %8554 = vmatmul.mubr.msk.f32.gmra.mrb[2].mxu0 %vm107_vm3, %v8550_v59  ;;  %8558 = vmatmul.mubr.msk.f32.gmra.mrb[2].mxu1 %vm107_vm3, %v8550_v59  ;;  %v1207_v18 = vmul.f32 %v9468_v55, %v1180_v15  ;;  %v1209_v23 = vmul.f32 %v9471_v56, %v1182_v17  ;;  %v1208_v28 = vmul.f32 %v9484_v5, %v1179_v16 }
  0x9b   :  { %1072 = vmatprep.mubr.f32.mxu0 %v11041_v2  ;;  %1149 = vmatprep.mubr.f32.mxu1 %v11041_v2  ;;  %11093 = vst [vmem:[#allocation8_spill] sm:$0xff] %v9518_v33  ;;  %11095 = vst [vmem:[#allocation10_spill] sm:$0xff] %v9532_v42  ;;  %v9561_v59 = vrot.slane %v8592_v51, %v9260_v12  ;;  %v9567_v4 = vrot.slane %v8592_v51, %v9258_v11 }
  0x9c   :  { %8573 = vmatprep.subr.msk.mxu0 %vm114_vm1, %v1207_v18  ;;  %v1394_v29 = vpop.permute.xlu0 %1393  ;;  %v1396_v30 = vpop.permute.xlu1 %1395  ;;  %8577 = vmatprep.subr.msk.mxu1 %vm114_vm1, %v1209_v23  ;;  %v9578_v17 = vrot.slane %v8592_v51, %v9264_v14 }
  0x9d   :  { %v1404_v37 = vsel %vm1401_vm7, %v1394_v29, %v1396_v30  ;;  %11096 = vst [vmem:[#allocation11_spill] sm:$0xff] %v9561_v59  ;;  %11098 = vst [vmem:[#allocation13_spill] sm:$0xff] %v9567_v4 }
  0x9e   :  { %8564 = vmatmul.mubr.msk.f32.vlgmr.msra.gmra.mrb[0].mxu0 %vm107_vm3, %v8560_v26  ;;  %8568 = vmatmul.mubr.msk.f32.vlgmr.msra.gmra.mrb[0].mxu1 %vm107_vm3, %v8560_v26  ;;  %v1429_v50 = vmul.f32 %v9521_v34, %v1404_v37  ;;  %11099 = vst [vmem:[#allocation14_spill] sm:$0xff] %v9578_v17 }
  0x9f   :  { %8574 = vmatpush1.msk.msra.mxu0 %vm114_vm1, %v1206_v24  ;;  %1078 = vmatprep.mubr.f32.mxu0 %v11041_v2 }
  0xa0   :  { %1155 = vmatprep.mubr.f32.mxu1 %v11041_v2  ;;  %v1398_v39 = vpop.permute.xlu0 %1397  ;;  %v1400_v43 = vpop.permute.xlu1 %1399  ;;  %8578 = vmatpush1.msk.msra.mxu1 %vm114_vm1, %v1208_v28 }
  0xa1   :  { %v1403_v44 = vsel %vm1401_vm7, %v1396_v30, %v1398_v39  ;;  %v1402_v45 = vsel %vm1401_vm7, %v1398_v39, %v1400_v43  ;;  %v1405_v46 = vsel %vm1401_vm7, %v1400_v43, %v1394_v29  ;;  %v8582_v30 = vld [vmem:[%s11030_s3 + $0x60] sm:$0xff] }
  0xa2   :  { %8565 = vmatmul.mubr.msk.f32.gmra.mrb[2].mxu0 %vm107_vm3, %v8561_v1  ;;  %8569 = vmatmul.mubr.msk.f32.gmra.mrb[2].mxu1 %vm107_vm3, %v8561_v1  ;;  %v1430_v47 = vmul.f32 %v9515_v31, %v1403_v44  ;;  %v1432_v48 = vmul.f32 %v9518_v33, %v1405_v46  ;;  %v1431_v52 = vmul.f32 %v9532_v42, %v1402_v45  ;;  %v8603_v1 = vld [vmem:[%s11029_s1 + $0x20] ss:$8 sm:$0xf] }
  0xa3   :  { %1295 = vmatprep.mubr.f32.mxu0 %v11041_v2  ;;  %1372 = vmatprep.mubr.f32.mxu1 %v11041_v2  ;;  %v9607_v44 = vrot.slane %v8603_v1, %v9260_v12  ;;  %v9610_v45 = vrot.slane %v8603_v1, %v9262_v13  ;;  %v9613_v46 = vrot.slane %v8603_v1, %v9258_v11 }
  0xa4   :  { %8584 = vmatprep.subr.msk.mxu0 %vm114_vm1, %v1430_v47  ;;  %v1617_v53 = vpop.permute.xlu0 %1616  ;;  %v1619_v54 = vpop.permute.xlu1 %1618  ;;  %8588 = vmatprep.subr.msk.mxu1 %vm114_vm1, %v1432_v48  ;;  %v8583_v47 = vld [vmem:[%s11030_s3 + $0x68] sm:$0xff]  ;;  %v9624_v13 = vrot.slane %v8603_v1, %v9264_v14 }
  0xa5   :  { %v1627_v15 = vsel %vm1624_vm8, %v1617_v53, %v1619_v54  ;;  %11100 = vst [vmem:[#allocation15_spill] sm:$0xff] %v9607_v44  ;;  %11101 = vst [vmem:[#allocation16_spill] sm:$0xff] %v9610_v45 }
  0xa6   :  { %8575 = vmatmul.mubr.msk.f32.vlgmr.msra.gmra.mrb[0].mxu0 %vm107_vm3, %v8571_v0  ;;  %8579 = vmatmul.mubr.msk.f32.vlgmr.msra.gmra.mrb[0].mxu1 %vm107_vm3, %v8571_v0  ;;  %v1652_v29 = vmul.f32 %v9567_v4, %v1627_v15  ;;  %11102 = vst [vmem:[#allocation17_spill] sm:$0xff] %v9613_v46  ;;  %11103 = vst [vmem:[#allocation18_spill] sm:$0xff] %v9624_v13  ;;  %v8593_v15 = vld [vmem:[%s11030_s3 + $0x70] sm:$0xff] }
  0xa7   :  { %8585 = vmatpush1.msk.msra.mxu0 %vm114_vm1, %v1429_v50  ;;  %1301 = vmatprep.mubr.f32.mxu0 %v11041_v2 }
  0xa8   :  { %1378 = vmatprep.mubr.f32.mxu1 %v11041_v2  ;;  %v1621_v16 = vpop.permute.xlu0 %1620  ;;  %v1623_v18 = vpop.permute.xlu1 %1622  ;;  %8589 = vmatpush1.msk.msra.mxu1 %vm114_vm1, %v1431_v52 }
  0xa9   :  { %v1626_v23 = vsel %vm1624_vm8, %v1619_v54, %v1621_v16  ;;  %v1625_v24 = vsel %vm1624_vm8, %v1621_v16, %v1623_v18  ;;  %v1628_v26 = vsel %vm1624_vm8, %v1623_v18, %v1617_v53  ;;  %v8594_v18 = vld [vmem:[%s11030_s3 + $0x78] sm:$0xff] }
  0xaa   :  { %8576 = vmatmul.mubr.msk.f32.gmra.mrb[2].mxu0 %vm107_vm3, %v8572_v6  ;;  %8580 = vmatmul.mubr.msk.f32.gmra.mrb[2].mxu1 %vm107_vm3, %v8572_v6  ;;  %v1653_v27 = vmul.f32 %v9561_v59, %v1626_v23  ;;  %v1655_v28 = vmul.f32 %v9564_v62, %v1628_v26  ;;  %v1654_v37 = vmul.f32 %v9578_v17, %v1625_v24  ;;  %v8604_v23 = vld [vmem:[%s11030_s3 + $0x80] sm:$0xff]  ;;  %v8605_v24 = vld [vmem:[%s11030_s3 + $0x88] sm:$0xff] }
  0xab   :  { %1518 = vmatprep.mubr.f32.mxu0 %v11041_v2  ;;  %1595 = vmatprep.mubr.f32.mxu1 %v11041_v2 }
  0xac   :  { %8595 = vmatprep.subr.msk.mxu0 %vm114_vm1, %v1653_v27  ;;  %v1840_v39 = vpop.permute.xlu0 %1839  ;;  %v1842_v43 = vpop.permute.xlu1 %1841  ;;  %8599 = vmatprep.subr.msk.mxu1 %vm114_vm1, %v1655_v28 }
  0xad   :  { %v1850_v48 = vsel %vm1847_vm9, %v1840_v39, %v1842_v43 }
  0xae   :  { %8586 = vmatmul.mubr.msk.f32.vlgmr.msra.gmra.mrb[0].mxu0 %vm107_vm3, %v8582_v30  ;;  %8590 = vmatmul.mubr.msk.f32.vlgmr.msra.gmra.mrb[0].mxu1 %vm107_vm3, %v8582_v30  ;;  %v1875_v6 = vmul.f32 %v9613_v46, %v1850_v48 }
  0xaf   :  { %8596 = vmatpush1.msk.msra.mxu0 %vm114_vm1, %v1652_v29  ;;  %1524 = vmatprep.mubr.f32.mxu0 %v11041_v2 }
  0xb0   :  { %1601 = vmatprep.mubr.f32.mxu1 %v11041_v2  ;;  %v1844_v50 = vpop.permute.xlu0 %1843  ;;  %v1846_v0 = vpop.permute.xlu1 %1845  ;;  %8600 = vmatpush1.msk.msra.mxu1 %vm114_vm1, %v1654_v37 }
  0xb1   :  { %v1849_v51 = vsel %vm1847_vm9, %v1842_v43, %v1844_v50  ;;  %v1848_v52 = vsel %vm1847_vm9, %v1844_v50, %v1846_v0  ;;  %v1851_v53 = vsel %vm1847_vm9, %v1846_v0, %v1840_v39 }
  0xb2   :  { %8587 = vmatmul.mubr.msk.f32.gmra.mrb[2].mxu0 %vm107_vm3, %v8583_v47  ;;  %8591 = vmatmul.mubr.msk.f32.gmra.mrb[2].mxu1 %vm107_vm3, %v8583_v47  ;;  %v1876_v54 = vmul.f32 %v9607_v44, %v1849_v51  ;;  %v1878_v14 = vmul.f32 %v9610_v45, %v1851_v53  ;;  %v1877_v16 = vmul.f32 %v9624_v13, %v1848_v52 }
  0xb3   :  { %1741 = vmatprep.mubr.f32.mxu0 %v11041_v2  ;;  %1818 = vmatprep.mubr.f32.mxu1 %v11041_v2 }
  0xb4   :  { %8606 = vmatprep.subr.msk.mxu0 %vm114_vm1, %v1876_v54  ;;  %8610 = vmatprep.subr.msk.mxu1 %vm114_vm1, %v1878_v14 }
  0xb6   :  { %8597 = vmatmul.mubr.msk.f32.vlgmr.msra.gmra.mrb[0].mxu0 %vm107_vm3, %v8593_v15  ;;  %8601 = vmatmul.mubr.msk.f32.vlgmr.msra.gmra.mrb[0].mxu1 %vm107_vm3, %v8593_v15 }
  0xb7   :  { %8607 = vmatpush1.msk.msra.mxu0 %vm114_vm1, %v1875_v6  ;;  %1747 = vmatprep.mubr.f32.mxu0 %v11041_v2 }
  0xb8   :  { %1824 = vmatprep.mubr.f32.mxu1 %v11041_v2  ;;  %8611 = vmatpush1.msk.msra.mxu1 %vm114_vm1, %v1877_v16 }
  0xba   :  { %8598 = vmatmul.mubr.msk.f32.gmra.mrb[2].mxu0 %vm107_vm3, %v8594_v18  ;;  %8602 = vmatmul.mubr.msk.f32.gmra.mrb[2].mxu1 %vm107_vm3, %v8594_v18 }
  0xbb   :  { %1964 = vmatprep.mubr.f32.mxu0 %v11041_v2  ;;  %2041 = vmatprep.mubr.f32.mxu1 %v11041_v2 }
  0xbe   :  { %8608 = vmatmul.mubr.msk.f32.vlgmr.msra.gmra.mrb[0].mxu0 %vm107_vm3, %v8604_v23  ;;  %8612 = vmatmul.mubr.msk.f32.vlgmr.msra.gmra.mrb[0].mxu1 %vm107_vm3, %v8604_v23 }
  0xbf   :  { %1970 = vmatprep.mubr.f32.mxu0 %v11041_v2  ;;  %2047 = vmatprep.mubr.f32.mxu1 %v11041_v2 }
  0xc1   :  { %v51_v26 = vpop.permute.xlu0 %50  ;;  %v56_v37 = vpop.permute.xlu1 %55 }
  0xc2   :  { %8609 = vmatmul.mubr.msk.f32.gmra.mrb[2].mxu0 %vm107_vm3, %v8605_v24  ;;  %8613 = vmatmul.mubr.msk.f32.gmra.mrb[2].mxu1 %vm107_vm3, %v8605_v24 }
  0xc3   :  { %2177 = vmatprep.mubr.f32.mxu0 %v11041_v2  ;;  %2248 = vmatprep.mubr.f32.mxu1 %v11041_v2 }
 0x191   :  { %v1966_v27 = vpop.f32.mrb[0].mxu0  ;;  %v2043_v28 = vpop.f32.mrb[0].mxu1 }
 0x192   :  { %v8864_v29 = vadd.f32 %v1966_v27, %v51_v26  ;;  %v1968_v30 = vpop.f32.mrb[1].mxu0  ;;  %v2045_v1 = vpop.f32.mrb[1].mxu1  ;;  %v8868_v39 = vadd.f32 %v2043_v28, %v51_v26 }
 0x193   :  { %v8865_v6 = vadd.f32 %v1968_v30, %v51_v26  ;;  %v8869_v16 = vadd.f32 %v2045_v1, %v51_v26 }
 0x194   :  { %v9673_v43 = vmax.f32 %v8864_v29, 0.0  ;;  %v9677_v52 = vmax.f32 %v8868_v39, 0.0  ;;  %v2070_v39 = vld [vmem:[%s11031_s9] sm:$0xff] }
 0x195   :  { %v1972_v47 = vpop.f32.mrb[2].mxu0  ;;  %v2049_v48 = vpop.f32.mrb[2].mxu1  ;;  %v9735_v15 = vmax.f32 %v8865_v6, 0.0  ;;  %v9741_v23 = vmax.f32 %v8869_v16, 0.0 }
 0x196   :  { %v8866_v50 = vadd.f32 %v1972_v47, %v56_v37  ;;  %v1974_v0 = vpop.f32.mrb[3].mxu0  ;;  %v2051_v51 = vpop.f32.mrb[3].mxu1  ;;  %2076 = vrot.lane.b32.xlu1 %v9673_v43, %s9107_s29  ;;  %v8870_v54 = vadd.f32 %v2049_v48, %v56_v37 }
 0x197   :  { %v8867_v18 = vadd.f32 %v1974_v0, %v56_v37  ;;  %v8871_v27 = vadd.f32 %v2051_v51, %v56_v37 }
 0x198   :  { %v9679_v53 = vmax.f32 %v8866_v50, 0.0  ;;  %v9685_v14 = vmax.f32 %v8870_v54, 0.0 }
 0x199   :  { %v9743_v24 = vmax.f32 %v8867_v18, 0.0  ;;  %v9749_v28 = vmax.f32 %v8871_v27, 0.0 }
 0x19a   :  { %2078 = vrot.lane.b32.xlu0 %v9679_v53, %s9107_s29  ;;  %2084 = vrot.lane.b32.xlu1 %v9677_v52, %s9107_s29 }
 0x19e   :  { %2086 = vrot.lane.b32.xlu0 %v9685_v14, %s9107_s29  ;;  %2259 = vrot.lane.b32.xlu1 %v9673_v43, %s9108_s0 }
 0x1a2   :  { %2261 = vrot.lane.b32.xlu0 %v9679_v53, %s9108_s0  ;;  %2267 = vrot.lane.b32.xlu1 %v9677_v52, %s9108_s0 }
 0x1a6   :  { %2269 = vrot.lane.b32.xlu0 %v9685_v14, %s9108_s0  ;;  %2442 = vrot.lane.b32.xlu1 %v9673_v43, %s9109_s30 }
 0x1aa   :  { %2444 = vrot.lane.b32.xlu0 %v9679_v53, %s9109_s30  ;;  %2450 = vrot.lane.b32.xlu1 %v9677_v52, %s9109_s30 }
 0x1ae   :  { %2452 = vrot.lane.b32.xlu0 %v9685_v14, %s9109_s30  ;;  %2625 = vrot.lane.b32.xlu1 %v9673_v43, %s9110_s14 }
 0x1b2   :  { %2627 = vrot.lane.b32.xlu0 %v9679_v53, %s9110_s14  ;;  %2633 = vrot.lane.b32.xlu1 %v9677_v52, %s9110_s14 }
 0x1b6   :  { %2635 = vrot.lane.b32.xlu0 %v9685_v14, %s9110_s14  ;;  %2967 = vrot.lane.b32.xlu1 %v9673_v43, %s9111_s15 }
 0x1ba   :  { %2969 = vrot.lane.b32.xlu0 %v9679_v53, %s9111_s15  ;;  %2975 = vrot.lane.b32.xlu1 %v9677_v52, %s9111_s15 }
 0x1be   :  { %2977 = vrot.lane.b32.xlu0 %v9685_v14, %s9111_s15  ;;  %3150 = vrot.lane.b32.xlu1 %v9673_v43, %s9112_s16 }
 0x1c2   :  { %3152 = vrot.lane.b32.xlu0 %v9679_v53, %s9112_s16  ;;  %3158 = vrot.lane.b32.xlu1 %v9677_v52, %s9112_s16 }
 0x1c6   :  { %3160 = vrot.lane.b32.xlu0 %v9685_v14, %s9112_s16  ;;  %3333 = vrot.lane.b32.xlu1 %v9673_v43, %s9113_s17 }
 0x1ca   :  { %3335 = vrot.lane.b32.xlu0 %v9679_v53, %s9113_s17  ;;  %3341 = vrot.lane.b32.xlu1 %v9677_v52, %s9113_s17 }
 0x1ce   :  { %3343 = vrot.lane.b32.xlu0 %v9685_v14, %s9113_s17  ;;  %2080 = vrot.lane.b32.xlu1 %v9735_v15, %s9107_s29 }
 0x1d2   :  { %2082 = vrot.lane.b32.xlu0 %v9743_v24, %s9107_s29  ;;  %2088 = vrot.lane.b32.xlu1 %v9741_v23, %s9107_s29 }
 0x1d6   :  { %2090 = vrot.lane.b32.xlu0 %v9749_v28, %s9107_s29  ;;  %2263 = vrot.lane.b32.xlu1 %v9735_v15, %s9108_s0 }
 0x1da   :  { %2265 = vrot.lane.b32.xlu0 %v9743_v24, %s9108_s0  ;;  %2271 = vrot.lane.b32.xlu1 %v9741_v23, %s9108_s0 }
 0x1de   :  { %2273 = vrot.lane.b32.xlu0 %v9749_v28, %s9108_s0  ;;  %2446 = vrot.lane.b32.xlu1 %v9735_v15, %s9109_s30 }
 0x1e2   :  { %2448 = vrot.lane.b32.xlu0 %v9743_v24, %s9109_s30  ;;  %2454 = vrot.lane.b32.xlu1 %v9741_v23, %s9109_s30 }
 0x1e6   :  { %2456 = vrot.lane.b32.xlu0 %v9749_v28, %s9109_s30  ;;  %2629 = vrot.lane.b32.xlu1 %v9735_v15, %s9110_s14 }
 0x1ea   :  { %2631 = vrot.lane.b32.xlu0 %v9743_v24, %s9110_s14  ;;  %2637 = vrot.lane.b32.xlu1 %v9741_v23, %s9110_s14 }
 0x1ee   :  { %2639 = vrot.lane.b32.xlu0 %v9749_v28, %s9110_s14  ;;  %3516 = vrot.lane.b32.xlu1 %v9673_v43, %s9114_s18 }
 0x1f2   :  { %3518 = vrot.lane.b32.xlu0 %v9679_v53, %s9114_s18  ;;  %2971 = vrot.lane.b32.xlu1 %v9735_v15, %s9111_s15 }
 0x1f6   :  { %3526 = vrot.lane.b32.xlu0 %v9685_v14, %s9114_s18  ;;  %2979 = vrot.lane.b32.xlu1 %v9741_v23, %s9111_s15 }
 0x1fa   :  { %2973 = vrot.lane.b32.xlu0 %v9743_v24, %s9111_s15  ;;  %3154 = vrot.lane.b32.xlu1 %v9735_v15, %s9112_s16 }
 0x1fe   :  { %2981 = vrot.lane.b32.xlu0 %v9749_v28, %s9111_s15  ;;  %3162 = vrot.lane.b32.xlu1 %v9741_v23, %s9112_s16 }
 0x202   :  { %3156 = vrot.lane.b32.xlu0 %v9743_v24, %s9112_s16  ;;  %3337 = vrot.lane.b32.xlu1 %v9735_v15, %s9113_s17 }
 0x206   :  { %3164 = vrot.lane.b32.xlu0 %v9749_v28, %s9112_s16  ;;  %3345 = vrot.lane.b32.xlu1 %v9741_v23, %s9113_s17 }
 0x208   :  { %v2077_v26 = vpop.permute.xlu1 %2076 }
 0x20a   :  { %3339 = vrot.lane.b32.xlu0 %v9743_v24, %s9113_s17  ;;  %3520 = vrot.lane.b32.xlu1 %v9735_v15, %s9114_s18 }
 0x20c   :  { %v2085_v29 = vpop.permute.xlu1 %2084  ;;  %v2079_v30 = vpop.permute.xlu0 %2078 }
 0x20e   :  { %3347 = vrot.lane.b32.xlu0 %v9749_v28, %s9113_s17  ;;  %3524 = vrot.lane.b32.xlu1 %v9677_v52, %s9114_s18 }
 0x210   :  { %v9811_v1 = vpop.permute.xlu1 %2259  ;;  %v2087_v37 = vpop.permute.xlu0 %2086 }
 0x212   :  { %3522 = vrot.lane.b32.xlu0 %v9743_v24, %s9114_s18  ;;  %3528 = vrot.lane.b32.xlu1 %v9741_v23, %s9114_s18 }
 0x214   :  { %v9820_v47 = vpop.permute.xlu1 %2267  ;;  %v9822_v48 = vpop.permute.xlu0 %2261 }
 0x216   :  { %3530 = vrot.lane.b32.xlu0 %v9749_v28, %s9114_s18  ;;  %2073 = vperm.xlu1 %9091, %v2070_v39  }
 0x218   :  { %v9826_v50 = vpop.permute.xlu1 %2442  ;;  %v9828_v0 = vpop.permute.xlu0 %2269 }
 0x21c   :  { %v9830_v51 = vpop.permute.xlu1 %2450  ;;  %v9832_v54 = vpop.permute.xlu0 %2444 }
 0x220   :  { %v9834_v6 = vpop.permute.xlu1 %2625  ;;  %v9836_v16 = vpop.permute.xlu0 %2452 }
 0x224   :  { %v9838_v18 = vpop.permute.xlu1 %2633  ;;  %v9840_v27 = vpop.permute.xlu0 %2627 }
 0x228   :  { %v9842_v2 = vpop.permute.xlu1 %2967  ;;  %v9844_v12 = vpop.permute.xlu0 %2635 }
 0x22c   :  { %v9846_v39 = vpop.permute.xlu1 %2975  ;;  %v9848_v11 = vpop.permute.xlu0 %2969 }
 0x22d   :  { %11104 = vst [vmem:[#allocation19_spill] sm:$0xff] %v9848_v11 }
 0x230   :  { %v9850_v45 = vpop.permute.xlu1 %3150  ;;  %v9852_v13 = vpop.permute.xlu0 %2977 }
 0x231   :  { %11105 = vst [vmem:[#allocation20_spill] sm:$0xff] %v9850_v45  ;;  %11106 = vst [vmem:[#allocation21_spill] sm:$0xff] %v9852_v13 }
 0x234   :  { %v9854_v44 = vpop.permute.xlu1 %3158  ;;  %v9856_v46 = vpop.permute.xlu0 %3152 }
 0x235   :  { %11107 = vst [vmem:[#allocation22_spill] sm:$0xff] %v9854_v44  ;;  %11108 = vst [vmem:[#allocation23_spill] sm:$0xff] %v9856_v46 }
 0x238   :  { %v9858_v62 = vpop.permute.xlu1 %3333  ;;  %v9860_v17 = vpop.permute.xlu0 %3160 }
 0x239   :  { %11109 = vst [vmem:[#allocation24_spill] sm:$0xff] %v9858_v62  ;;  %11110 = vst [vmem:[#allocation25_spill] sm:$0xff] %v9860_v17 }
 0x23c   :  { %v9862_v59 = vpop.permute.xlu1 %3341  ;;  %v9864_v4 = vpop.permute.xlu0 %3335 }
 0x23d   :  { %11111 = vst [vmem:[#allocation26_spill] sm:$0xff] %v9862_v59  ;;  %11112 = vst [vmem:[#allocation27_spill] sm:$0xff] %v9864_v4 }
 0x240   :  { %v2081_v33 = vpop.permute.xlu1 %2080  ;;  %v9866_v42 = vpop.permute.xlu0 %3343 }
 0x241   :  { %11113 = vst [vmem:[#allocation28_spill] sm:$0xff] %v9866_v42  ;;  %v2096_v31 = vsel %vm74_vm0, %v2077_v26, %v2081_v33  ;;  %v2094_v11 = vsel %vm74_vm0, %v2081_v33, %v2085_v29 }
 0x242   :  { %v2101_v46 = vmul.f32 %v2096_v31, %v9277_v20 }
 0x244   :  { %v2089_v34 = vpop.permute.xlu1 %2088  ;;  %v2083_v45 = vpop.permute.xlu0 %2082 }
 0x245   :  { %v2097_v44 = vsel %vm74_vm0, %v2079_v30, %v2083_v45  ;;  %v2098_v62 = vsel %vm74_vm0, %v2089_v34, %v2077_v26  ;;  %v2092_v4 = vsel %vm74_vm0, %v2085_v29, %v2089_v34  ;;  %v2095_v42 = vsel %vm74_vm0, %v2083_v45, %v2087_v37 }
 0x246   :  { %v2105_v59 = vmul.f32 %v2097_v44, %v9277_v20  ;;  %v2100_v13 = vmul.f32 %v2098_v62, %v9280_v21  ;;  %v2103_v26 = vmul.f32 %v2092_v4, %v9274_v19  ;;  %v2106_v34 = vmul.f32 %v2095_v42, %v9283_v22 }
 0x248   :  { %v2264_v17 = vpop.permute.xlu1 %2263  ;;  %v2091_v56 = vpop.permute.xlu0 %2090  ;;  %v8792_v5 = vpack.c.bf16 %v2105_v59, %v2101_v46  ;;  %v2102_v59 = vmul.f32 %v2094_v11, %v9283_v22  ;;  %v2108_v11 = vld [vmem:[%s11032_s4] sm:$0xff] }
 0x249   :  { %v2093_v31 = vsel %vm74_vm0, %v2087_v37, %v2091_v56  ;;  %v2099_v44 = vsel %vm74_vm0, %v2091_v56, %v2079_v30  ;;  %v2279_v33 = vsel %vm297_vm2, %v9811_v1, %v2264_v17 }
 0x24a   :  { %v2104_v45 = vmul.f32 %v2099_v44, %v9280_v21  ;;  %v2107_v20 = vmul.f32 %v2093_v31, %v9274_v19  ;;  %8793 = vmatprep.subr.bf16.mxu0 %v8792_v5  ;;  %v8798_v42 = vpack.c.bf16 %v2106_v34, %v2102_v59  ;;  %v2284_v4 = vmul.f32 %v2279_v33, %v9287_v25 }
 0x24c   :  { %v8794_v62 = vpack.c.bf16 %v2104_v45, %v2100_v13  ;;  %v2272_v46 = vpop.permute.xlu1 %2271  ;;  %v2266_v29 = vpop.permute.xlu0 %2265  ;;  %v8796_v37 = vpack.c.bf16 %v2107_v20, %v2103_v26  ;;  %v2277_v26 = vsel %vm297_vm2, %v2264_v17, %v9820_v47 }
 0x24d   :  { %v2280_v56 = vsel %vm297_vm2, %v9822_v48, %v2266_v29  ;;  %v2281_v5 = vsel %vm297_vm2, %v2272_v46, %v9811_v1  ;;  %v2275_v20 = vsel %vm297_vm2, %v9820_v47, %v2272_v46  ;;  %v2278_v13 = vsel %vm297_vm2, %v2266_v29, %v9828_v0 }
 0x24e   :  { %v2288_v30 = vmul.f32 %v2280_v56, %v9287_v25  ;;  %8795 = vmatpush1.bf16.msra.mxu0 %v8794_v62  ;;  %8797 = vmatprep.subr.bf16.mxu1 %v8796_v37  ;;  %v2283_v34 = vmul.f32 %v2281_v5, %v9311_v38  ;;  %v2286_v59 = vmul.f32 %v2275_v20, %v9320_v41 }
 0x24f   :  { %8799 = vmatpush1.bf16.msra.mxu1 %v8798_v42  ;;  %v2289_v62 = vmul.f32 %v2278_v13, %v9317_v40  ;;  %v8616_v13 = vld [vmem:[%s11032_s4 + $0x8] sm:$0xff] }
 0x250   :  { %v2447_v31 = vpop.permute.xlu1 %2446  ;;  %v2274_v44 = vpop.permute.xlu0 %2273  ;;  %v8800_v1 = vpack.c.bf16 %v2288_v30, %v2284_v4 }
 0x251   :  { %v2276_v45 = vsel %vm297_vm2, %v9828_v0, %v2274_v44  ;;  %v2282_v33 = vsel %vm297_vm2, %v2274_v44, %v9822_v48  ;;  %8614 = vmatmul.mubr.msk.f32.vlgmr.msra.gmra.mrb[4].mxu0 %vm2109_vm10, %v2108_v11  ;;  %v2462_v47 = vsel %vm520_vm4, %v9826_v50, %v2447_v31  ;;  %v11114_v0 = vmov 0.0  }
 0x252   :  { %v2287_v46 = vmul.f32 %v2282_v33, %v9311_v38  ;;  %v2290_v17 = vmul.f32 %v2276_v45, %v9320_v41  ;;  %8801 = vmatprep.subr.bf16.mxu0 %v8800_v1  ;;  %8615 = vmatmul.mubr.msk.f32.vlgmr.msra.gmra.mrb[4].mxu1 %vm2109_vm10, %v2108_v11  ;;  %v2285_v48 = vmul.f32 %v2277_v26, %v9317_v40 }
 0x253   :  { %2360 = vmatprep.mubr.f32.mxu0 %v11114_v0  ;;  %2431 = vmatprep.mubr.f32.mxu1 %v11114_v0  ;;  %v2467_v30 = vmul.f32 %v2462_v47, %v9338_v49  ;;  %v2460_v26 = vsel %vm520_vm4, %v2447_v31, %v9830_v51 }
 0x254   :  { %v8802_v29 = vpack.c.bf16 %v2287_v46, %v2283_v34  ;;  %v2455_v37 = vpop.permute.xlu1 %2454  ;;  %v2449_v56 = vpop.permute.xlu0 %2448  ;;  %v8804_v42 = vpack.c.bf16 %v2290_v17, %v2286_v59  ;;  %v8806_v5 = vpack.c.bf16 %v2289_v62, %v2285_v48  ;;  %v2468_v47 = vmul.f32 %v2460_v26, %v9375_v63 }
 0x255   :  { %v2463_v4 = vsel %vm520_vm4, %v9832_v54, %v2449_v56  ;;  %v2461_v11 = vsel %vm520_vm4, %v2449_v56, %v9836_v16  ;;  %v2458_v44 = vsel %vm520_vm4, %v9830_v51, %v2455_v37  ;;  %v2464_v1 = vsel %vm520_vm4, %v2455_v37, %v9826_v50 }
 0x256   :  { %v2471_v20 = vmul.f32 %v2463_v4, %v9338_v49  ;;  %8803 = vmatpush1.bf16.msra.mxu0 %v8802_v29  ;;  %8805 = vmatprep.subr.bf16.mxu1 %v8804_v42  ;;  %v2472_v59 = vmul.f32 %v2461_v11, %v9375_v63  ;;  %v2466_v50 = vmul.f32 %v2464_v1, %v9360_v58 }
 0x257   :  { %8807 = vmatpush1.bf16.msra.mxu1 %v8806_v5  ;;  %v2469_v51 = vmul.f32 %v2458_v44, %v9378_v3 }
 0x258   :  { %v2630_v34 = vpop.permute.xlu1 %2629  ;;  %v2457_v45 = vpop.permute.xlu0 %2456  ;;  %v8808_v33 = vpack.c.bf16 %v2471_v20, %v2467_v30  ;;  %v8814_v56 = vpack.c.bf16 %v2472_v59, %v2468_v47  ;;  %v8619_v20 = vld [vmem:[%s11032_s4 + $0x10] sm:$0xff]  ;;  %v2811_v47 = vmul.f32 %v9741_v23, %v9393_v9  ;;  %v2814_v23 = vmul.f32 %v9685_v14, %v9390_v8 }
 0x259   :  { %v2459_v62 = vsel %vm520_vm4, %v9836_v16, %v2457_v45  ;;  %v2465_v46 = vsel %vm520_vm4, %v2457_v45, %v9832_v54  ;;  %8617 = vmatmul.mubr.msk.f32.vlgmr.msra.gmra.mrb[4].mxu0 %vm2109_vm10, %v8616_v13  ;;  %v2645_v16 = vsel %vm743_vm5, %v9834_v6, %v2630_v34  ;;  %v2813_v45 = vmul.f32 %v9743_v24, %v9369_v61 }
 0x25a   :  { %v2470_v31 = vmul.f32 %v2465_v46, %v9360_v58  ;;  %v2473_v17 = vmul.f32 %v2459_v62, %v9378_v3  ;;  %8809 = vmatprep.subr.bf16.mxu0 %v8808_v33  ;;  %8618 = vmatmul.mubr.msk.f32.vlgmr.msra.gmra.mrb[4].mxu1 %vm2109_vm10, %v8616_v13  ;;  %v2650_v4 = vmul.f32 %v2645_v16, %v9387_v7 }
 0x25b   :  { %2543 = vmatprep.mubr.f32.mxu0 %v11114_v0  ;;  %2614 = vmatprep.mubr.f32.mxu1 %v11114_v0  ;;  %v2815_v33 = vmul.f32 %v9749_v28, %v9393_v9  ;;  %v2812_v16 = vmul.f32 %v9679_v53, %v9366_v60 }
 0x25c   :  { %v8810_v54 = vpack.c.bf16 %v2470_v31, %v2466_v50  ;;  %v2638_v48 = vpop.permute.xlu1 %2637  ;;  %v2632_v29 = vpop.permute.xlu0 %2631  ;;  %v8812_v37 = vpack.c.bf16 %v2473_v17, %v2469_v51 }
 0x25d   :  { %v2646_v42 = vsel %vm743_vm5, %v9840_v27, %v2632_v29  ;;  %v2647_v5 = vsel %vm743_vm5, %v2638_v48, %v9834_v6  ;;  %v2644_v30 = vsel %vm743_vm5, %v2632_v29, %v9844_v12  ;;  %v2641_v13 = vsel %vm743_vm5, %v9838_v18, %v2638_v48 }
 0x25e   :  { %v2654_v11 = vmul.f32 %v2646_v42, %v9387_v7  ;;  %8811 = vmatpush1.bf16.msra.mxu0 %v8810_v54  ;;  %8813 = vmatprep.subr.bf16.mxu1 %v8812_v37  ;;  %v2643_v6 = vsel %vm743_vm5, %v2630_v34, %v9838_v18  ;;  %v2649_v59 = vmul.f32 %v2647_v5, %v9422_v32 }
 0x25f   :  { %8815 = vmatpush1.bf16.msra.mxu1 %v8814_v56  ;;  %v2655_v62 = vmul.f32 %v2644_v30, %v9429_v35  ;;  %v2652_v34 = vmul.f32 %v2641_v13, %v9432_v36  ;;  %v2651_v50 = vmul.f32 %v2643_v6, %v9429_v35  ;;  %v8828_v29 = vpack.c.bf16 %v2815_v33, %v2811_v47  ;;  %v11115_v13 = vld [vmem:[#allocation21_spill] sm:$0xff] }
 0x260   :  { %v9993_v44 = vpop.permute.xlu1 %3516  ;;  %v2640_v1 = vpop.permute.xlu0 %2639  ;;  %v8816_v26 = vpack.c.bf16 %v2654_v11, %v2650_v4  ;;  %v2808_v37 = vmul.f32 %v9673_v43, %v9366_v60  ;;  %v2810_v4 = vmul.f32 %v9677_v52, %v9390_v8 }
 0x261   :  { %v2642_v46 = vsel %vm743_vm5, %v9844_v12, %v2640_v1  ;;  %v2648_v18 = vsel %vm743_vm5, %v2640_v1, %v9840_v27  ;;  %8620 = vmatmul.mubr.msk.f32.vlgmr.msra.gmra.mrb[4].mxu0 %vm2109_vm10, %v8619_v20  ;;  %v2809_v12 = vmul.f32 %v9735_v15, %v9369_v61  ;;  %v8822_v54 = vpack.c.bf16 %v2655_v62, %v2651_v50  ;;  %v8622_v15 = vld [vmem:[%s11032_s4 + $0x18] sm:$0xff]  ;;  %v11116_v1 = vld [vmem:[#allocation19_spill] sm:$0xff]  ;;  %v11117_v50 = vld [vmem:[#allocation6_spill] sm:$0xff] }
 0x262   :  { %v2653_v24 = vmul.f32 %v2648_v18, %v9422_v32  ;;  %v2656_v28 = vmul.f32 %v2642_v46, %v9432_v36  ;;  %8817 = vmatprep.subr.bf16.mxu0 %v8816_v26  ;;  %2726 = vmatprep.mubr.f32.mxu0 %v11114_v0  ;;  %v8826_v42 = vpack.c.bf16 %v2812_v16, %v2808_v37  ;;  %v8625_v46 = vld [vmem:[%s11032_s4 + $0x20] sm:$0xff]  ;;  %v11120_v16 = vld [vmem:[#allocation20_spill] sm:$0xff] }
 0x263   :  { %8621 = vmatmul.mubr.msk.f32.vlgmr.msra.gmra.mrb[4].mxu1 %vm2109_vm10, %v8619_v20  ;;  %v8824_v48 = vpack.c.bf16 %v2813_v45, %v2809_v12  ;;  %v8830_v14 = vpack.c.bf16 %v2814_v23, %v2810_v4 }
 0x264   :  { %v8818_v51 = vpack.c.bf16 %v2653_v24, %v2649_v59  ;;  %v2972_v27 = vpop.permute.xlu1 %2971  ;;  %v10016_v31 = vpop.permute.xlu0 %3518  ;;  %v8820_v17 = vpack.c.bf16 %v2656_v28, %v2652_v34  ;;  %2797 = vmatprep.mubr.f32.mxu1 %v11114_v0 }
 0x265   :  { %v2985_v5 = vsel %vm1178_vm6, %v2972_v27, %v9846_v39  ;;  %v2987_v43 = vsel %vm1178_vm6, %v9842_v2, %v2972_v27 }
 0x266   :  { %8819 = vmatpush1.bf16.msra.mxu0 %v8818_v51  ;;  %8821 = vmatprep.subr.bf16.mxu1 %v8820_v17  ;;  %v2991_v52 = vmul.f32 %v2987_v43, %v9474_v57  ;;  %v2992_v20 = vmul.f32 %v2985_v5, %v9468_v55  ;;  %v11118_v51 = vld [vmem:[#allocation5_spill] sm:$0xff]  ;;  %v11119_v17 = vld [vmem:[#allocation22_spill] sm:$0xff]  ;;  %v11122_v5 = vld [vmem:[#allocation7_spill] sm:$0xff] }
 0x267   :  { %8823 = vmatpush1.bf16.msra.mxu1 %v8822_v54  ;;  %8825 = vmatprep.subr.bf16.mxu0 %v8824_v48 }
 0x268   :  { %v2980_v56 = vpop.permute.xlu1 %2979  ;;  %8829 = vmatprep.subr.bf16.mxu1 %v8828_v29  ;;  %v10030_v53 = vpop.permute.xlu0 %3526 }
 0x269   :  { %8623 = vmatmul.mubr.msk.f32.vlgmr.msra.gmra.mrb[4].mxu0 %vm2109_vm10, %v8622_v15  ;;  %v2983_v45 = vsel %vm1178_vm6, %v9846_v39, %v2980_v56  ;;  %v2989_v33 = vsel %vm1178_vm6, %v2980_v56, %v9842_v2 }
 0x26a   :  { %8827 = vmatpush1.bf16.msra.mxu0 %v8826_v42  ;;  %2885 = vmatprep.mubr.f32.mxu0 %v11114_v0  ;;  %v2993_v12 = vmul.f32 %v2983_v45, %v11117_v50  ;;  %v2994_v39 = vmul.f32 %v2989_v33, %v11118_v51  ;;  %v11121_v42 = vld [vmem:[#allocation9_spill] sm:$0xff] }
 0x26b   :  { %8624 = vmatmul.mubr.msk.f32.vlgmr.msra.gmra.mrb[4].mxu1 %vm2109_vm10, %v8622_v15 }
 0x26c   :  { %8831 = vmatpush1.bf16.msra.mxu1 %v8830_v14  ;;  %v3155_v30 = vpop.permute.xlu1 %3154  ;;  %v2974_v11 = vpop.permute.xlu0 %2973  ;;  %2956 = vmatprep.mubr.f32.mxu1 %v11114_v0  ;;  %v11123_v14 = vld [vmem:[#allocation25_spill] sm:$0xff] }
 0x26d   :  { %v2986_v6 = vsel %vm1178_vm6, %v2974_v11, %v11115_v13  ;;  %v2988_v26 = vsel %vm1178_vm6, %v11116_v1, %v2974_v11  ;;  %v3168_v47 = vsel %vm1401_vm7, %v3155_v30, %v11119_v17  ;;  %v3170_v54 = vsel %vm1401_vm7, %v11120_v16, %v3155_v30  ;;  %v11124_v11 = vld [vmem:[#allocation23_spill] sm:$0xff] }
 0x26e   :  { %v2995_v59 = vmul.f32 %v2988_v26, %v9474_v57  ;;  %v2996_v62 = vmul.f32 %v2986_v6, %v9468_v55  ;;  %v3174_v4 = vmul.f32 %v3170_v54, %v11121_v42  ;;  %v3175_v43 = vmul.f32 %v3168_v47, %v11122_v5  ;;  %v8628_v26 = vld [vmem:[%s11032_s4 + $0x28] sm:$0xff] }
 0x270   :  { %v8834_v18 = vpack.c.bf16 %v2995_v59, %v2991_v52  ;;  %v3163_v34 = vpop.permute.xlu1 %3162  ;;  %v2982_v24 = vpop.permute.xlu0 %2981  ;;  %v8832_v28 = vpack.c.bf16 %v2996_v62, %v2992_v20 }
 0x271   :  { %v2984_v2 = vsel %vm1178_vm6, %v11115_v13, %v2982_v24  ;;  %v2990_v27 = vsel %vm1178_vm6, %v2982_v24, %v11116_v1  ;;  %8626 = vmatmul.mubr.msk.f32.vlgmr.msra.gmra.mrb[4].mxu0 %vm2109_vm10, %v8625_v46  ;;  %v3166_v20 = vsel %vm1401_vm7, %v11119_v17, %v3163_v34  ;;  %v3172_v13 = vsel %vm1401_vm7, %v3163_v34, %v11120_v16  ;;  %v11126_v24 = vld [vmem:[#allocation8_spill] sm:$0xff] }
 0x272   :  { %v2997_v48 = vmul.f32 %v2984_v2, %v11117_v50  ;;  %v2998_v29 = vmul.f32 %v2990_v27, %v11118_v51  ;;  %8833 = vmatprep.subr.bf16.mxu0 %v8832_v28  ;;  %3068 = vmatprep.mubr.f32.mxu0 %v11114_v0  ;;  %v3177_v28 = vmul.f32 %v3172_v13, %v11126_v24  ;;  %v11128_v27 = vld [vmem:[#allocation24_spill] sm:$0xff] }
 0x273   :  { %8627 = vmatmul.mubr.msk.f32.vlgmr.msra.gmra.mrb[4].mxu1 %vm2109_vm10, %v8625_v46  ;;  %8835 = vmatpush1.bf16.msra.mxu0 %v8834_v18  ;;  %v11125_v46 = vld [vmem:[#allocation10_spill] sm:$0xff] }
 0x274   :  { %v8838_v15 = vpack.c.bf16 %v2997_v48, %v2993_v12  ;;  %v3338_v37 = vpop.permute.xlu1 %3337  ;;  %v3157_v23 = vpop.permute.xlu0 %3156  ;;  %v8836_v56 = vpack.c.bf16 %v2998_v29, %v2994_v39  ;;  %3139 = vmatprep.mubr.f32.mxu1 %v11114_v0  ;;  %v3176_v18 = vmul.f32 %v3166_v20, %v11125_v46  ;;  %v11127_v39 = vld [vmem:[#allocation26_spill] sm:$0xff] }
 0x275   :  { %v3169_v30 = vsel %vm1401_vm7, %v3157_v23, %v11123_v14  ;;  %v3171_v52 = vsel %vm1401_vm7, %v11124_v11, %v3157_v23  ;;  %v3351_v2 = vsel %vm1624_vm8, %v3338_v37, %v11127_v39  ;;  %v3353_v17 = vsel %vm1624_vm8, %v11128_v27, %v3338_v37  ;;  %v11129_v23 = vld [vmem:[#allocation13_spill] sm:$0xff] }
 0x276   :  { %v3178_v6 = vmul.f32 %v3171_v52, %v11121_v42  ;;  %v3179_v1 = vmul.f32 %v3169_v30, %v11122_v5  ;;  %8837 = vmatprep.subr.bf16.mxu1 %v8836_v56  ;;  %v3357_v56 = vmul.f32 %v3353_v17, %v11129_v23  ;;  %v11132_v30 = vld [vmem:[#allocation27_spill] sm:$0xff] }
 0x277   :  { %8839 = vmatpush1.bf16.msra.mxu1 %v8838_v15 }
 0x278   :  { %v8842_v45 = vpack.c.bf16 %v3178_v6, %v3174_v4  ;;  %v3346_v33 = vpop.permute.xlu1 %3345  ;;  %v3165_v59 = vpop.permute.xlu0 %3164  ;;  %v8840_v62 = vpack.c.bf16 %v3179_v1, %v3175_v43  ;;  %v11130_v4 = vld [vmem:[#allocation11_spill] sm:$0xff]  ;;  %v11131_v43 = vld [vmem:[#allocation28_spill] sm:$0xff] }
 0x279   :  { %v3167_v34 = vsel %vm1401_vm7, %v11123_v14, %v3165_v59  ;;  %v3173_v12 = vsel %vm1401_vm7, %v3165_v59, %v11124_v11  ;;  %8629 = vmatmul.mubr.msk.f32.vlgmr.msra.gmra.mrb[4].mxu0 %vm2109_vm10, %v8628_v26  ;;  %v3358_v37 = vmul.f32 %v3351_v2, %v11130_v4  ;;  %v3349_v52 = vsel %vm1624_vm8, %v11127_v39, %v3346_v33  ;;  %v8631_v1 = vld [vmem:[%s11032_s4 + $0x30] sm:$0xff] }
 0x27a   :  { %v3180_v47 = vmul.f32 %v3167_v34, %v11125_v46  ;;  %v3181_v16 = vmul.f32 %v3173_v12, %v11126_v24  ;;  %8841 = vmatprep.subr.bf16.mxu0 %v8840_v62  ;;  %3251 = vmatprep.mubr.f32.mxu0 %v11114_v0  ;;  %v3355_v20 = vsel %vm1624_vm8, %v3346_v33, %v11128_v27  ;;  %v11134_v34 = vld [vmem:[#allocation12_spill] sm:$0xff] }
 0x27b   :  { %8630 = vmatmul.mubr.msk.f32.vlgmr.msra.gmra.mrb[4].mxu1 %vm2109_vm10, %v8628_v26  ;;  %8843 = vmatpush1.bf16.msra.mxu0 %v8842_v45  ;;  %v3360_v12 = vmul.f32 %v3355_v20, %v11134_v34 }
 0x27c   :  { %v8846_v54 = vpack.c.bf16 %v3180_v47, %v3176_v18  ;;  %v3521_v48 = vpop.permute.xlu1 %3520  ;;  %v3340_v29 = vpop.permute.xlu0 %3339  ;;  %v8844_v15 = vpack.c.bf16 %v3181_v16, %v3177_v28  ;;  %3322 = vmatprep.mubr.f32.mxu1 %v11114_v0  ;;  %v11133_v18 = vld [vmem:[#allocation14_spill] sm:$0xff] }
 0x27d   :  { %v3352_v14 = vsel %vm1624_vm8, %v3340_v29, %v11131_v43  ;;  %v3354_v11 = vsel %vm1624_vm8, %v11132_v30, %v3340_v29  ;;  %v3359_v28 = vmul.f32 %v3349_v52, %v11133_v18  ;;  %v3536_v2 = vsel %vm1847_vm9, %v9993_v44, %v3521_v48 }
 0x27e   :  { %v3361_v13 = vmul.f32 %v3354_v11, %v11129_v23  ;;  %v3362_v6 = vmul.f32 %v3352_v14, %v11130_v4  ;;  %8845 = vmatprep.subr.bf16.mxu1 %v8844_v15 }
 0x27f   :  { %8847 = vmatpush1.bf16.msra.mxu1 %v8846_v54 }
 0x280   :  { %v8850_v26 = vpack.c.bf16 %v3361_v13, %v3357_v56  ;;  %v3525_v45 = vpop.permute.xlu1 %3524  ;;  %v3348_v59 = vpop.permute.xlu0 %3347  ;;  %v8848_v62 = vpack.c.bf16 %v3362_v6, %v3358_v37  ;;  %v11135_v56 = vld [vmem:[#allocation17_spill] sm:$0xff] }
 0x281   :  { %v3350_v33 = vsel %vm1624_vm8, %v11131_v43, %v3348_v59  ;;  %v3356_v39 = vsel %vm1624_vm8, %v3348_v59, %v11132_v30  ;;  %8632 = vmatmul.mubr.msk.f32.vlgmr.msra.gmra.mrb[4].mxu0 %vm2109_vm10, %v8631_v1  ;;  %v3534_v47 = vsel %vm1847_vm9, %v3521_v48, %v3525_v45  ;;  %v3540_v37 = vmul.f32 %v3536_v2, %v11135_v56  ;;  %v11136_v48 = vld [vmem:[#allocation15_spill] sm:$0xff]  ;;  %v8634_v13 = vld [vmem:[%s11032_s4 + $0x38] sm:$0xff] }
 0x282   :  { %v3363_v27 = vmul.f32 %v3350_v33, %v11133_v18  ;;  %v3364_v17 = vmul.f32 %v3356_v39, %v11134_v34  ;;  %8849 = vmatprep.subr.bf16.mxu0 %v8848_v62  ;;  %3434 = vmatprep.mubr.f32.mxu0 %v11114_v0  ;;  %v3541_v30 = vmul.f32 %v3534_v47, %v11136_v48  ;;  %v11137_v62 = vld [vmem:[#allocation18_spill] sm:$0xff]  ;;  %v11138_v33 = vld [vmem:[#allocation16_spill] sm:$0xff] }
 0x283   :  { %8633 = vmatmul.mubr.msk.f32.vlgmr.msra.gmra.mrb[4].mxu1 %vm2109_vm10, %v8631_v1  ;;  %8851 = vmatpush1.bf16.msra.mxu0 %v8850_v26 }
 0x284   :  { %v8854_v16 = vpack.c.bf16 %v3363_v27, %v3359_v28  ;;  %v3529_v54 = vpop.permute.xlu1 %3528  ;;  %v3523_v29 = vpop.permute.xlu0 %3522  ;;  %v8852_v15 = vpack.c.bf16 %v3364_v17, %v3360_v12  ;;  %3505 = vmatprep.mubr.f32.mxu1 %v11114_v0 }
 0x285   :  { %v3535_v43 = vsel %vm1847_vm9, %v3523_v29, %v10030_v53  ;;  %v3537_v14 = vsel %vm1847_vm9, %v10016_v31, %v3523_v29  ;;  %v3532_v11 = vsel %vm1847_vm9, %v3525_v45, %v3529_v54  ;;  %v3538_v6 = vsel %vm1847_vm9, %v3529_v54, %v9993_v44 }
 0x286   :  { %v3544_v52 = vmul.f32 %v3537_v14, %v11135_v56  ;;  %v3545_v20 = vmul.f32 %v3535_v43, %v11136_v48  ;;  %8853 = vmatprep.subr.bf16.mxu1 %v8852_v15  ;;  %v3542_v28 = vmul.f32 %v3532_v11, %v11137_v62  ;;  %v3543_v39 = vmul.f32 %v3538_v6, %v11138_v33 }
 0x287   :  { %8855 = vmatpush1.bf16.msra.mxu1 %v8854_v16 }
 0x288   :  { %v8858_v1 = vpack.c.bf16 %v3544_v52, %v3540_v37  ;;  %v3531_v26 = vpop.permute.xlu0 %3530  ;;  %v8856_v59 = vpack.c.bf16 %v3545_v20, %v3541_v30 }
 0x289   :  { %v3533_v45 = vsel %vm1847_vm9, %v10030_v53, %v3531_v26  ;;  %v3539_v12 = vsel %vm1847_vm9, %v3531_v26, %v10016_v31  ;;  %8635 = vmatmul.mubr.msk.f32.vlgmr.msra.gmra.mrb[4].mxu0 %vm2109_vm10, %v8634_v13  ;;  %v8637_v31 = vld [vmem:[%s11032_s4 + $0x40] sm:$0xff] }
 0x28a   :  { %v3546_v44 = vmul.f32 %v3533_v45, %v11137_v62  ;;  %v3547_v2 = vmul.f32 %v3539_v12, %v11138_v33  ;;  %8857 = vmatprep.subr.bf16.mxu0 %v8856_v59  ;;  %3617 = vmatprep.mubr.f32.mxu0 %v11114_v0  ;;  %v11139_v59 = vld [vmem:[#allocation4_spill] sm:$0xff] }
 0x28b   :  { %8636 = vmatmul.mubr.msk.f32.vlgmr.msra.gmra.mrb[4].mxu1 %vm2109_vm10, %v8634_v13  ;;  %8859 = vmatpush1.bf16.msra.mxu0 %v8858_v1  ;;  %v3703_v13 = vld [vmem:[%s11033_s10] sm:$0xf] }
 0x28c   :  { %v8862_v27 = vpack.c.bf16 %v3546_v44, %v3542_v28  ;;  %v8860_v53 = vpack.c.bf16 %v3547_v2, %v3543_v39  ;;  %3688 = vmatprep.mubr.f32.mxu1 %v11114_v0 }
 0x28e   :  { %8861 = vmatprep.subr.bf16.mxu1 %v8860_v53 }
 0x28f   :  { %8863 = vmatpush1.bf16.msra.mxu1 %v8862_v27 }
 0x291   :  { %8638 = vmatmul.mubr.msk.f32.vlgmr.msra.gmra.mrb[4].mxu0 %vm2109_vm10, %v8637_v31 }
 0x292   :  { %3794 = vmatprep.mubr.f32.mxu0 %v11114_v0 }
 0x293   :  { %8639 = vmatmul.mubr.msk.f32.vlgmr.msra.gmra.mrb[4].mxu1 %vm2109_vm10, %v8637_v31  ;;  %v3725_v31 = vld [vmem:[%s11034_s5] sm:$0xf] }
 0x294   :  { %3865 = vmatprep.mubr.f32.mxu1 %v11114_v0 }
 0x295   :  { %v2074_v17 = vpop.permute.xlu1 %2073 }
 0x364   :  { %v3619_v47 = vpop.f32.mrb[4].mxu0 }
 0x365   :  { %v8872_v16 = vadd.f32 %v3619_v47, %v2074_v17  ;;  %v3621_v54 = vpop.f32.mrb[5].mxu0 }
 0x366   :  { %v8873_v29 = vadd.f32 %v3621_v54, %v2074_v17  ;;  %v3690_v15 = vpop.f32.mrb[4].mxu1 }
 0x367   :  { %v10199_v37 = vmax.f32 %v8872_v16, 0.0  ;;  %v8874_v43 = vadd.f32 %v3690_v15, %v2074_v17  ;;  %v3692_v14 = vpop.f32.mrb[5].mxu1 }
 0x368   :  { %v10201_v30 = vmax.f32 %v8873_v29, 0.0  ;;  %v8875_v11 = vadd.f32 %v3692_v14, %v2074_v17 }
 0x369   :  { %3709 = vrot.lane.b32.xlu0 %v10199_v37, %s9107_s29  ;;  %v10207_v52 = vmax.f32 %v8874_v43, 0.0 }
 0x36a   :  { %3711 = vrot.lane.b32.xlu1 %v10201_v30, %s9107_s29  ;;  %v10209_v20 = vmax.f32 %v8875_v11, 0.0 }
 0x36d   :  { %3713 = vrot.lane.b32.xlu0 %v10207_v52, %s9107_s29 }
 0x36e   :  { %3715 = vrot.lane.b32.xlu1 %v10209_v20, %s9107_s29 }
 0x371   :  { %3876 = vrot.lane.b32.xlu0 %v10199_v37, %s9108_s0 }
 0x372   :  { %3878 = vrot.lane.b32.xlu1 %v10201_v30, %s9108_s0 }
 0x375   :  { %3880 = vrot.lane.b32.xlu0 %v10207_v52, %s9108_s0 }
 0x376   :  { %3882 = vrot.lane.b32.xlu1 %v10209_v20, %s9108_s0 }
 0x379   :  { %4043 = vrot.lane.b32.xlu0 %v10199_v37, %s9109_s30 }
 0x37a   :  { %4045 = vrot.lane.b32.xlu1 %v10201_v30, %s9109_s30 }
 0x37d   :  { %4047 = vrot.lane.b32.xlu0 %v10207_v52, %s9109_s30 }
 0x37e   :  { %4049 = vrot.lane.b32.xlu1 %v10209_v20, %s9109_s30 }
 0x381   :  { %4210 = vrot.lane.b32.xlu0 %v10199_v37, %s9110_s14 }
 0x382   :  { %4212 = vrot.lane.b32.xlu1 %v10201_v30, %s9110_s14 }
 0x385   :  { %4214 = vrot.lane.b32.xlu0 %v10207_v52, %s9110_s14 }
 0x386   :  { %4216 = vrot.lane.b32.xlu1 %v10209_v20, %s9110_s14 }
 0x389   :  { %4532 = vrot.lane.b32.xlu0 %v10199_v37, %s9111_s15 }
 0x38a   :  { %4534 = vrot.lane.b32.xlu1 %v10201_v30, %s9111_s15 }
 0x38d   :  { %4536 = vrot.lane.b32.xlu0 %v10207_v52, %s9111_s15 }
 0x38e   :  { %4538 = vrot.lane.b32.xlu1 %v10209_v20, %s9111_s15 }
 0x391   :  { %4699 = vrot.lane.b32.xlu0 %v10199_v37, %s9112_s16 }
 0x392   :  { %4701 = vrot.lane.b32.xlu1 %v10201_v30, %s9112_s16 }
 0x395   :  { %4703 = vrot.lane.b32.xlu0 %v10207_v52, %s9112_s16 }
 0x396   :  { %4705 = vrot.lane.b32.xlu1 %v10209_v20, %s9112_s16 }
 0x399   :  { %4866 = vrot.lane.b32.xlu0 %v10199_v37, %s9113_s17 }
 0x39a   :  { %4868 = vrot.lane.b32.xlu1 %v10201_v30, %s9113_s17 }
 0x39d   :  { %4870 = vrot.lane.b32.xlu0 %v10207_v52, %s9113_s17 }
 0x39e   :  { %4872 = vrot.lane.b32.xlu1 %v10209_v20, %s9113_s17 }
 0x3a1   :  { %5033 = vrot.lane.b32.xlu0 %v10199_v37, %s9114_s18 }
 0x3a2   :  { %5035 = vrot.lane.b32.xlu1 %v10201_v30, %s9114_s18 }
 0x3a5   :  { %5037 = vrot.lane.b32.xlu0 %v10207_v52, %s9114_s18 }
 0x3a6   :  { %5039 = vrot.lane.b32.xlu1 %v10209_v20, %s9114_s18 }
 0x3a9   :  { %3706 = vperm.xlu0 %9090, %v3703_v13  }
 0x3db   :  { %v3710_v6 = vpop.permute.xlu0 %3709 }
 0x3dc   :  { %v3712_v1 = vpop.permute.xlu1 %3711 }
 0x3dd   :  { %v3719_v26 = vsel %vm74_vm0, %v3710_v6, %v3712_v1 }
 0x3de   :  { %v3722_v28 = vmul.f32 %v3719_v26, %v11139_v59  ;;  %v8642_v26 = vld [vmem:[%s11034_s5 + $0x4] sm:$0xf] }
 0x3df   :  { %v3714_v45 = vpop.permute.xlu0 %3713 }
 0x3e0   :  { %v3718_v12 = vsel %vm74_vm0, %v3712_v1, %v3714_v45  ;;  %v3716_v39 = vpop.permute.xlu1 %3715  ;;  %3730 = vmatprep.subr.mxu0 %v3722_v28 }
 0x3e1   :  { %v3717_v44 = vsel %vm74_vm0, %v3714_v45, %v3716_v39  ;;  %v3720_v2 = vsel %vm74_vm0, %v3716_v39, %v3710_v6  ;;  %v3723_v17 = vmul.f32 %v3718_v12, %v9283_v22 }
 0x3e2   :  { %v3721_v27 = vmul.f32 %v3720_v2, %v9280_v21  ;;  %v3724_v53 = vmul.f32 %v3717_v44, %v9274_v19 }
 0x3e3   :  { %v3877_v47 = vpop.permute.xlu0 %3876 }
 0x3e4   :  { %v3879_v16 = vpop.permute.xlu1 %3878  ;;  %3731 = vmatpush1.msra.mxu0 %v3721_v27  ;;  %3801 = vmatprep.subr.mxu1 %v3724_v53 }
 0x3e5   :  { %v3886_v54 = vsel %vm297_vm2, %v3877_v47, %v3879_v16  ;;  %8640 = vmatmul.mubr.msk.f32.vlgmr.msra.gmra.mrb[6].mxu0 %vm3726_vm11, %v3725_v31  ;;  %3802 = vmatpush1.msra.mxu1 %v3723_v17 }
 0x3e6   :  { %8641 = vmatmul.mubr.msk.f32.vlgmr.msra.gmra.mrb[6].mxu1 %vm3726_vm11, %v3725_v31  ;;  %v3889_v29 = vmul.f32 %v3886_v54, %v9287_v25  ;;  %3961 = vmatprep.mubr.f32.mxu0 %v11114_v0  ;;  %v8645_v54 = vld [vmem:[%s11034_s5 + $0x8] sm:$0xf] }
 0x3e7   :  { %v3881_v15 = vpop.permute.xlu0 %3880  ;;  %4032 = vmatprep.mubr.f32.mxu1 %v11114_v0 }
 0x3e8   :  { %v3885_v43 = vsel %vm297_vm2, %v3879_v16, %v3881_v15  ;;  %v3883_v14 = vpop.permute.xlu1 %3882  ;;  %3897 = vmatprep.subr.mxu0 %v3889_v29 }
 0x3e9   :  { %v3884_v11 = vsel %vm297_vm2, %v3881_v15, %v3883_v14  ;;  %v3887_v13 = vsel %vm297_vm2, %v3883_v14, %v3877_v47  ;;  %v3890_v28 = vmul.f32 %v3885_v43, %v9317_v40 }
 0x3ea   :  { %v3888_v6 = vmul.f32 %v3887_v13, %v9311_v38  ;;  %v3891_v1 = vmul.f32 %v3884_v11, %v9320_v41 }
 0x3eb   :  { %v4044_v45 = vpop.permute.xlu0 %4043 }
 0x3ec   :  { %v4046_v12 = vpop.permute.xlu1 %4045  ;;  %3898 = vmatpush1.msra.mxu0 %v3888_v6  ;;  %3968 = vmatprep.subr.mxu1 %v3891_v1 }
 0x3ed   :  { %v4053_v39 = vsel %vm520_vm4, %v4044_v45, %v4046_v12  ;;  %8643 = vmatmul.mubr.msk.f32.vlgmr.msra.gmra.mrb[6].mxu0 %vm3726_vm11, %v8642_v26  ;;  %3969 = vmatpush1.msra.mxu1 %v3890_v28 }
 0x3ee   :  { %v4056_v44 = vmul.f32 %v4053_v39, %v9338_v49  ;;  %8644 = vmatmul.mubr.msk.f32.vlgmr.msra.gmra.mrb[6].mxu1 %vm3726_vm11, %v8642_v26  ;;  %4128 = vmatprep.mubr.f32.mxu0 %v11114_v0  ;;  %v8648_v39 = vld [vmem:[%s11034_s5 + $0xc] sm:$0xf] }
 0x3ef   :  { %v4048_v2 = vpop.permute.xlu0 %4047  ;;  %4199 = vmatprep.mubr.f32.mxu1 %v11114_v0 }
 0x3f0   :  { %v4052_v27 = vsel %vm520_vm4, %v4046_v12, %v4048_v2  ;;  %v4050_v53 = vpop.permute.xlu1 %4049  ;;  %4064 = vmatprep.subr.mxu0 %v4056_v44 }
 0x3f1   :  { %v4051_v31 = vsel %vm520_vm4, %v4048_v2, %v4050_v53  ;;  %v4054_v17 = vsel %vm520_vm4, %v4050_v53, %v4044_v45  ;;  %v4057_v29 = vmul.f32 %v4052_v27, %v9375_v63  ;;  %v4378_v53 = vmul.f32 %v10201_v30, %v9369_v61 }
 0x3f2   :  { %v4055_v47 = vmul.f32 %v4054_v17, %v9360_v58  ;;  %v4058_v16 = vmul.f32 %v4051_v31, %v9378_v3  ;;  %v4377_v31 = vmul.f32 %v10199_v37, %v9366_v60  ;;  %v4380_v17 = vmul.f32 %v10209_v20, %v9393_v9 }
 0x3f3   :  { %v4211_v15 = vpop.permute.xlu0 %4210 }
 0x3f4   :  { %v4213_v43 = vpop.permute.xlu1 %4212  ;;  %4065 = vmatpush1.msra.mxu0 %v4055_v47  ;;  %4135 = vmatprep.subr.mxu1 %v4058_v16  ;;  %v4379_v47 = vmul.f32 %v10207_v52, %v9390_v8 }
 0x3f5   :  { %v4220_v14 = vsel %vm743_vm5, %v4211_v15, %v4213_v43  ;;  %8646 = vmatmul.mubr.msk.f32.vlgmr.msra.gmra.mrb[6].mxu0 %vm3726_vm11, %v8645_v54  ;;  %4136 = vmatpush1.msra.mxu1 %v4057_v29 }
 0x3f6   :  { %v4223_v11 = vmul.f32 %v4220_v14, %v9387_v7  ;;  %8647 = vmatmul.mubr.msk.f32.vlgmr.msra.gmra.mrb[6].mxu1 %vm3726_vm11, %v8645_v54  ;;  %4295 = vmatprep.mubr.f32.mxu0 %v11114_v0 }
 0x3f7   :  { %v4215_v13 = vpop.permute.xlu0 %4214  ;;  %4366 = vmatprep.mubr.f32.mxu1 %v11114_v0 }
 0x3f8   :  { %v4219_v6 = vsel %vm743_vm5, %v4213_v43, %v4215_v13  ;;  %v4217_v1 = vpop.permute.xlu1 %4216  ;;  %4231 = vmatprep.subr.mxu0 %v4223_v11  ;;  %v8651_v43 = vld [vmem:[%s11034_s5 + $0x10] sm:$0xf] }
 0x3f9   :  { %v4218_v26 = vsel %vm743_vm5, %v4215_v13, %v4217_v1  ;;  %v4221_v28 = vsel %vm743_vm5, %v4217_v1, %v4211_v15  ;;  %v4224_v44 = vmul.f32 %v4219_v6, %v9429_v35 }
 0x3fa   :  { %v4222_v45 = vmul.f32 %v4221_v28, %v9422_v32  ;;  %v4225_v12 = vmul.f32 %v4218_v26, %v9432_v36 }
 0x3fb   :  { %v4533_v2 = vpop.permute.xlu0 %4532 }
 0x3fc   :  { %v4535_v27 = vpop.permute.xlu1 %4534  ;;  %4232 = vmatpush1.msra.mxu0 %v4222_v45  ;;  %4302 = vmatprep.subr.mxu1 %v4225_v12 }
 0x3fd   :  { %8649 = vmatmul.mubr.msk.f32.vlgmr.msra.gmra.mrb[6].mxu0 %vm3726_vm11, %v8648_v39  ;;  %4303 = vmatpush1.msra.mxu1 %v4224_v44  ;;  %v4542_v37 = vsel %vm1178_vm6, %v4533_v2, %v4535_v27 }
 0x3fe   :  { %4386 = vmatprep.subr.mxu0 %v4378_v53  ;;  %8650 = vmatmul.mubr.msk.f32.vlgmr.msra.gmra.mrb[6].mxu1 %vm3726_vm11, %v8648_v39  ;;  %v4544_v11 = vmul.f32 %v4542_v37, %v9474_v57 }
 0x3ff   :  { %4387 = vmatpush1.msra.mxu0 %v4377_v31  ;;  %4457 = vmatprep.subr.mxu1 %v4380_v17  ;;  %v4537_v16 = vpop.permute.xlu0 %4536 }
 0x400   :  { %4458 = vmatpush1.msra.mxu1 %v4379_v47  ;;  %v4541_v30 = vsel %vm1178_vm6, %v4535_v27, %v4537_v16  ;;  %v4539_v54 = vpop.permute.xlu1 %4538  ;;  %4450 = vmatprep.mubr.f32.mxu0 %v11114_v0  ;;  %v8654_v27 = vld [vmem:[%s11034_s5 + $0x14] sm:$0xf] }
 0x401   :  { %v4545_v20 = vmul.f32 %v4541_v30, %v9468_v55  ;;  %v4543_v29 = vsel %vm1178_vm6, %v4539_v54, %v4533_v2  ;;  %4521 = vmatprep.mubr.f32.mxu1 %v11114_v0  ;;  %v4540_v52 = vsel %vm1178_vm6, %v4537_v16, %v4539_v54 }
 0x402   :  { %v4547_v15 = vmul.f32 %v4543_v29, %v11118_v51  ;;  %v4546_v6 = vmul.f32 %v4540_v52, %v11117_v50 }
 0x403   :  { %4553 = vmatprep.subr.mxu0 %v4545_v20  ;;  %v4700_v14 = vpop.permute.xlu0 %4699 }
 0x404   :  { %v4702_v13 = vpop.permute.xlu1 %4701  ;;  %4624 = vmatprep.subr.mxu1 %v4547_v15 }
 0x405   :  { %8652 = vmatmul.mubr.msk.f32.vlgmr.msra.gmra.mrb[6].mxu0 %vm3726_vm11, %v8651_v43  ;;  %v4709_v45 = vsel %vm1401_vm7, %v4700_v14, %v4702_v13 }
 0x406   :  { %4554 = vmatpush1.msra.mxu0 %v4544_v11  ;;  %8653 = vmatmul.mubr.msk.f32.vlgmr.msra.gmra.mrb[6].mxu1 %vm3726_vm11, %v8651_v43  ;;  %v4711_v31 = vmul.f32 %v4709_v45, %v11121_v42  ;;  %v8657_v43 = vld [vmem:[%s11034_s5 + $0x18] sm:$0xf] }
 0x407   :  { %4625 = vmatpush1.msra.mxu1 %v4546_v6  ;;  %v4704_v1 = vpop.permute.xlu0 %4703  ;;  %4617 = vmatprep.mubr.f32.mxu0 %v11114_v0 }
 0x408   :  { %v4708_v26 = vsel %vm1401_vm7, %v4702_v13, %v4704_v1  ;;  %v4706_v28 = vpop.permute.xlu1 %4705  ;;  %4688 = vmatprep.mubr.f32.mxu1 %v11114_v0 }
 0x409   :  { %v4712_v12 = vmul.f32 %v4708_v26, %v11122_v5  ;;  %v4710_v39 = vsel %vm1401_vm7, %v4706_v28, %v4700_v14  ;;  %v4707_v44 = vsel %vm1401_vm7, %v4704_v1, %v4706_v28 }
 0x40a   :  { %v4714_v2 = vmul.f32 %v4710_v39, %v11126_v24  ;;  %v4713_v47 = vmul.f32 %v4707_v44, %v11125_v46 }
 0x40b   :  { %4720 = vmatprep.subr.mxu0 %v4712_v12  ;;  %v4867_v53 = vpop.permute.xlu0 %4866 }
 0x40c   :  { %v4869_v17 = vpop.permute.xlu1 %4868  ;;  %4791 = vmatprep.subr.mxu1 %v4714_v2 }
 0x40d   :  { %8655 = vmatmul.mubr.msk.f32.vlgmr.msra.gmra.mrb[6].mxu0 %vm3726_vm11, %v8654_v27  ;;  %v4876_v37 = vsel %vm1624_vm8, %v4867_v53, %v4869_v17 }
 0x40e   :  { %4721 = vmatpush1.msra.mxu0 %v4711_v31  ;;  %8656 = vmatmul.mubr.msk.f32.vlgmr.msra.gmra.mrb[6].mxu1 %vm3726_vm11, %v8654_v27  ;;  %v4878_v11 = vmul.f32 %v4876_v37, %v11129_v23  ;;  %v8660_v27 = vld [vmem:[%s11034_s5 + $0x1c] sm:$0xf] }
 0x40f   :  { %4792 = vmatpush1.msra.mxu1 %v4713_v47  ;;  %v4871_v16 = vpop.permute.xlu0 %4870  ;;  %4784 = vmatprep.mubr.f32.mxu0 %v11114_v0 }
 0x410   :  { %v4875_v30 = vsel %vm1624_vm8, %v4869_v17, %v4871_v16  ;;  %v4873_v54 = vpop.permute.xlu1 %4872  ;;  %4855 = vmatprep.mubr.f32.mxu1 %v11114_v0  ;;  %v8663_v17 = vld [vmem:[%s11034_s5 + $0x20] sm:$0xf] }
 0x411   :  { %v4879_v20 = vmul.f32 %v4875_v30, %v11130_v4  ;;  %v4877_v29 = vsel %vm1624_vm8, %v4873_v54, %v4867_v53  ;;  %v4874_v52 = vsel %vm1624_vm8, %v4871_v16, %v4873_v54 }
 0x412   :  { %v4881_v15 = vmul.f32 %v4877_v29, %v11134_v34  ;;  %v4880_v6 = vmul.f32 %v4874_v52, %v11133_v18 }
 0x413   :  { %4887 = vmatprep.subr.mxu0 %v4879_v20  ;;  %v5034_v14 = vpop.permute.xlu0 %5033 }
 0x414   :  { %v5036_v13 = vpop.permute.xlu1 %5035  ;;  %4958 = vmatprep.subr.mxu1 %v4881_v15 }
 0x415   :  { %8658 = vmatmul.mubr.msk.f32.vlgmr.msra.gmra.mrb[6].mxu0 %vm3726_vm11, %v8657_v43  ;;  %v5043_v45 = vsel %vm1847_vm9, %v5034_v14, %v5036_v13 }
 0x416   :  { %4888 = vmatpush1.msra.mxu0 %v4878_v11  ;;  %8659 = vmatmul.mubr.msk.f32.vlgmr.msra.gmra.mrb[6].mxu1 %vm3726_vm11, %v8657_v43  ;;  %v5045_v53 = vmul.f32 %v5043_v45, %v11135_v56 }
 0x417   :  { %4959 = vmatpush1.msra.mxu1 %v4880_v6  ;;  %v5038_v1 = vpop.permute.xlu0 %5037  ;;  %4951 = vmatprep.mubr.f32.mxu0 %v11114_v0  ;;  %v5204_v6 = vld [vmem:[%s11035_s11] sm:$0x3] }
 0x418   :  { %v5042_v26 = vsel %vm1847_vm9, %v5036_v13, %v5038_v1  ;;  %v5040_v28 = vpop.permute.xlu1 %5039  ;;  %5022 = vmatprep.mubr.f32.mxu1 %v11114_v0 }
 0x419   :  { %v5046_v12 = vmul.f32 %v5042_v26, %v11136_v48  ;;  %v5044_v39 = vsel %vm1847_vm9, %v5040_v28, %v5034_v14  ;;  %v5041_v44 = vsel %vm1847_vm9, %v5038_v1, %v5040_v28 }
 0x41a   :  { %v5048_v2 = vmul.f32 %v5044_v39, %v11138_v33  ;;  %v5047_v31 = vmul.f32 %v5041_v44, %v11137_v62 }
 0x41b   :  { %5054 = vmatprep.subr.mxu0 %v5046_v12 }
 0x41c   :  { %5125 = vmatprep.subr.mxu1 %v5048_v2 }
 0x41d   :  { %8661 = vmatmul.mubr.msk.f32.vlgmr.msra.gmra.mrb[6].mxu0 %vm3726_vm11, %v8660_v27 }
 0x41e   :  { %5055 = vmatpush1.msra.mxu0 %v5045_v53  ;;  %8662 = vmatmul.mubr.msk.f32.vlgmr.msra.gmra.mrb[6].mxu1 %vm3726_vm11, %v8660_v27 }
 0x41f   :  { %5126 = vmatpush1.msra.mxu1 %v5047_v31  ;;  %5118 = vmatprep.mubr.f32.mxu0 %v11114_v0 }
 0x420   :  { %5189 = vmatprep.mubr.f32.mxu1 %v11114_v0 }
 0x425   :  { %8664 = vmatmul.mubr.msk.f32.vlgmr.msra.gmra.mrb[6].mxu0 %vm3726_vm11, %v8663_v17 }
 0x426   :  { %8665 = vmatmul.mubr.msk.f32.vlgmr.msra.gmra.mrb[6].mxu1 %vm3726_vm11, %v8663_v17  ;;  %5306 = vmatprep.mubr.f32.mxu0 %v11114_v0  ;;  %v5226_v17 = vld [vmem:[%s11036_s6] sm:$0x3] }
 0x427   :  { %5377 = vmatprep.mubr.f32.mxu1 %v11114_v0 }
 0x428   :  { %v3707_v47 = vpop.permute.xlu0 %3706 }
 0x4f8   :  { %v5120_v16 = vpop.f32.mrb[6].mxu0 }
 0x4f9   :  { %v8876_v30 = vadd.f32 %v5120_v16, %v3707_v47  ;;  %v5122_v54 = vpop.f32.mrb[7].mxu0  ;;  %v5191_v37 = vpop.f32.mrb[6].mxu1 }
 0x4fa   :  { %v8877_v20 = vadd.f32 %v5122_v54, %v3707_v47  ;;  %v5193_v29 = vpop.f32.mrb[7].mxu1  ;;  %v8878_v15 = vadd.f32 %v5191_v37, %v3707_v47 }
 0x4fb   :  { %v10441_v52 = vmax.f32 %v8876_v30, 0.0  ;;  %v8879_v14 = vadd.f32 %v5193_v29, %v3707_v47 }
 0x4fc   :  { %v10443_v43 = vmax.f32 %v8877_v20, 0.0  ;;  %v10449_v11 = vmax.f32 %v8878_v15, 0.0 }
 0x4fd   :  { %5210 = vrot.lane.b32.xlu1 %v10441_v52, %s9107_s29  ;;  %v10451_v13 = vmax.f32 %v8879_v14, 0.0 }
 0x4fe   :  { %5212 = vrot.lane.b32.xlu0 %v10443_v43, %s9107_s29 }
 0x501   :  { %5214 = vrot.lane.b32.xlu1 %v10449_v11, %s9107_s29 }
 0x502   :  { %5216 = vrot.lane.b32.xlu0 %v10451_v13, %s9107_s29 }
 0x505   :  { %5388 = vrot.lane.b32.xlu1 %v10441_v52, %s9108_s0 }
 0x506   :  { %5390 = vrot.lane.b32.xlu0 %v10443_v43, %s9108_s0 }
 0x509   :  { %5392 = vrot.lane.b32.xlu1 %v10449_v11, %s9108_s0 }
 0x50a   :  { %5394 = vrot.lane.b32.xlu0 %v10451_v13, %s9108_s0 }
 0x50d   :  { %5567 = vrot.lane.b32.xlu1 %v10441_v52, %s9109_s30 }
 0x50e   :  { %5569 = vrot.lane.b32.xlu0 %v10443_v43, %s9109_s30 }
 0x511   :  { %5571 = vrot.lane.b32.xlu1 %v10449_v11, %s9109_s30 }
 0x512   :  { %5573 = vrot.lane.b32.xlu0 %v10451_v13, %s9109_s30 }
 0x515   :  { %5746 = vrot.lane.b32.xlu1 %v10441_v52, %s9110_s14 }
 0x516   :  { %5748 = vrot.lane.b32.xlu0 %v10443_v43, %s9110_s14 }
 0x519   :  { %5750 = vrot.lane.b32.xlu1 %v10449_v11, %s9110_s14 }
 0x51a   :  { %5752 = vrot.lane.b32.xlu0 %v10451_v13, %s9110_s14 }
 0x51d   :  { %6092 = vrot.lane.b32.xlu1 %v10441_v52, %s9111_s15 }
 0x51e   :  { %6094 = vrot.lane.b32.xlu0 %v10443_v43, %s9111_s15 }
 0x521   :  { %6096 = vrot.lane.b32.xlu1 %v10449_v11, %s9111_s15 }
 0x522   :  { %6098 = vrot.lane.b32.xlu0 %v10451_v13, %s9111_s15 }
 0x525   :  { %6271 = vrot.lane.b32.xlu1 %v10441_v52, %s9112_s16 }
 0x526   :  { %6273 = vrot.lane.b32.xlu0 %v10443_v43, %s9112_s16 }
 0x529   :  { %6275 = vrot.lane.b32.xlu1 %v10449_v11, %s9112_s16 }
 0x52a   :  { %6277 = vrot.lane.b32.xlu0 %v10451_v13, %s9112_s16 }
 0x52d   :  { %6450 = vrot.lane.b32.xlu1 %v10441_v52, %s9113_s17 }
 0x52e   :  { %6452 = vrot.lane.b32.xlu0 %v10443_v43, %s9113_s17 }
 0x531   :  { %6454 = vrot.lane.b32.xlu1 %v10449_v11, %s9113_s17 }
 0x532   :  { %6456 = vrot.lane.b32.xlu0 %v10451_v13, %s9113_s17 }
 0x535   :  { %6629 = vrot.lane.b32.xlu1 %v10441_v52, %s9114_s18 }
 0x536   :  { %6631 = vrot.lane.b32.xlu0 %v10443_v43, %s9114_s18 }
 0x539   :  { %6633 = vrot.lane.b32.xlu1 %v10449_v11, %s9114_s18 }
 0x53a   :  { %6635 = vrot.lane.b32.xlu0 %v10451_v13, %s9114_s18 }
 0x53d   :  { %5207 = vperm.xlu1 %9091, %v5204_v6  }
 0x56f   :  { %v5211_v1 = vpop.permute.xlu1 %5210 }
 0x570   :  { %v5213_v26 = vpop.permute.xlu0 %5212 }
 0x571   :  { %v5220_v28 = vsel %vm74_vm0, %v5211_v1, %v5213_v26 }
 0x572   :  { %v5223_v45 = vmul.f32 %v5220_v28, %v11139_v59  ;;  %v8672_v28 = vld [vmem:[%s11036_s6 + $0x2] sm:$0x3] }
 0x573   :  { %v5215_v12 = vpop.permute.xlu1 %5214 }
 0x574   :  { %v5219_v39 = vsel %vm74_vm0, %v5213_v26, %v5215_v12  ;;  %v5217_v44 = vpop.permute.xlu0 %5216  ;;  %8666 = vmatprep.subr.msk.mxu0 %vm114_vm1, %v5223_v45 }
 0x575   :  { %v5218_v2 = vsel %vm74_vm0, %v5215_v12, %v5217_v44  ;;  %v5221_v27 = vsel %vm74_vm0, %v5217_v44, %v5211_v1  ;;  %v5224_v47 = vmul.f32 %v5219_v39, %v9283_v22 }
 0x576   :  { %v5222_v53 = vmul.f32 %v5221_v27, %v9280_v21  ;;  %v5225_v31 = vmul.f32 %v5218_v2, %v9274_v19 }
 0x577   :  { %v5389_v16 = vpop.permute.xlu1 %5388 }
 0x578   :  { %v5391_v30 = vpop.permute.xlu0 %5390  ;;  %8667 = vmatpush1.msk.msra.mxu0 %vm114_vm1, %v5222_v53  ;;  %8669 = vmatprep.subr.msk.mxu1 %vm114_vm1, %v5225_v31 }
 0x579   :  { %v5398_v54 = vsel %vm297_vm2, %v5389_v16, %v5391_v30  ;;  %8668 = vmatmul.mubr.msk.f32.vlgmr.msra.gmra.mrb[8].mxu0 %vm107_vm3, %v5226_v17  ;;  %8670 = vmatpush1.msk.msra.mxu1 %vm114_vm1, %v5224_v47 }
 0x57a   :  { %v5401_v37 = vmul.f32 %v5398_v54, %v9287_v25  ;;  %8671 = vmatmul.mubr.msk.f32.vlgmr.msra.gmra.mrb[8].mxu1 %vm107_vm3, %v5226_v17  ;;  %5485 = vmatprep.mubr.f32.mxu0 %v11114_v0  ;;  %v8679_v54 = vld [vmem:[%s11036_s6 + $0x4] sm:$0x3] }
 0x57b   :  { %v5393_v20 = vpop.permute.xlu1 %5392  ;;  %5556 = vmatprep.mubr.f32.mxu1 %v11114_v0 }
 0x57c   :  { %v5397_v29 = vsel %vm297_vm2, %v5391_v30, %v5393_v20  ;;  %v5395_v15 = vpop.permute.xlu0 %5394  ;;  %8673 = vmatprep.subr.msk.mxu0 %vm114_vm1, %v5401_v37 }
 0x57d   :  { %v5396_v14 = vsel %vm297_vm2, %v5393_v20, %v5395_v15  ;;  %v5399_v6 = vsel %vm297_vm2, %v5395_v15, %v5389_v16  ;;  %v5402_v45 = vmul.f32 %v5397_v29, %v9317_v40 }
 0x57e   :  { %v5400_v1 = vmul.f32 %v5399_v6, %v9311_v38  ;;  %v5403_v26 = vmul.f32 %v5396_v14, %v9320_v41 }
 0x57f   :  { %v5568_v12 = vpop.permute.xlu1 %5567 }
 0x580   :  { %v5570_v39 = vpop.permute.xlu0 %5569  ;;  %8674 = vmatpush1.msk.msra.mxu0 %vm114_vm1, %v5400_v1  ;;  %8676 = vmatprep.subr.msk.mxu1 %vm114_vm1, %v5403_v26 }
 0x581   :  { %v5577_v44 = vsel %vm520_vm4, %v5568_v12, %v5570_v39  ;;  %8675 = vmatmul.mubr.msk.f32.vlgmr.msra.gmra.mrb[8].mxu0 %vm107_vm3, %v8672_v28  ;;  %8677 = vmatpush1.msk.msra.mxu1 %vm114_vm1, %v5402_v45 }
 0x582   :  { %v5580_v2 = vmul.f32 %v5577_v44, %v9338_v49  ;;  %8678 = vmatmul.mubr.msk.f32.vlgmr.msra.gmra.mrb[8].mxu1 %vm107_vm3, %v8672_v28  ;;  %5664 = vmatprep.mubr.f32.mxu0 %v11114_v0  ;;  %v8686_v44 = vld [vmem:[%s11036_s6 + $0x6] sm:$0x3] }
 0x583   :  { %v5572_v27 = vpop.permute.xlu1 %5571  ;;  %5735 = vmatprep.mubr.f32.mxu1 %v11114_v0 }
 0x584   :  { %v5576_v53 = vsel %vm520_vm4, %v5570_v39, %v5572_v27  ;;  %v5574_v31 = vpop.permute.xlu0 %5573  ;;  %8680 = vmatprep.subr.msk.mxu0 %vm114_vm1, %v5580_v2 }
 0x585   :  { %v5575_v17 = vsel %vm520_vm4, %v5572_v27, %v5574_v31  ;;  %v5578_v47 = vsel %vm520_vm4, %v5574_v31, %v5568_v12  ;;  %v5581_v37 = vmul.f32 %v5576_v53, %v9375_v63  ;;  %v5926_v31 = vmul.f32 %v10443_v43, %v9369_v61 }
 0x586   :  { %v5579_v16 = vmul.f32 %v5578_v47, %v9360_v58  ;;  %v5582_v30 = vmul.f32 %v5575_v17, %v9378_v3  ;;  %v5925_v17 = vmul.f32 %v10441_v52, %v9366_v60  ;;  %v5928_v47 = vmul.f32 %v10451_v13, %v9393_v9 }
 0x587   :  { %v5747_v20 = vpop.permute.xlu1 %5746 }
 0x588   :  { %v5749_v29 = vpop.permute.xlu0 %5748  ;;  %8681 = vmatpush1.msk.msra.mxu0 %vm114_vm1, %v5579_v16  ;;  %8683 = vmatprep.subr.msk.mxu1 %vm114_vm1, %v5582_v30  ;;  %v5927_v16 = vmul.f32 %v10449_v11, %v9390_v8 }
 0x589   :  { %v5756_v15 = vsel %vm743_vm5, %v5747_v20, %v5749_v29  ;;  %8682 = vmatmul.mubr.msk.f32.vlgmr.msra.gmra.mrb[8].mxu0 %vm107_vm3, %v8679_v54  ;;  %8684 = vmatpush1.msk.msra.mxu1 %vm114_vm1, %v5581_v37 }
 0x58a   :  { %v5759_v14 = vmul.f32 %v5756_v15, %v9387_v7  ;;  %8685 = vmatmul.mubr.msk.f32.vlgmr.msra.gmra.mrb[8].mxu1 %vm107_vm3, %v8679_v54  ;;  %5843 = vmatprep.mubr.f32.mxu0 %v11114_v0 }
 0x58b   :  { %v5751_v6 = vpop.permute.xlu1 %5750  ;;  %5914 = vmatprep.mubr.f32.mxu1 %v11114_v0 }
 0x58c   :  { %v5755_v1 = vsel %vm743_vm5, %v5749_v29, %v5751_v6  ;;  %v5753_v26 = vpop.permute.xlu0 %5752  ;;  %8687 = vmatprep.subr.msk.mxu0 %vm114_vm1, %v5759_v14  ;;  %v8693_v29 = vld [vmem:[%s11036_s6 + $0x8] sm:$0x3] }
 0x58d   :  { %v5754_v28 = vsel %vm743_vm5, %v5751_v6, %v5753_v26  ;;  %v5757_v45 = vsel %vm743_vm5, %v5753_v26, %v5747_v20  ;;  %v5760_v2 = vmul.f32 %v5755_v1, %v9429_v35 }
 0x58e   :  { %v5758_v12 = vmul.f32 %v5757_v45, %v9422_v32  ;;  %v5761_v39 = vmul.f32 %v5754_v28, %v9432_v36 }
 0x58f   :  { %v6093_v27 = vpop.permute.xlu1 %6092 }
 0x590   :  { %v6095_v53 = vpop.permute.xlu0 %6094  ;;  %8688 = vmatpush1.msk.msra.mxu0 %vm114_vm1, %v5758_v12  ;;  %8690 = vmatprep.subr.msk.mxu1 %vm114_vm1, %v5761_v39 }
 0x591   :  { %8689 = vmatmul.mubr.msk.f32.vlgmr.msra.gmra.mrb[8].mxu0 %vm107_vm3, %v8686_v44  ;;  %8691 = vmatpush1.msk.msra.mxu1 %vm114_vm1, %v5760_v2  ;;  %v6102_v13 = vsel %vm1178_vm6, %v6093_v27, %v6095_v53 }
 0x592   :  { %8694 = vmatprep.subr.msk.mxu0 %vm114_vm1, %v5926_v31  ;;  %8692 = vmatmul.mubr.msk.f32.vlgmr.msra.gmra.mrb[8].mxu1 %vm107_vm3, %v8686_v44  ;;  %v6104_v14 = vmul.f32 %v6102_v13, %v9474_v57 }
 0x593   :  { %8695 = vmatpush1.msk.msra.mxu0 %vm114_vm1, %v5925_v17  ;;  %8697 = vmatprep.subr.msk.mxu1 %vm114_vm1, %v5928_v47  ;;  %v6097_v43 = vpop.permute.xlu1 %6096 }
 0x594   :  { %8698 = vmatpush1.msk.msra.mxu1 %vm114_vm1, %v5927_v16  ;;  %v6101_v52 = vsel %vm1178_vm6, %v6095_v53, %v6097_v43  ;;  %v6099_v30 = vpop.permute.xlu0 %6098  ;;  %6010 = vmatprep.mubr.f32.mxu0 %v11114_v0  ;;  %v8700_v53 = vld [vmem:[%s11036_s6 + $0xa] sm:$0x3] }
 0x595   :  { %v6105_v54 = vmul.f32 %v6101_v52, %v9468_v55  ;;  %v6103_v11 = vsel %vm1178_vm6, %v6099_v30, %v6093_v27  ;;  %6081 = vmatprep.mubr.f32.mxu1 %v11114_v0  ;;  %v6100_v37 = vsel %vm1178_vm6, %v6097_v43, %v6099_v30 }
 0x596   :  { %v6107_v20 = vmul.f32 %v6103_v11, %v11118_v51  ;;  %v6106_v1 = vmul.f32 %v6100_v37, %v11117_v50 }
 0x597   :  { %v6272_v15 = vpop.permute.xlu1 %6271  ;;  %8701 = vmatprep.subr.msk.mxu0 %vm114_vm1, %v6105_v54 }
 0x598   :  { %v6274_v6 = vpop.permute.xlu0 %6273  ;;  %8704 = vmatprep.subr.msk.mxu1 %vm114_vm1, %v6107_v20 }
 0x599   :  { %8696 = vmatmul.mubr.msk.f32.vlgmr.msra.gmra.mrb[8].mxu0 %vm107_vm3, %v8693_v29  ;;  %v6281_v12 = vsel %vm1401_vm7, %v6272_v15, %v6274_v6 }
 0x59a   :  { %8702 = vmatpush1.msk.msra.mxu0 %vm114_vm1, %v6104_v14  ;;  %8699 = vmatmul.mubr.msk.f32.vlgmr.msra.gmra.mrb[8].mxu1 %vm107_vm3, %v8693_v29  ;;  %v6283_v17 = vmul.f32 %v6281_v12, %v11121_v42  ;;  %v8707_v29 = vld [vmem:[%s11036_s6 + $0xc] sm:$0x3] }
 0x59b   :  { %8705 = vmatpush1.msk.msra.mxu1 %vm114_vm1, %v6106_v1  ;;  %v6276_v26 = vpop.permute.xlu1 %6275  ;;  %6189 = vmatprep.mubr.f32.mxu0 %v11114_v0 }
 0x59c   :  { %v6280_v28 = vsel %vm1401_vm7, %v6274_v6, %v6276_v26  ;;  %v6278_v45 = vpop.permute.xlu0 %6277  ;;  %6260 = vmatprep.mubr.f32.mxu1 %v11114_v0 }
 0x59d   :  { %v6284_v39 = vmul.f32 %v6280_v28, %v11122_v5  ;;  %v6282_v44 = vsel %vm1401_vm7, %v6278_v45, %v6272_v15  ;;  %v6279_v2 = vsel %vm1401_vm7, %v6276_v26, %v6278_v45 }
 0x59e   :  { %v6286_v27 = vmul.f32 %v6282_v44, %v11126_v24  ;;  %v6285_v16 = vmul.f32 %v6279_v2, %v11125_v46 }
 0x59f   :  { %v6451_v31 = vpop.permute.xlu1 %6450  ;;  %8708 = vmatprep.subr.msk.mxu0 %vm114_vm1, %v6284_v39 }
 0x5a0   :  { %v6453_v47 = vpop.permute.xlu0 %6452  ;;  %8711 = vmatprep.subr.msk.mxu1 %vm114_vm1, %v6286_v27 }
 0x5a1   :  { %8703 = vmatmul.mubr.msk.f32.vlgmr.msra.gmra.mrb[8].mxu0 %vm107_vm3, %v8700_v53  ;;  %v6460_v13 = vsel %vm1624_vm8, %v6451_v31, %v6453_v47 }
 0x5a2   :  { %8709 = vmatpush1.msk.msra.mxu0 %vm114_vm1, %v6283_v17  ;;  %8706 = vmatmul.mubr.msk.f32.vlgmr.msra.gmra.mrb[8].mxu1 %vm107_vm3, %v8700_v53  ;;  %v6462_v14 = vmul.f32 %v6460_v13, %v11129_v23  ;;  %v8714_v53 = vld [vmem:[%s11036_s6 + $0xe] sm:$0x3] }
 0x5a3   :  { %8712 = vmatpush1.msk.msra.mxu1 %vm114_vm1, %v6285_v16  ;;  %v6455_v43 = vpop.permute.xlu1 %6454  ;;  %6368 = vmatprep.mubr.f32.mxu0 %v11114_v0 }
 0x5a4   :  { %v6459_v52 = vsel %vm1624_vm8, %v6453_v47, %v6455_v43  ;;  %v6457_v30 = vpop.permute.xlu0 %6456  ;;  %6439 = vmatprep.mubr.f32.mxu1 %v11114_v0  ;;  %v8721_v47 = vld [vmem:[%s11036_s6 + $0x10] sm:$0x3] }
 0x5a5   :  { %v6463_v54 = vmul.f32 %v6459_v52, %v11130_v4  ;;  %v6461_v11 = vsel %vm1624_vm8, %v6457_v30, %v6451_v31  ;;  %v6458_v37 = vsel %vm1624_vm8, %v6455_v43, %v6457_v30 }
 0x5a6   :  { %v6465_v20 = vmul.f32 %v6461_v11, %v11134_v34  ;;  %v6464_v1 = vmul.f32 %v6458_v37, %v11133_v18 }
 0x5a7   :  { %v6630_v15 = vpop.permute.xlu1 %6629  ;;  %8715 = vmatprep.subr.msk.mxu0 %vm114_vm1, %v6463_v54 }
 0x5a8   :  { %v6632_v6 = vpop.permute.xlu0 %6631  ;;  %8718 = vmatprep.subr.msk.mxu1 %vm114_vm1, %v6465_v20 }
 0x5a9   :  { %8710 = vmatmul.mubr.msk.f32.vlgmr.msra.gmra.mrb[8].mxu0 %vm107_vm3, %v8707_v29  ;;  %v6639_v12 = vsel %vm1847_vm9, %v6630_v15, %v6632_v6 }
 0x5aa   :  { %8716 = vmatpush1.msk.msra.mxu0 %vm114_vm1, %v6462_v14  ;;  %8713 = vmatmul.mubr.msk.f32.vlgmr.msra.gmra.mrb[8].mxu1 %vm107_vm3, %v8707_v29  ;;  %v6641_v31 = vmul.f32 %v6639_v12, %v11135_v56 }
 0x5ab   :  { %8719 = vmatpush1.msk.msra.mxu1 %vm114_vm1, %v6464_v1  ;;  %v6634_v26 = vpop.permute.xlu1 %6633  ;;  %6547 = vmatprep.mubr.f32.mxu0 %v11114_v0  ;;  %v6812_v1 = vld [vmem:[%s11037_s12] sm:$0x3] }
 0x5ac   :  { %v6638_v28 = vsel %vm1847_vm9, %v6632_v6, %v6634_v26  ;;  %v6636_v45 = vpop.permute.xlu0 %6635  ;;  %6618 = vmatprep.mubr.f32.mxu1 %v11114_v0 }
 0x5ad   :  { %v6642_v39 = vmul.f32 %v6638_v28, %v11136_v48  ;;  %v6640_v44 = vsel %vm1847_vm9, %v6636_v45, %v6630_v15  ;;  %v6637_v2 = vsel %vm1847_vm9, %v6634_v26, %v6636_v45 }
 0x5ae   :  { %v6644_v27 = vmul.f32 %v6640_v44, %v11138_v33  ;;  %v6643_v17 = vmul.f32 %v6637_v2, %v11137_v62 }
 0x5af   :  { %8722 = vmatprep.subr.msk.mxu0 %vm114_vm1, %v6642_v39 }
 0x5b0   :  { %8725 = vmatprep.subr.msk.mxu1 %vm114_vm1, %v6644_v27 }
 0x5b1   :  { %8717 = vmatmul.mubr.msk.f32.vlgmr.msra.gmra.mrb[8].mxu0 %vm107_vm3, %v8714_v53 }
 0x5b2   :  { %8723 = vmatpush1.msk.msra.mxu0 %vm114_vm1, %v6641_v31  ;;  %8720 = vmatmul.mubr.msk.f32.vlgmr.msra.gmra.mrb[8].mxu1 %vm107_vm3, %v8714_v53 }
 0x5b3   :  { %8726 = vmatpush1.msk.msra.mxu1 %vm114_vm1, %v6643_v17  ;;  %6726 = vmatprep.mubr.f32.mxu0 %v11114_v0 }
 0x5b4   :  { %6797 = vmatprep.mubr.f32.mxu1 %v11114_v0 }
 0x5b9   :  { %8724 = vmatmul.mubr.msk.f32.vlgmr.msra.gmra.mrb[8].mxu0 %vm107_vm3, %v8721_v47 }
 0x5ba   :  { %8727 = vmatmul.mubr.msk.f32.vlgmr.msra.gmra.mrb[8].mxu1 %vm107_vm3, %v8721_v47  ;;  %6916 = vmatprep.mubr.f32.mxu0 %v11114_v0 }
 0x5bb   :  { %6987 = vmatprep.mubr.f32.mxu1 %v11114_v0 }
 0x5bc   :  { %v5208_v16 = vpop.permute.xlu1 %5207 }
 0x68c   :  { %v6728_v43 = vpop.f32.mrb[8].mxu0 }
 0x68d   :  { %v8880_v52 = vadd.f32 %v6728_v43, %v5208_v16  ;;  %v6730_v30 = vpop.f32.mrb[9].mxu0  ;;  %v6799_v13 = vpop.f32.mrb[8].mxu1 }
 0x68e   :  { %v8881_v54 = vadd.f32 %v6730_v30, %v5208_v16  ;;  %v6801_v11 = vpop.f32.mrb[9].mxu1  ;;  %v8882_v20 = vadd.f32 %v6799_v13, %v5208_v16 }
 0x68f   :  { %v10719_v37 = vmax.f32 %v8880_v52, 0.0  ;;  %v8883_v15 = vadd.f32 %v6801_v11, %v5208_v16 }
 0x690   :  { %v10721_v29 = vmax.f32 %v8881_v54, 0.0  ;;  %v10727_v14 = vmax.f32 %v8882_v20, 0.0  ;;  %v8734_v20 = vld [vmem:[%s11038_s7 + $0x2] sm:$0x3] }
 0x691   :  { %6818 = vrot.lane.b32.xlu0 %v10719_v37, %s9107_s29  ;;  %v10729_v6 = vmax.f32 %v8883_v15, 0.0 }
 0x692   :  { %6820 = vrot.lane.b32.xlu1 %v10721_v29, %s9107_s29 }
 0x695   :  { %6822 = vrot.lane.b32.xlu0 %v10727_v14, %s9107_s29 }
 0x696   :  { %6824 = vrot.lane.b32.xlu1 %v10729_v6, %s9107_s29 }
 0x699   :  { %6998 = vrot.lane.b32.xlu0 %v10719_v37, %s9108_s0 }
 0x69a   :  { %7000 = vrot.lane.b32.xlu1 %v10721_v29, %s9108_s0 }
 0x69d   :  { %7002 = vrot.lane.b32.xlu0 %v10727_v14, %s9108_s0 }
 0x69e   :  { %7004 = vrot.lane.b32.xlu1 %v10729_v6, %s9108_s0 }
 0x6a1   :  { %7177 = vrot.lane.b32.xlu0 %v10719_v37, %s9109_s30 }
 0x6a2   :  { %7179 = vrot.lane.b32.xlu1 %v10721_v29, %s9109_s30 }
 0x6a5   :  { %7181 = vrot.lane.b32.xlu0 %v10727_v14, %s9109_s30 }
 0x6a6   :  { %7183 = vrot.lane.b32.xlu1 %v10729_v6, %s9109_s30 }
 0x6a9   :  { %7356 = vrot.lane.b32.xlu0 %v10719_v37, %s9110_s14 }
 0x6aa   :  { %7358 = vrot.lane.b32.xlu1 %v10721_v29, %s9110_s14 }
 0x6ad   :  { %7360 = vrot.lane.b32.xlu0 %v10727_v14, %s9110_s14 }
 0x6ae   :  { %7362 = vrot.lane.b32.xlu1 %v10729_v6, %s9110_s14 }
 0x6b1   :  { %7702 = vrot.lane.b32.xlu0 %v10719_v37, %s9111_s15 }
 0x6b2   :  { %7704 = vrot.lane.b32.xlu1 %v10721_v29, %s9111_s15 }
 0x6b5   :  { %7706 = vrot.lane.b32.xlu0 %v10727_v14, %s9111_s15 }
 0x6b6   :  { %7708 = vrot.lane.b32.xlu1 %v10729_v6, %s9111_s15 }
 0x6b9   :  { %7881 = vrot.lane.b32.xlu0 %v10719_v37, %s9112_s16 }
 0x6ba   :  { %7883 = vrot.lane.b32.xlu1 %v10721_v29, %s9112_s16 }
 0x6bd   :  { %7885 = vrot.lane.b32.xlu0 %v10727_v14, %s9112_s16 }
 0x6be   :  { %7887 = vrot.lane.b32.xlu1 %v10729_v6, %s9112_s16 }
 0x6c1   :  { %8060 = vrot.lane.b32.xlu0 %v10719_v37, %s9113_s17 }
 0x6c2   :  { %8062 = vrot.lane.b32.xlu1 %v10721_v29, %s9113_s17 }
 0x6c5   :  { %8064 = vrot.lane.b32.xlu0 %v10727_v14, %s9113_s17 }
 0x6c6   :  { %8066 = vrot.lane.b32.xlu1 %v10729_v6, %s9113_s17 }
 0x6c9   :  { %8239 = vrot.lane.b32.xlu0 %v10719_v37, %s9114_s18 }
 0x6ca   :  { %8241 = vrot.lane.b32.xlu1 %v10721_v29, %s9114_s18 }
 0x6cd   :  { %8243 = vrot.lane.b32.xlu0 %v10727_v14, %s9114_s18 }
 0x6ce   :  { %8245 = vrot.lane.b32.xlu1 %v10729_v6, %s9114_s18 }
 0x6d1   :  { %6815 = vperm.xlu0 %9090, %v6812_v1  }
 0x703   :  { %v6819_v26 = vpop.permute.xlu0 %6818 }
 0x704   :  { %v6821_v28 = vpop.permute.xlu1 %6820 }
 0x705   :  { %v6828_v45 = vsel %vm74_vm0, %v6819_v26, %v6821_v28 }
 0x706   :  { %v6831_v12 = vmul.f32 %v6828_v45, %v11139_v59  ;;  %v6834_v59 = vld [vmem:[%s11038_s7] sm:$0x3] }
 0x707   :  { %v6823_v39 = vpop.permute.xlu0 %6822 }
 0x708   :  { %v6827_v44 = vsel %vm74_vm0, %v6821_v28, %v6823_v39  ;;  %8728 = vmatprep.subr.msk.mxu0 %vm6839_vm12, %v6831_v12  ;;  %v6825_v2 = vpop.permute.xlu1 %6824 }
 0x709   :  { %v6826_v27 = vsel %vm74_vm0, %v6823_v39, %v6825_v2  ;;  %v6829_v53 = vsel %vm74_vm0, %v6825_v2, %v6819_v26  ;;  %v6832_v47 = vmul.f32 %v6827_v44, %v9283_v22  ;;  %v8741_v2 = vld [vmem:[%s11038_s7 + $0x4] sm:$0x3] }
 0x70a   :  { %v6830_v31 = vmul.f32 %v6829_v53, %v9280_v21  ;;  %v6833_v17 = vmul.f32 %v6826_v27, %v9274_v19 }
 0x70b   :  { %v6999_v16 = vpop.permute.xlu0 %6998 }
 0x70c   :  { %8729 = vmatpush1.msk.msra.mxu0 %vm6839_vm12, %v6830_v31  ;;  %8731 = vmatprep.subr.msk.mxu1 %vm6839_vm12, %v6833_v17  ;;  %v7001_v43 = vpop.permute.xlu1 %7000 }
 0x70d   :  { %v7008_v52 = vsel %vm297_vm2, %v6999_v16, %v7001_v43  ;;  %8730 = vmatmul.mubr.msk.f32.vlgmr.msra.gmra.mrb[10].mxu0 %vm6835_vm13, %v6834_v59  ;;  %8732 = vmatpush1.msk.msra.mxu1 %vm6839_vm12, %v6832_v47 }
 0x70e   :  { %v7011_v19 = vmul.f32 %v7008_v52, %v9287_v25  ;;  %8733 = vmatmul.mubr.msk.f32.vlgmr.msra.gmra.mrb[10].mxu1 %vm6835_vm13, %v6834_v59  ;;  %7095 = vmatprep.mubr.f32.mxu0 %v11114_v0  ;;  %v8748_v52 = vld [vmem:[%s11038_s7 + $0x6] sm:$0x3] }
 0x70f   :  { %v7003_v21 = vpop.permute.xlu0 %7002  ;;  %7166 = vmatprep.mubr.f32.mxu1 %v11114_v0 }
 0x710   :  { %v7007_v22 = vsel %vm297_vm2, %v7001_v43, %v7003_v21  ;;  %8735 = vmatprep.subr.msk.mxu0 %vm6839_vm12, %v7011_v19  ;;  %v7005_v30 = vpop.permute.xlu1 %7004 }
 0x711   :  { %v7006_v13 = vsel %vm297_vm2, %v7003_v21, %v7005_v30  ;;  %v7009_v54 = vsel %vm297_vm2, %v7005_v30, %v6999_v16  ;;  %v7012_v15 = vmul.f32 %v7007_v22, %v9317_v40  ;;  %v7536_v30 = vmul.f32 %v10721_v29, %v9369_v61 }
 0x712   :  { %v7010_v25 = vmul.f32 %v7009_v54, %v9311_v38  ;;  %v7013_v11 = vmul.f32 %v7006_v13, %v9320_v41  ;;  %v8755_v13 = vld [vmem:[%s11038_s7 + $0x8] sm:$0x3] }
 0x713   :  { %v7178_v1 = vpop.permute.xlu0 %7177 }
 0x714   :  { %8736 = vmatpush1.msk.msra.mxu0 %vm6839_vm12, %v7010_v25  ;;  %8738 = vmatprep.subr.msk.mxu1 %vm6839_vm12, %v7013_v11  ;;  %v7180_v26 = vpop.permute.xlu1 %7179 }
 0x715   :  { %v7187_v28 = vsel %vm520_vm4, %v7178_v1, %v7180_v26  ;;  %8737 = vmatmul.mubr.msk.f32.vlgmr.msra.gmra.mrb[10].mxu0 %vm6835_vm13, %v8734_v20  ;;  %8739 = vmatpush1.msk.msra.mxu1 %vm6839_vm12, %v7012_v15 }
 0x716   :  { %v7190_v38 = vmul.f32 %v7187_v28, %v9338_v49  ;;  %8740 = vmatmul.mubr.msk.f32.vlgmr.msra.gmra.mrb[10].mxu1 %vm6835_vm13, %v8734_v20  ;;  %7274 = vmatprep.mubr.f32.mxu0 %v11114_v0 }
 0x717   :  { %v7182_v40 = vpop.permute.xlu0 %7181  ;;  %7345 = vmatprep.mubr.f32.mxu1 %v11114_v0 }
 0x718   :  { %v7186_v41 = vsel %vm520_vm4, %v7180_v26, %v7182_v40  ;;  %8742 = vmatprep.subr.msk.mxu0 %vm6839_vm12, %v7190_v38  ;;  %v7184_v45 = vpop.permute.xlu1 %7183  ;;  %v8762_v38 = vld [vmem:[%s11038_s7 + $0xa] sm:$0x3] }
 0x719   :  { %v7185_v12 = vsel %vm520_vm4, %v7182_v40, %v7184_v45  ;;  %v7188_v39 = vsel %vm520_vm4, %v7184_v45, %v7178_v1  ;;  %v7191_v27 = vmul.f32 %v7186_v41, %v9375_v63 }
 0x71a   :  { %v7189_v49 = vmul.f32 %v7188_v39, %v9360_v58  ;;  %v7192_v44 = vmul.f32 %v7185_v12, %v9378_v3 }
 0x71b   :  { %v7357_v53 = vpop.permute.xlu0 %7356 }
 0x71c   :  { %8743 = vmatpush1.msk.msra.mxu0 %vm6839_vm12, %v7189_v49  ;;  %8745 = vmatprep.subr.msk.mxu1 %vm6839_vm12, %v7192_v44  ;;  %v7359_v31 = vpop.permute.xlu1 %7358 }
 0x71d   :  { %v7366_v17 = vsel %vm743_vm5, %v7357_v53, %v7359_v31  ;;  %8744 = vmatmul.mubr.msk.f32.vlgmr.msra.gmra.mrb[10].mxu0 %vm6835_vm13, %v8741_v2  ;;  %8746 = vmatpush1.msk.msra.mxu1 %vm6839_vm12, %v7191_v27  ;;  %v8769_v27 = vld [vmem:[%s11038_s7 + $0xc] sm:$0x3] }
 0x71e   :  { %v7369_v58 = vmul.f32 %v7366_v17, %v9387_v7  ;;  %8747 = vmatmul.mubr.msk.f32.vlgmr.msra.gmra.mrb[10].mxu1 %vm6835_vm13, %v8741_v2  ;;  %7453 = vmatprep.mubr.f32.mxu0 %v11114_v0 }
 0x71f   :  { %v7361_v63 = vpop.permute.xlu0 %7360  ;;  %7524 = vmatprep.mubr.f32.mxu1 %v11114_v0 }
 0x720   :  { %v7365_v3 = vsel %vm743_vm5, %v7359_v31, %v7361_v63  ;;  %8749 = vmatprep.subr.msk.mxu0 %vm6839_vm12, %v7369_v58  ;;  %v7363_v59 = vpop.permute.xlu1 %7362 }
 0x721   :  { %v7364_v47 = vsel %vm743_vm5, %v7361_v63, %v7363_v59  ;;  %v7367_v16 = vsel %vm743_vm5, %v7363_v59, %v7357_v53  ;;  %v7370_v19 = vmul.f32 %v7365_v3, %v9429_v35  ;;  %v7537_v35 = vmul.f32 %v10727_v14, %v9390_v8 }
 0x722   :  { %v7368_v7 = vmul.f32 %v7367_v16, %v9422_v32  ;;  %v7371_v43 = vmul.f32 %v7364_v47, %v9432_v36  ;;  %v7535_v32 = vmul.f32 %v10719_v37, %v9366_v60  ;;  %v7538_v36 = vmul.f32 %v10729_v6, %v9393_v9  ;;  %v8776_v16 = vld [vmem:[%s11038_s7 + $0xe] sm:$0x3] }
 0x723   :  { %v7703_v21 = vpop.permute.xlu0 %7702 }
 0x724   :  { %8750 = vmatpush1.msk.msra.mxu0 %vm6839_vm12, %v7368_v7  ;;  %8752 = vmatprep.subr.msk.mxu1 %vm6839_vm12, %v7371_v43  ;;  %v7705_v22 = vpop.permute.xlu1 %7704 }
 0x725   :  { %8751 = vmatmul.mubr.msk.f32.vlgmr.msra.gmra.mrb[10].mxu0 %vm6835_vm13, %v8748_v52  ;;  %8753 = vmatpush1.msk.msra.mxu1 %vm6839_vm12, %v7370_v19  ;;  %v7712_v9 = vsel %vm1178_vm6, %v7703_v21, %v7705_v22 }
 0x726   :  { %8756 = vmatprep.subr.msk.mxu0 %vm6839_vm12, %v7536_v30  ;;  %8754 = vmatmul.mubr.msk.f32.vlgmr.msra.gmra.mrb[10].mxu1 %vm6835_vm13, %v8748_v52  ;;  %v7714_v25 = vmul.f32 %v7712_v9, %v9474_v57 }
 0x727   :  { %8757 = vmatpush1.msk.msra.mxu0 %vm6839_vm12, %v7535_v32  ;;  %8759 = vmatprep.subr.msk.mxu1 %vm6839_vm12, %v7538_v36  ;;  %v7707_v61 = vpop.permute.xlu0 %7706 }
 0x728   :  { %v7711_v29 = vsel %vm1178_vm6, %v7705_v22, %v7707_v61  ;;  %8760 = vmatpush1.msk.msra.mxu1 %vm6839_vm12, %v7537_v35  ;;  %v7709_v60 = vpop.permute.xlu1 %7708  ;;  %7620 = vmatprep.mubr.f32.mxu0 %v11114_v0 }
 0x729   :  { %v7715_v37 = vmul.f32 %v7711_v29, %v9468_v55  ;;  %v7713_v8 = vsel %vm1178_vm6, %v7709_v60, %v7703_v21  ;;  %7691 = vmatprep.mubr.f32.mxu1 %v11114_v0  ;;  %v7710_v14 = vsel %vm1178_vm6, %v7707_v61, %v7709_v60 }
 0x72a   :  { %v7717_v6 = vmul.f32 %v7713_v8, %v11118_v51  ;;  %v7716_v11 = vmul.f32 %v7710_v14, %v11117_v50 }
 0x72b   :  { %v7882_v54 = vpop.permute.xlu0 %7881  ;;  %8763 = vmatprep.subr.msk.mxu0 %vm6839_vm12, %v7715_v37 }
 0x72c   :  { %8766 = vmatprep.subr.msk.mxu1 %vm6839_vm12, %v7717_v6  ;;  %v7884_v55 = vpop.permute.xlu1 %7883 }
 0x72d   :  { %8758 = vmatmul.mubr.msk.f32.vlgmr.msra.gmra.mrb[10].mxu0 %vm6835_vm13, %v8755_v13  ;;  %v7891_v50 = vsel %vm1401_vm7, %v7882_v54, %v7884_v55 }
 0x72e   :  { %8764 = vmatpush1.msk.msra.mxu0 %vm6839_vm12, %v7714_v25  ;;  %8761 = vmatmul.mubr.msk.f32.vlgmr.msra.gmra.mrb[10].mxu1 %vm6835_vm13, %v8755_v13  ;;  %v7893_v41 = vmul.f32 %v7891_v50, %v11121_v42  ;;  %v11141_v50 = vld [vmem:[#allocation3_spill] sm:$0xff] }
 0x72f   :  { %8767 = vmatpush1.msk.msra.mxu1 %vm6839_vm12, %v7716_v11  ;;  %v7886_v51 = vpop.permute.xlu0 %7885  ;;  %7799 = vmatprep.mubr.f32.mxu0 %v11114_v0  ;;  %v8418_v11 = vld [vmem:[%s11039_s2] ss:$2 sm:$0x3] }
 0x730   :  { %v7890_v20 = vsel %vm1401_vm7, %v7884_v55, %v7886_v51  ;;  %v7888_v57 = vpop.permute.xlu1 %7887  ;;  %7870 = vmatprep.mubr.f32.mxu1 %v11114_v0 }
 0x731   :  { %v7894_v15 = vmul.f32 %v7890_v20, %v11122_v5  ;;  %v7892_v1 = vsel %vm1401_vm7, %v7888_v57, %v7882_v54  ;;  %v7889_v26 = vsel %vm1401_vm7, %v7886_v51, %v7888_v57  ;;  %v8790_v51 = vld [vmem:[%s11039_s2 + $0x1] ss:$2 sm:$0x3] }
 0x732   :  { %v7896_v28 = vmul.f32 %v7892_v1, %v11126_v24  ;;  %v7895_v45 = vmul.f32 %v7889_v26, %v11125_v46  ;;  %v11140_v20 = vld [vmem:[#allocation2_spill] sm:$0xff]  ;;  %v8463_v26 = vrot.slane %v8790_v51, %v11141_v50 }
 0x733   :  { %v8061_v40 = vpop.permute.xlu0 %8060  ;;  %8770 = vmatprep.subr.msk.mxu0 %vm6839_vm12, %v7894_v15  ;;  %v8441_v57 = vrot.slane %v8418_v11, %v11140_v20  ;;  %v8445_v15 = vrot.slane %v8418_v11, %v11141_v50  ;;  %v8459_v1 = vrot.slane %v8790_v51, %v11140_v20 }
 0x734   :  { %8773 = vmatprep.subr.msk.mxu1 %vm6839_vm12, %v7896_v28  ;;  %v8063_v5 = vpop.permute.xlu1 %8062 }
 0x735   :  { %8765 = vmatmul.mubr.msk.f32.vlgmr.msra.gmra.mrb[10].mxu0 %vm6835_vm13, %v8762_v38  ;;  %v8070_v46 = vsel %vm1624_vm8, %v8061_v40, %v8063_v5 }
 0x736   :  { %8771 = vmatpush1.msk.msra.mxu0 %vm6839_vm12, %v7893_v41  ;;  %8768 = vmatmul.mubr.msk.f32.vlgmr.msra.gmra.mrb[10].mxu1 %vm6835_vm13, %v8762_v38  ;;  %v8072_v31 = vmul.f32 %v8070_v46, %v11129_v23 }
 0x737   :  { %8774 = vmatpush1.msk.msra.mxu1 %vm6839_vm12, %v7895_v45  ;;  %v8065_v24 = vpop.permute.xlu0 %8064  ;;  %7978 = vmatprep.mubr.f32.mxu0 %v11114_v0 }
 0x738   :  { %v8069_v12 = vsel %vm1624_vm8, %v8063_v5, %v8065_v24  ;;  %v8067_v42 = vpop.permute.xlu1 %8066  ;;  %8049 = vmatprep.mubr.f32.mxu1 %v11114_v0 }
 0x739   :  { %v8073_v39 = vmul.f32 %v8069_v12, %v11130_v4  ;;  %v8071_v49 = vsel %vm1624_vm8, %v8067_v42, %v8061_v40  ;;  %v8068_v44 = vsel %vm1624_vm8, %v8065_v24, %v8067_v42 }
 0x73a   :  { %v8075_v2 = vmul.f32 %v8071_v49, %v11134_v34  ;;  %v8074_v17 = vmul.f32 %v8068_v44, %v11133_v18 }
 0x73b   :  { %v8240_v53 = vpop.permute.xlu0 %8239  ;;  %8777 = vmatprep.subr.msk.mxu0 %vm6839_vm12, %v8073_v39 }
 0x73c   :  { %8780 = vmatprep.subr.msk.mxu1 %vm6839_vm12, %v8075_v2  ;;  %v8242_v4 = vpop.permute.xlu1 %8241 }
 0x73d   :  { %8772 = vmatmul.mubr.msk.f32.vlgmr.msra.gmra.mrb[10].mxu0 %vm6835_vm13, %v8769_v27  ;;  %v8249_v18 = vsel %vm1847_vm9, %v8240_v53, %v8242_v4 }
 0x73e   :  { %8778 = vmatpush1.msk.msra.mxu0 %vm6839_vm12, %v8072_v31  ;;  %8775 = vmatmul.mubr.msk.f32.vlgmr.msra.gmra.mrb[10].mxu1 %vm6835_vm13, %v8769_v27  ;;  %v8251_v7 = vmul.f32 %v8249_v18, %v11135_v56 }
 0x73f   :  { %8781 = vmatpush1.msk.msra.mxu1 %vm6839_vm12, %v8074_v17  ;;  %v8244_v34 = vpop.permute.xlu0 %8243  ;;  %8157 = vmatprep.mubr.f32.mxu0 %v11114_v0 }
 0x740   :  { %v8248_v58 = vsel %vm1847_vm9, %v8242_v4, %v8244_v34  ;;  %v8246_v23 = vpop.permute.xlu1 %8245  ;;  %8228 = vmatprep.mubr.f32.mxu1 %v11114_v0 }
 0x741   :  { %v8252_v63 = vmul.f32 %v8248_v58, %v11136_v48  ;;  %v8250_v3 = vsel %vm1847_vm9, %v8246_v23, %v8240_v53  ;;  %v8247_v59 = vsel %vm1847_vm9, %v8244_v34, %v8246_v23 }
 0x742   :  { %v8254_v47 = vmul.f32 %v8250_v3, %v11138_v33  ;;  %v8253_v48 = vmul.f32 %v8247_v59, %v11137_v62 }
 0x743   :  { %8784 = vmatprep.subr.msk.mxu0 %vm6839_vm12, %v8252_v63 }
 0x744   :  { %8787 = vmatprep.subr.msk.mxu1 %vm6839_vm12, %v8254_v47 }
 0x745   :  { %8779 = vmatmul.mubr.msk.f32.vlgmr.msra.gmra.mrb[10].mxu0 %vm6835_vm13, %v8776_v16 }
 0x746   :  { %8785 = vmatpush1.msk.msra.mxu0 %vm6839_vm12, %v8251_v7  ;;  %8782 = vmatmul.mubr.msk.f32.vlgmr.msra.gmra.mrb[10].mxu1 %vm6835_vm13, %v8776_v16 }
 0x747   :  { %8788 = vmatpush1.msk.msra.mxu1 %vm6839_vm12, %v8253_v48  ;;  %8336 = vmatprep.mubr.f32.mxu0 %v11114_v0 }
 0x748   :  { %8407 = vmatprep.mubr.f32.mxu1 %v11114_v0 }
 0x74d   :  { %8786 = vmatmul.mubr.msk.f32.vlgmr.msra.gmra.mrb[10].mxu0 %vm6835_vm13, %v8783_v10 }
 0x74e   :  { %8789 = vmatmul.mubr.msk.f32.vlgmr.msra.gmra.mrb[10].mxu1 %vm6835_vm13, %v8783_v10 }
 0x750   :  { %v6816_v56 = vpop.permute.xlu0 %6815 }
 0x820   :  { %v8338_v62 = vpop.f32.mrb[10].mxu0 }
 0x821   :  { %v8884_v33 = vadd.f32 %v8338_v62, %v6816_v56  ;;  %v8340_v43 = vpop.f32.mrb[11].mxu0  ;;  %v8409_v52 = vpop.f32.mrb[10].mxu1 }
 0x822   :  { %v8885_v19 = vadd.f32 %v8340_v43, %v6816_v56  ;;  %v8886_v21 = vadd.f32 %v8409_v52, %v6816_v56  ;;  %v8411_v22 = vpop.f32.mrb[11].mxu1 }
 0x823   :  { %v8421_v30 = vsel %vm6839_vm12, %v8884_v33, -inf  ;;  %v8887_v32 = vadd.f32 %v8411_v22, %v6816_v56 }
 0x824   :  { %v8422_v0 = vsel %vm6839_vm12, %v8885_v19, -inf  ;;  %v8479_v36 = vsel %vm6839_vm12, %v8886_v21, -inf }
 0x825   :  { %v8423_v35 = vmax.f32 %v8421_v30, %v8422_v0  ;;  %v8480_v61 = vsel %vm6839_vm12, %v8887_v32, -inf }
 0x826   :  { %v8481_v29 = vmax.f32 %v8479_v36, %v8480_v61 }
 0x827   :  { %8424 = vmax.xlane.f32.xlu1 %v8423_v35 }
 0x828   :  { %8482 = vmax.xlane.f32.xlu0 %v8481_v29 }
 0x8b4   :  { %v8425_v60 = vpop.xlane.xlu1 %8424 }
 0x8b5   :  { %v8426_v9 = vsub.f32 %v8884_v33, %v8425_v60  ;;  %v8427_v37 = vsub.f32 %v8885_v19, %v8425_v60  ;;  %v8483_v8 = vpop.xlane.xlu0 %8482 }
 0x8b6   :  { %v8484_v14 = vsub.f32 %v8886_v21, %v8483_v8  ;;  %v8485_v6 = vsub.f32 %v8887_v32, %v8483_v8 }
 0x8b7   :  { %v8428_v13 = vmul.f32 1.442695, %v8426_v9  ;;  %v8430_v54 = vmul.f32 1.442695, %v8427_v37 }
 0x8b8   :  { %v8486_v25 = vmul.f32 1.442695, %v8484_v14  ;;  %v8488_v55 = vmul.f32 1.442695, %v8485_v6 }
 0x8b9   :  { %9094 = vpow2.f32 %v8428_v13 }
 0x8ba   :  { %9096 = vpow2.f32 %v8430_v54 }
 0x8bb   :  { %9098 = vpow2.f32 %v8486_v25 }
 0x8bc   :  { %9100 = vpow2.f32 %v8488_v55 }
 0x8c3   :  { %v9095_v28 = vpop.eup %9094 }
 0x8c4   :  { %v9097_v38 = vpop.eup %9096  ;;  %v8432_v40 = vsel %vm6839_vm12, %v9095_v28, 0.0  ;;  %v8448_v41 = vmul.f32 %v9095_v28, %v8441_v57  ;;  %v8466_v12 = vmul.f32 %v9095_v28, %v8459_v1 }
 0x8c5   :  { %v9099_v5 = vpop.eup %9098  ;;  %v8433_v45 = vsel %vm6839_vm12, %v9097_v38, 0.0  ;;  %v8449_v24 = vmul.f32 %v9097_v38, %v8445_v15  ;;  %v8467_v42 = vmul.f32 %v9097_v38, %v8463_v26 }
 0x8c6   :  { %v9101_v46 = vpop.eup %9100  ;;  %v8434_v39 = vadd.f32 %v8433_v45, %v8432_v40  ;;  %v8490_v49 = vsel %vm6839_vm12, %v9099_v5, 0.0  ;;  %v8450_v2 = vsel %vm6839_vm12, %v8448_v41, 0.0  ;;  %v8495_v53 = vmul.f32 %v9099_v5, %v8441_v57 }
 0x8c7   :  { %v8491_v44 = vsel %vm6839_vm12, %v9101_v46, 0.0  ;;  %v8451_v27 = vsel %vm6839_vm12, %v8449_v24, 0.0  ;;  %v8496_v4 = vmul.f32 %v9101_v46, %v8445_v15  ;;  %v8468_v17 = vsel %vm6839_vm12, %v8466_v12, 0.0 }
 0x8c8   :  { %8435 = vadd.xlane.f32.xlu0 %v8434_v39  ;;  %v8492_v31 = vadd.f32 %v8491_v44, %v8490_v49  ;;  %v8469_v34 = vsel %vm6839_vm12, %v8467_v42, 0.0  ;;  %v8502_v58 = vmul.f32 %v9099_v5, %v8459_v1  ;;  %v8503_v23 = vmul.f32 %v9101_v46, %v8463_v26 }
 0x8c9   :  { %v8452_v18 = vadd.f32 %v8451_v27, %v8450_v2  ;;  %v8497_v63 = vsel %vm6839_vm12, %v8495_v53, 0.0  ;;  %v8498_v3 = vsel %vm6839_vm12, %v8496_v4, 0.0  ;;  %v8470_v59 = vadd.f32 %v8469_v34, %v8468_v17 }
 0x8ca   :  { %8493 = vadd.xlane.f32.xlu1 %v8492_v31  ;;  %v8504_v47 = vsel %vm6839_vm12, %v8502_v58, 0.0  ;;  %v8505_v16 = vsel %vm6839_vm12, %v8503_v23, 0.0  ;;  %v8499_v7 = vadd.f32 %v8498_v3, %v8497_v63 }
 0x8cb   :  { %v8506_v48 = vadd.f32 %v8505_v16, %v8504_v47 }
 0x8cc   :  { %8453 = vadd.xlane.f32.xlu0 %v8452_v18 }
 0x8ce   :  { %8471 = vadd.xlane.f32.xlu1 %v8470_v59 }
 0x8d0   :  { %8500 = vadd.xlane.f32.xlu0 %v8499_v7 }
 0x8d2   :  { %8507 = vadd.xlane.f32.xlu1 %v8506_v48 }
 0x955   :  { %v8436_v10 = vpop.xlane.xlu0 %8435 }
 0x956   :  { %9102 = vrcp.f32 %v8436_v10 }
 0x957   :  { %v8494_v56 = vpop.xlane.xlu1 %8493 }
 0x958   :  { %9104 = vrcp.f32 %v8494_v56 }
 0x959   :  { %v8454_v62 = vpop.xlane.xlu0 %8453 }
 0x95b   :  { %v8472_v33 = vpop.xlane.xlu1 %8471 }
 0x95c   :  { %v8474_v21 = vsel %vm8473_vm14, %v8454_v62, %v8472_v33 }
 0x95d   :  { %v8501_v43 = vpop.xlane.xlu0 %8500 }
 0x95f   :  { %v8508_v52 = vpop.xlane.xlu1 %8507 }
 0x960   :  { %v9103_v19 = vpop.eup %9102  ;;  %v8509_v32 = vsel %vm8473_vm14, %v8501_v43, %v8508_v52 }
 0x961   :  { %v8476_v22 = vmul.f32 %v9103_v19, %v8474_v21 }
 0x962   :  { %v9105_v30 = vpop.eup %9104 }
 0x963   :  { %8478 = vst.msk [vmem:[%s11040_s13] sm:$0x3] %vm8477_vm15, %v8476_v22  ;;  %v8511_v0 = vmul.f32 %v9105_v30, %v8509_v32 }
 0x965   :  { %8791 = vst.msk [vmem:[%s11040_s13 + $0x2] sm:$0x3] %vm8477_vm15, %v8511_v0 }

</bundles_post_ra>
